<compile_context>
chip_gen: v7x
topology: tpu7x:2x2x1
jax: 0.10.0
libtpu: 0.0.40
codegen_flags: <defaults>
</compile_context>

<pallas_src>
import jax
import jax.numpy as jnp
from jax.experimental import pallas as pl
from jax.experimental.pallas import tpu as pltpu

N_EMBED = 768
AUX_DIM = 768 // 4              # 192: true input dim of linear_layer
AUX_PAD = 256                   # K zero-padded to 2 full (.,128) lane tiles
VOCAB = 15360 + 1               # 15361
PAD_ID = 15360
SHIFT = 4                       # shift_logits[..., :-4, :], labels[..., 4:]
LN_EPS = 1e-5

TM = 512                        # row tile, embed kernel (HBM-bound; big tiles)
TN = 512                        # row tile, LSE kernel (weight reuse; fits v7x VMEM)
TV = 2048                       # vocab tile for the pred_head / LSE kernel
VOCAB_PAD = ((VOCAB + TV - 1) // TV) * TV   # 16384
VMEM_LIMIT = 48 * 1024 * 1024   # <= 64 MiB physical VMEM on v7x; ample on v5e/v6e


def _round_up(x, m):
    return ((x + m - 1) // m) * m


# ----------------------------------------------------------------------------
# Kernel 1: build final input embeddings (row-tiled over M)
#   aux:  (tm,256)bf16 @ (256,768)bf16 -> f32 -> LayerNorm -> * embed_mask
#   seq:  gathered wte rows (tm,768)bf16 -> f32 LayerNorm -> * vocab_mask
#   out = (seq + aux) cast to bf16 on store
# ----------------------------------------------------------------------------
def embed_kernel(aux_ref, wlin_ref, g_aux_ref, b_aux_ref,
                 vemb_ref, g_seq_ref, b_seq_ref,
                 emask_ref, vmask_ref, out_ref):
    # aux branch: bf16 MXU matmul, f32 accumulation
    aux_lin = jax.lax.dot_general(
        aux_ref[...], wlin_ref[...],
        (((1,), (0,)), ((), ())),
        preferred_element_type=jnp.float32)
    mu_a = jnp.mean(aux_lin, axis=-1, keepdims=True)
    var_a = jnp.mean((aux_lin - mu_a) ** 2, axis=-1, keepdims=True)
    aux_n = (aux_lin - mu_a) * jax.lax.rsqrt(var_a + LN_EPS)
    aux_n = aux_n * g_aux_ref[...] + b_aux_ref[...]
    aux_n = aux_n * emask_ref[...]

    # seq branch: LayerNorm of gathered wte rows (bf16 in, f32 math)
    v = vemb_ref[...].astype(jnp.float32)
    mu_s = jnp.mean(v, axis=-1, keepdims=True)
    var_s = jnp.mean((v - mu_s) ** 2, axis=-1, keepdims=True)
    v_n = (v - mu_s) * jax.lax.rsqrt(var_s + LN_EPS)
    v_n = v_n * g_seq_ref[...] + b_seq_ref[...]
    v_n = v_n * vmask_ref[...]

    # bf16 store: halves HBM writeback and the re-read by the LSE kernel
    out_ref[...] = (v_n + aux_n).astype(out_ref.dtype)


def embed_pallas(aux2, vemb2, emask2, vmask2, params):
    m_rows = aux2.shape[0]
    tm = min(TM, m_rows)
    grid = (pl.cdiv(m_rows, tm),)
    row = lambda shape: pl.BlockSpec(shape, lambda i: (i, 0))
    bc = lambda shape: pl.BlockSpec(shape, lambda i: (0, 0))
    return pl.pallas_call(
        embed_kernel,
        out_shape=jax.ShapeDtypeStruct((m_rows, N_EMBED), jnp.bfloat16),
        grid_spec=pltpu.PrefetchScalarGridSpec(
            num_scalar_prefetch=0,
            grid=grid,
            in_specs=[
                row((tm, AUX_PAD)),               # aux embeds (bf16, padded K)
                bc((AUX_PAD, N_EMBED)),           # linear_layer weight [K, N] bf16
                bc((1, N_EMBED)),                 # norm_aux gamma
                bc((1, N_EMBED)),                 # norm_aux beta
                row((tm, N_EMBED)),               # gathered wte rows (bf16)
                bc((1, N_EMBED)),                 # norm_seq gamma
                bc((1, N_EMBED)),                 # norm_seq beta
                row((tm, 1)),                     # embed_mask
                row((tm, 1)),                     # vocab_mask
            ],
            out_specs=row((tm, N_EMBED)),
        ),
        compiler_params=pltpu.CompilerParams(
            dimension_semantics=("parallel",),
            vmem_limit_bytes=VMEM_LIMIT),
    )(aux2, params["w_lin"], params["g_aux"], params["b_aux"],
      vemb2, params["g_seq"], params["b_seq"], emask2, vmask2)


# ----------------------------------------------------------------------------
# Kernel 2: pred_head (h @ Wp, Wp is [768, VOCAB_PAD] bf16) fused with an
# online logsumexp. grid = (row tiles "parallel", vocab tiles "arbitrary").
# Per-row LSE is emitted; NLL = lse - picked_logit is formed in JAX glue
# (target-logit gather lives outside the vocab loop -> no iota/compare/select
# passes over the (TN, TV) logit tile).
# Vocab padding handled by an additive bias tile (0 / -1e30, f32 end-to-end).
# ----------------------------------------------------------------------------
def lse_kernel(h_ref, w_ref, bias_ref, out_ref, m_sc, l_sc):
    k = pl.program_id(1)

    @pl.when(k == 0)
    def _():
        m_sc[...] = jnp.full_like(m_sc, -jnp.inf)
        l_sc[...] = jnp.zeros_like(l_sc)

    # (tn, 768)bf16 @ (768, TV)bf16 -> (tn, TV)f32 on the MXU
    s = jax.lax.dot_general(
        h_ref[...], w_ref[...],
        (((1,), (0,)), ((), ())),
        preferred_element_type=jnp.float32)
    s = s + bias_ref[...]                    # -1e30 on padded vocab columns (f32 only)

    # online logsumexp (tile 0 always has finite logits, so -inf rescale is safe)
    m_new = jnp.maximum(m_sc[...], jnp.max(s, axis=-1, keepdims=True))
    l_sc[...] = (l_sc[...] * jnp.exp(m_sc[...] - m_new)
                 + jnp.sum(jnp.exp(s - m_new), axis=-1, keepdims=True))
    m_sc[...] = m_new

    @pl.when(k == pl.num_programs(1) - 1)
    def _():
        out_ref[...] = m_sc[...] + jnp.log(l_sc[...])


def lse_pallas(h, w_pred, pad_bias):
    m_rows = h.shape[0]
    tn = min(TN, m_rows)
    n_row_tiles = pl.cdiv(m_rows, tn)
    n_vocab_tiles = VOCAB_PAD // TV
    return pl.pallas_call(
        lse_kernel,
        out_shape=jax.ShapeDtypeStruct((m_rows, 1), jnp.float32),
        grid_spec=pltpu.PrefetchScalarGridSpec(
            num_scalar_prefetch=0,
            grid=(n_row_tiles, n_vocab_tiles),
            in_specs=[
                pl.BlockSpec((tn, N_EMBED), lambda i, k: (i, 0)),   # h rows (bf16)
                pl.BlockSpec((N_EMBED, TV), lambda i, k: (0, k)),   # Wp [K,N] bf16
                pl.BlockSpec((1, TV), lambda i, k: (0, k)),         # pad bias (f32)
            ],
            out_specs=pl.BlockSpec((tn, 1), lambda i, k: (i, 0)),
            scratch_shapes=[pltpu.VMEM((tn, 1), jnp.float32)] * 2,
        ),
        compiler_params=pltpu.CompilerParams(
            dimension_semantics=("parallel", "arbitrary"),
            vmem_limit_bytes=VMEM_LIMIT),
    )(h, w_pred, pad_bias)


# ----------------------------------------------------------------------------
# Full forward (GPT4RecModel.forward semantics)
# ----------------------------------------------------------------------------
def gpt4rec_forward(batch_seq, batch_labels, aux_embeds, embed_mask, params):
    B, S = batch_seq.shape
    M = B * S
    m_rows = _round_up(M, 8)

    # ---- glue: embed() preprocessing (mask / clamp / wte gather) ----
    in_vocab = batch_seq < VOCAB
    vocab_mask = in_vocab.astype(jnp.float32).reshape(M, 1)
    vocab_ids = jnp.clip(batch_seq * in_vocab.astype(batch_seq.dtype),
                         0, VOCAB - 1)
    vocab_emb = jnp.take(params["wte"], vocab_ids.reshape(M), axis=0)    # (M,768) bf16
    attention_mask = (batch_seq != VOCAB - 1).astype(jnp.int32)          # noqa: F841
    # TODO(synk): attention_mask / gpt2model transformer body are external
    # (HF GPT-2); the transformer is treated as identity on inputs_embeds.

    aux2 = jnp.pad(aux_embeds.reshape(M, AUX_DIM).astype(jnp.bfloat16),
                   ((0, 0), (0, AUX_PAD - AUX_DIM)))                     # K pad only
    emask2 = embed_mask.reshape(M, 1).astype(jnp.float32)

    if m_rows != M:   # rare: row count not a multiple of the 8-row sublane tile
        pad = m_rows - M
        aux2 = jnp.pad(aux2, ((0, pad), (0, 0)))
        vocab_emb = jnp.pad(vocab_emb, ((0, pad), (0, 0)))
        emask2 = jnp.pad(emask2, ((0, pad), (0, 0)))
        vocab_mask = jnp.pad(vocab_mask, ((0, pad), (0, 0)))

    h = embed_pallas(aux2, vocab_emb, emask2, vocab_mask, params)        # (m_rows,768) bf16

    # ---- pred_head + shifted cross-entropy ----
    # Run the fused pred_head/logsumexp kernel over ALL rows; the trailing SHIFT
    # positions of each sequence are masked out below.  This avoids writing a
    # shifted copy of the hidden states back to HBM.
    lse = lse_pallas(h, params["w_pred"], params["pad_bias"])            # (m_rows,1) f32

    # labels / validity aligned to the un-shifted row layout
    lbl_full = jnp.concatenate(
        [batch_labels[:, SHIFT:], jnp.zeros((B, SHIFT), batch_labels.dtype)],
        axis=1).reshape(M).astype(jnp.int32)
    valid = jnp.broadcast_to(jnp.arange(S) < (S - SHIFT), (B, S))
    valid = valid.reshape(M).astype(jnp.float32)

    # target logit: column gather of the pred head + row-wise dot (bf16 products,
    # f32 accumulation) — replaces the per-tile iota/compare/select path in-kernel.
    w_cols = jnp.take(params["w_pred"], lbl_full, axis=1)                # (768, M) bf16
    picked = jnp.sum(h[:M].astype(jnp.float32) * w_cols.T.astype(jnp.float32),
                     axis=-1)                                            # (M,)

    nll = lse[:M, 0] - picked
    return jnp.sum(nll * valid) / (B * (S - SHIFT))


# ----------------------------------------------------------------------------
# Pure-JAX reference for validation (same bf16 matmul arithmetic, f32 elsewhere)
# ----------------------------------------------------------------------------
def reference_forward(batch_seq, batch_labels, aux_embeds, embed_mask, params):
    def ln(x, g, b):
        mu = x.mean(-1, keepdims=True)
        var = ((x - mu) ** 2).mean(-1, keepdims=True)
        return (x - mu) * jax.lax.rsqrt(var + LN_EPS) * g + b

    in_vocab = batch_seq < VOCAB
    vocab_ids = jnp.clip(batch_seq * in_vocab.astype(batch_seq.dtype),
                         0, VOCAB - 1)
    ve = jnp.take(params["wte"], vocab_ids, axis=0).astype(jnp.float32)
    ve = ln(ve, params["g_seq"][0], params["b_seq"][0])
    ve = ve * in_vocab[..., None].astype(jnp.float32)

    aux = jnp.dot(aux_embeds.astype(jnp.bfloat16),
                  params["w_lin"][:AUX_DIM],
                  preferred_element_type=jnp.float32)
    aux = ln(aux, params["g_aux"][0], params["b_aux"][0])
    aux = aux * embed_mask

    hidden = ve + aux
    logits = jnp.dot(hidden.astype(jnp.bfloat16),
                     params["w_pred"][:, :VOCAB],
                     preferred_element_type=jnp.float32)
    sl = logits[:, :-SHIFT, :].reshape(-1, VOCAB)
    lab = batch_labels[:, SHIFT:].reshape(-1)
    lse = jax.nn.logsumexp(sl, axis=-1)
    picked = sl[jnp.arange(sl.shape[0]), lab]
    return jnp.mean(lse - picked)


# ----------------------------------------------------------------------------
# Deterministic parameter construction
# ----------------------------------------------------------------------------
def make_params(key):
    k1, k2, k3, k4, k5, k6, k7 = jax.random.split(key, 7)

    # token embedding table kept in bf16 (halves wte gather traffic)
    wte = (0.02 * jax.random.normal(k1, (VOCAB, N_EMBED), jnp.float32)
           ).astype(jnp.bfloat16)

    # prediction head stored pre-transposed as [K=768, VOCAB_PAD] in bf16;
    # padded columns MUST be exactly zero (they only see the additive -1e30 bias).
    w_pred = 0.02 * jax.random.normal(k2, (N_EMBED, VOCAB), jnp.float32)
    w_pred_pad = jnp.zeros((N_EMBED, VOCAB_PAD), jnp.bfloat16)
    w_pred_pad = w_pred_pad.at[:, :VOCAB].set(w_pred.astype(jnp.bfloat16))

    # aux linear stored pre-transposed as [K=AUX_PAD, 768] in bf16, zero-padded rows
    w_lin = 0.02 * jax.random.normal(k3, (AUX_DIM, N_EMBED), jnp.float32)
    w_lin_pad = jnp.zeros((AUX_PAD, N_EMBED), jnp.bfloat16)
    w_lin_pad = w_lin_pad.at[:AUX_DIM].set(w_lin.astype(jnp.bfloat16))

    g_aux = (1.0 + 0.01 * jax.random.normal(k4, (N_EMBED,))).reshape(1, N_EMBED)
    b_aux = (0.01 * jax.random.normal(k5, (N_EMBED,))).reshape(1, N_EMBED)
    g_seq = (1.0 + 0.01 * jax.random.normal(k6, (N_EMBED,))).reshape(1, N_EMBED)
    b_seq = (0.01 * jax.random.normal(k7, (N_EMBED,))).reshape(1, N_EMBED)

    pad_bias = jnp.where(jnp.arange(VOCAB_PAD) < VOCAB, 0.0, -1e30)
    pad_bias = pad_bias.astype(jnp.float32).reshape(1, VOCAB_PAD)

    return dict(wte=wte, w_pred=w_pred_pad, w_lin=w_lin_pad,
                g_aux=g_aux, b_aux=b_aux, g_seq=g_seq, b_seq=b_seq,
                pad_bias=pad_bias)


if __name__ == "__main__":
    B, S = 2, 8
    key = jax.random.PRNGKey(0)
    kp, ks, kl, ka, km = jax.random.split(key, 5)

    params = make_params(kp)

    # some ids >= vocab_size to exercise vocab_mask, some == padding id
    batch_seq = jax.random.randint(ks, (B, S), 0, VOCAB + 64, dtype=jnp.int32)
    batch_seq = batch_seq.at[0, -1].set(PAD_ID)
    batch_labels = jax.random.randint(kl, (B, S), 0, VOCAB, dtype=jnp.int32)

    # stand-ins for ae.encode_aux outputs (external module)
    aux_embeds = jax.random.normal(ka, (B, S, AUX_DIM), jnp.float32)
    embed_mask = jax.random.bernoulli(km, 0.75, (B, S, 1)).astype(jnp.float32)

    loss = jax.jit(gpt4rec_forward)(batch_seq, batch_labels,
                                    aux_embeds, embed_mask, params)
    loss = jax.block_until_ready(loss)

    ref = reference_forward(batch_seq, batch_labels, aux_embeds, embed_mask,
                            params)
    ref = jax.block_until_ready(ref)

    assert jnp.isfinite(loss), f"non-finite loss {loss}"
    assert jnp.allclose(loss, ref, rtol=2e-3, atol=2e-3), (loss, ref)
    print("KERNEL_OK")
</pallas_src>

<mosaic_0001>
module attributes {stable_mosaic.version = 11 : i64} {
  func.func @embed_kernel(%arg0: i32, %arg1: memref<16x256xbf16, #tpu.memory_space<vmem>>, %arg2: memref<256x768xbf16, #tpu.memory_space<vmem>>, %arg3: memref<1x768xf32, #tpu.memory_space<vmem>>, %arg4: memref<1x768xf32, #tpu.memory_space<vmem>>, %arg5: memref<16x768xbf16, #tpu.memory_space<vmem>>, %arg6: memref<1x768xf32, #tpu.memory_space<vmem>>, %arg7: memref<1x768xf32, #tpu.memory_space<vmem>>, %arg8: memref<16x1xf32, #tpu.memory_space<vmem>>, %arg9: memref<16x1xf32, #tpu.memory_space<vmem>>, %arg10: memref<16x768xbf16, #tpu.memory_space<vmem>>) attributes {dimension_semantics = [#tpu.dimension_semantics<parallel>], iteration_bounds = array<i64: 1>, scalar_prefetch = 0 : i64, scratch_operands = 0 : i64, tpu.core_type = #tpu.core_type<tc>, window_params = [{transform_indices = @transform_0, window_bounds = array<i64: 16, 256>}, {pipeline_mode = #tpu.pipeline_mode<synchronous>, transform_indices = @transform_1, window_bounds = array<i64: 256, 768>}, {pipeline_mode = #tpu.pipeline_mode<synchronous>, transform_indices = @transform_2, window_bounds = array<i64: 1, 768>}, {pipeline_mode = #tpu.pipeline_mode<synchronous>, transform_indices = @transform_3, window_bounds = array<i64: 1, 768>}, {transform_indices = @transform_4, window_bounds = array<i64: 16, 768>}, {pipeline_mode = #tpu.pipeline_mode<synchronous>, transform_indices = @transform_5, window_bounds = array<i64: 1, 768>}, {pipeline_mode = #tpu.pipeline_mode<synchronous>, transform_indices = @transform_6, window_bounds = array<i64: 1, 768>}, {transform_indices = @transform_7, window_bounds = array<i64: 16, 1>}, {transform_indices = @transform_8, window_bounds = array<i64: 16, 1>}, {transform_indices = @transform_9, window_bounds = array<i64: 16, 768>}]} {
    %c0 = arith.constant 0 : index
    %c0_0 = arith.constant 0 : index
    %0 = vector.load %arg1[%c0, %c0_0] : memref<16x256xbf16, #tpu.memory_space<vmem>>, vector<16x256xbf16>
    %c0_1 = arith.constant 0 : index
    %c0_2 = arith.constant 0 : index
    %1 = vector.load %arg2[%c0_1, %c0_2] : memref<256x768xbf16, #tpu.memory_space<vmem>>, vector<256x768xbf16>
    %cst = arith.constant dense<0.000000e+00> : vector<16x768xf32>
    %2 = tpu.matmul %0, %1, %cst {dimension_numbers = #tpu.dot_dimension_numbers<[1], [0], [0], [1], [0, 0, 1, 1], [], []>} : vector<16x256xbf16>, vector<256x768xbf16>, vector<16x768xf32> -> vector<16x768xf32>
    %cst_3 = arith.constant dense<0.000000e+00> : vector<16xf32>
    %3 = vector.multi_reduction <add>, %2, %cst_3 [1] : vector<16x768xf32> to vector<16xf32>
    %4 = vector.shape_cast %3 : vector<16xf32> to vector<16x1xf32>
    %cst_4 = arith.constant 7.680000e+02 : f32
    %5 = vector.broadcast %cst_4 : f32 to vector<16x1xf32>
    %6 = arith.divf %4, %5 : vector<16x1xf32>
    %7 = vector.broadcast %6 : vector<16x1xf32> to vector<16x768xf32>
    %8 = arith.subf %2, %7 : vector<16x768xf32>
    %9 = arith.mulf %8, %8 : vector<16x768xf32>
    %cst_5 = arith.constant dense<0.000000e+00> : vector<16xf32>
    %10 = vector.multi_reduction <add>, %9, %cst_5 [1] : vector<16x768xf32> to vector<16xf32>
    %11 = vector.shape_cast %10 : vector<16xf32> to vector<16x1xf32>
    %cst_6 = arith.constant 7.680000e+02 : f32
    %12 = vector.broadcast %cst_6 : f32 to vector<16x1xf32>
    %13 = arith.divf %11, %12 : vector<16x1xf32>
    %14 = vector.broadcast %6 : vector<16x1xf32> to vector<16x768xf32>
    %15 = arith.subf %2, %14 : vector<16x768xf32>
    %cst_7 = arith.constant 9.99999974E-6 : f32
    %16 = vector.broadcast %cst_7 : f32 to vector<16x1xf32>
    %17 = arith.addf %13, %16 : vector<16x1xf32>
    %18 = math.rsqrt %17 : vector<16x1xf32>
    %19 = vector.broadcast %18 : vector<16x1xf32> to vector<16x768xf32>
    %20 = arith.mulf %15, %19 : vector<16x768xf32>
    %c0_8 = arith.constant 0 : index
    %c0_9 = arith.constant 0 : index
    %21 = vector.load %arg3[%c0_8, %c0_9] : memref<1x768xf32, #tpu.memory_space<vmem>>, vector<1x768xf32>
    %22 = vector.broadcast %21 : vector<1x768xf32> to vector<16x768xf32>
    %23 = arith.mulf %20, %22 : vector<16x768xf32>
    %c0_10 = arith.constant 0 : index
    %c0_11 = arith.constant 0 : index
    %24 = vector.load %arg4[%c0_10, %c0_11] : memref<1x768xf32, #tpu.memory_space<vmem>>, vector<1x768xf32>
    %25 = vector.broadcast %24 : vector<1x768xf32> to vector<16x768xf32>
    %26 = arith.addf %23, %25 : vector<16x768xf32>
    %c0_12 = arith.constant 0 : index
    %c0_13 = arith.constant 0 : index
    %27 = vector.load %arg8[%c0_12, %c0_13] : memref<16x1xf32, #tpu.memory_space<vmem>>, vector<16x1xf32>
    %28 = vector.broadcast %27 : vector<16x1xf32> to vector<16x768xf32>
    %29 = arith.mulf %26, %28 : vector<16x768xf32>
    %c0_14 = arith.constant 0 : index
    %c0_15 = arith.constant 0 : index
    %30 = vector.load %arg5[%c0_14, %c0_15] : memref<16x768xbf16, #tpu.memory_space<vmem>>, vector<16x768xbf16>
    %31 = arith.extf %30 : vector<16x768xbf16> to vector<16x768xf32>
    %cst_16 = arith.constant dense<0.000000e+00> : vector<16xf32>
    %32 = vector.multi_reduction <add>, %31, %cst_16 [1] : vector<16x768xf32> to vector<16xf32>
    %33 = vector.shape_cast %32 : vector<16xf32> to vector<16x1xf32>
    %cst_17 = arith.constant 7.680000e+02 : f32
    %34 = vector.broadcast %cst_17 : f32 to vector<16x1xf32>
    %35 = arith.divf %33, %34 : vector<16x1xf32>
    %36 = vector.broadcast %35 : vector<16x1xf32> to vector<16x768xf32>
    %37 = arith.subf %31, %36 : vector<16x768xf32>
    %38 = arith.mulf %37, %37 : vector<16x768xf32>
    %cst_18 = arith.constant dense<0.000000e+00> : vector<16xf32>
    %39 = vector.multi_reduction <add>, %38, %cst_18 [1] : vector<16x768xf32> to vector<16xf32>
    %40 = vector.shape_cast %39 : vector<16xf32> to vector<16x1xf32>
    %cst_19 = arith.constant 7.680000e+02 : f32
    %41 = vector.broadcast %cst_19 : f32 to vector<16x1xf32>
    %42 = arith.divf %40, %41 : vector<16x1xf32>
    %43 = vector.broadcast %35 : vector<16x1xf32> to vector<16x768xf32>
    %44 = arith.subf %31, %43 : vector<16x768xf32>
    %cst_20 = arith.constant 9.99999974E-6 : f32
    %45 = vector.broadcast %cst_20 : f32 to vector<16x1xf32>
    %46 = arith.addf %42, %45 : vector<16x1xf32>
    %47 = math.rsqrt %46 : vector<16x1xf32>
    %48 = vector.broadcast %47 : vector<16x1xf32> to vector<16x768xf32>
    %49 = arith.mulf %44, %48 : vector<16x768xf32>
    %c0_21 = arith.constant 0 : index
    %c0_22 = arith.constant 0 : index
    %50 = vector.load %arg6[%c0_21, %c0_22] : memref<1x768xf32, #tpu.memory_space<vmem>>, vector<1x768xf32>
    %51 = vector.broadcast %50 : vector<1x768xf32> to vector<16x768xf32>
    %52 = arith.mulf %49, %51 : vector<16x768xf32>
    %c0_23 = arith.constant 0 : index
    %c0_24 = arith.constant 0 : index
    %53 = vector.load %arg7[%c0_23, %c0_24] : memref<1x768xf32, #tpu.memory_space<vmem>>, vector<1x768xf32>
    %54 = vector.broadcast %53 : vector<1x768xf32> to vector<16x768xf32>
    %55 = arith.addf %52, %54 : vector<16x768xf32>
    %c0_25 = arith.constant 0 : index
    %c0_26 = arith.constant 0 : index
    %56 = vector.load %arg9[%c0_25, %c0_26] : memref<16x1xf32, #tpu.memory_space<vmem>>, vector<16x1xf32>
    %57 = vector.broadcast %56 : vector<16x1xf32> to vector<16x768xf32>
    %58 = arith.mulf %55, %57 : vector<16x768xf32>
    %59 = arith.addf %58, %29 : vector<16x768xf32>
    %60 = arith.truncf %59 : vector<16x768xf32> to vector<16x768xbf16>
    %c0_27 = arith.constant 0 : index
    %c0_28 = arith.constant 0 : index
    %61 = vector.load %arg10[%c0_27, %c0_28] : memref<16x768xbf16, #tpu.memory_space<vmem>>, vector<16x768xbf16>
    tpu.vector_store %arg10[%c0_27, %c0_28], %60 {strides = array<i32>} : memref<16x768xbf16, #tpu.memory_space<vmem>>, vector<16x768xbf16>,
    return
  }
  func.func @transform_0(%arg0: i32) -> (i32, i32) {
    %c0_i32 = arith.constant 0 : i32
    %c0_i32_0 = arith.constant 0 : i32
    return %arg0, %c0_i32 : i32, i32
  }
  func.func @transform_1(%arg0: i32) -> (i32, i32) {
    %c0_i32 = arith.constant 0 : i32
    %c0_i32_0 = arith.constant 0 : i32
    %c0_i32_1 = arith.constant 0 : i32
    return %c0_i32, %c0_i32_0 : i32, i32
  }
  func.func @transform_2(%arg0: i32) -> (i32, i32) {
    %c0_i32 = arith.constant 0 : i32
    %c0_i32_0 = arith.constant 0 : i32
    %c0_i32_1 = arith.constant 0 : i32
    return %c0_i32, %c0_i32_0 : i32, i32
  }
  func.func @transform_3(%arg0: i32) -> (i32, i32) {
    %c0_i32 = arith.constant 0 : i32
    %c0_i32_0 = arith.constant 0 : i32
    %c0_i32_1 = arith.constant 0 : i32
    return %c0_i32, %c0_i32_0 : i32, i32
  }
  func.func @transform_4(%arg0: i32) -> (i32, i32) {
    %c0_i32 = arith.constant 0 : i32
    %c0_i32_0 = arith.constant 0 : i32
    return %arg0, %c0_i32 : i32, i32
  }
  func.func @transform_5(%arg0: i32) -> (i32, i32) {
    %c0_i32 = arith.constant 0 : i32
    %c0_i32_0 = arith.constant 0 : i32
    %c0_i32_1 = arith.constant 0 : i32
    return %c0_i32, %c0_i32_0 : i32, i32
  }
  func.func @transform_6(%arg0: i32) -> (i32, i32) {
    %c0_i32 = arith.constant 0 : i32
    %c0_i32_0 = arith.constant 0 : i32
    %c0_i32_1 = arith.constant 0 : i32
    return %c0_i32, %c0_i32_0 : i32, i32
  }
  func.func @transform_7(%arg0: i32) -> (i32, i32) {
    %c0_i32 = arith.constant 0 : i32
    %c0_i32_0 = arith.constant 0 : i32
    return %arg0, %c0_i32 : i32, i32
  }
  func.func @transform_8(%arg0: i32) -> (i32, i32) {
    %c0_i32 = arith.constant 0 : i32
    %c0_i32_0 = arith.constant 0 : i32
    return %arg0, %c0_i32 : i32, i32
  }
  func.func @transform_9(%arg0: i32) -> (i32, i32) {
    %c0_i32 = arith.constant 0 : i32
    %c0_i32_0 = arith.constant 0 : i32
    return %arg0, %c0_i32 : i32, i32
  }
}

module attributes {stable_mosaic.version = 11 : i64} {
  func.func @lse_kernel(%arg0: i32, %arg1: i32, %arg2: memref<16x768xbf16, #tpu.memory_space<vmem>>, %arg3: memref<768x2048xbf16, #tpu.memory_space<vmem>>, %arg4: memref<1x2048xf32, #tpu.memory_space<vmem>>, %arg5: memref<16x1xf32, #tpu.memory_space<vmem>>, %arg6: memref<16x1xf32, #tpu.memory_space<vmem>>, %arg7: memref<16x1xf32, #tpu.memory_space<vmem>>) attributes {dimension_semantics = [#tpu.dimension_semantics<parallel>, #tpu.dimension_semantics<arbitrary>], iteration_bounds = array<i64: 1, 8>, scalar_prefetch = 0 : i64, scratch_operands = 2 : i64, tpu.core_type = #tpu.core_type<tc>, window_params = [{transform_indices = @transform_0, window_bounds = array<i64: 16, 768>}, {transform_indices = @transform_1, window_bounds = array<i64: 768, 2048>}, {transform_indices = @transform_2, window_bounds = array<i64: 1, 2048>}, {transform_indices = @transform_3, window_bounds = array<i64: 16, 1>}]} {
    %c0_i32 = arith.constant 0 : i32
    %0 = arith.cmpi eq, %arg1, %c0_i32 : i32
    %1 = arith.extui %0 : i1 to i32
    %c0_i32_0 = arith.constant 0 : i32
    %2 = arith.cmpi ne, %1, %c0_i32_0 : i32
    scf.if %2 {
      %cst_19 = arith.constant 0xFF800000 : f32
      %29 = vector.broadcast %cst_19 : f32 to vector<16x1xf32>
      %c0_20 = arith.constant 0 : index
      %c0_21 = arith.constant 0 : index
      %30 = vector.load %arg6[%c0_20, %c0_21] : memref<16x1xf32, #tpu.memory_space<vmem>>, vector<16x1xf32>
      tpu.vector_store %arg6[%c0_20, %c0_21], %29 {strides = array<i32>} : memref<16x1xf32, #tpu.memory_space<vmem>>, vector<16x1xf32>,
      %cst_22 = arith.constant 0.000000e+00 : f32
      %31 = vector.broadcast %cst_22 : f32 to vector<16x1xf32>
      %c0_23 = arith.constant 0 : index
      %c0_24 = arith.constant 0 : index
      %32 = vector.load %arg7[%c0_23, %c0_24] : memref<16x1xf32, #tpu.memory_space<vmem>>, vector<16x1xf32>
      tpu.vector_store %arg7[%c0_23, %c0_24], %31 {strides = array<i32>} : memref<16x1xf32, #tpu.memory_space<vmem>>, vector<16x1xf32>,
    } else {
    }
    %c0 = arith.constant 0 : index
    %c0_1 = arith.constant 0 : index
    %3 = vector.load %arg2[%c0, %c0_1] : memref<16x768xbf16, #tpu.memory_space<vmem>>, vector<16x768xbf16>
    %c0_2 = arith.constant 0 : index
    %c0_3 = arith.constant 0 : index
    %4 = vector.load %arg3[%c0_2, %c0_3] : memref<768x2048xbf16, #tpu.memory_space<vmem>>, vector<768x2048xbf16>
    %cst = arith.constant dense<0.000000e+00> : vector<16x2048xf32>
    %5 = tpu.matmul %3, %4, %cst {dimension_numbers = #tpu.dot_dimension_numbers<[1], [0], [0], [1], [0, 0, 1, 1], [], []>} : vector<16x768xbf16>, vector<768x2048xbf16>, vector<16x2048xf32> -> vector<16x2048xf32>
    %c0_4 = arith.constant 0 : index
    %c0_5 = arith.constant 0 : index
    %6 = vector.load %arg4[%c0_4, %c0_5] : memref<1x2048xf32, #tpu.memory_space<vmem>>, vector<1x2048xf32>
    %7 = vector.broadcast %6 : vector<1x2048xf32> to vector<16x2048xf32>
    %8 = arith.addf %5, %7 : vector<16x2048xf32>
    %c0_6 = arith.constant 0 : index
    %c0_7 = arith.constant 0 : index
    %9 = vector.load %arg6[%c0_6, %c0_7] : memref<16x1xf32, #tpu.memory_space<vmem>>, vector<16x1xf32>
    %cst_8 = arith.constant dense<0xFF800000> : vector<16xf32>
    %10 = vector.multi_reduction <maximumf>, %8, %cst_8 [1] : vector<16x2048xf32> to vector<16xf32>
    %11 = vector.shape_cast %10 : vector<16xf32> to vector<16x1xf32>
    %12 = arith.maximumf %9, %11 : vector<16x1xf32>
    %c0_9 = arith.constant 0 : index
    %c0_10 = arith.constant 0 : index
    %13 = vector.load %arg7[%c0_9, %c0_10] : memref<16x1xf32, #tpu.memory_space<vmem>>, vector<16x1xf32>
    %c0_11 = arith.constant 0 : index
    %c0_12 = arith.constant 0 : index
    %14 = vector.load %arg6[%c0_11, %c0_12] : memref<16x1xf32, #tpu.memory_space<vmem>>, vector<16x1xf32>
    %15 = arith.subf %14, %12 : vector<16x1xf32>
    %16 = math.exp %15 : vector<16x1xf32>
    %17 = arith.mulf %13, %16 : vector<16x1xf32>
    %18 = vector.broadcast %12 : vector<16x1xf32> to vector<16x2048xf32>
    %19 = arith.subf %8, %18 : vector<16x2048xf32>
    %20 = math.exp %19 : vector<16x2048xf32>
    %cst_13 = arith.constant dense<0.000000e+00> : vector<16xf32>
    %21 = vector.multi_reduction <add>, %20, %cst_13 [1] : vector<16x2048xf32> to vector<16xf32>
    %22 = vector.shape_cast %21 : vector<16xf32> to vector<16x1xf32>
    %23 = arith.addf %17, %22 : vector<16x1xf32>
    %c0_14 = arith.constant 0 : index
    %c0_15 = arith.constant 0 : index
    %24 = vector.load %arg7[%c0_14, %c0_15] : memref<16x1xf32, #tpu.memory_space<vmem>>, vector<16x1xf32>
    tpu.vector_store %arg7[%c0_14, %c0_15], %23 {strides = array<i32>} : memref<16x1xf32, #tpu.memory_space<vmem>>, vector<16x1xf32>,
    %c0_16 = arith.constant 0 : index
    %c0_17 = arith.constant 0 : index
    %25 = vector.load %arg6[%c0_16, %c0_17] : memref<16x1xf32, #tpu.memory_space<vmem>>, vector<16x1xf32>
    tpu.vector_store %arg6[%c0_16, %c0_17], %12 {strides = array<i32>} : memref<16x1xf32, #tpu.memory_space<vmem>>, vector<16x1xf32>,
    %c7_i32 = arith.constant 7 : i32
    %26 = arith.cmpi eq, %arg1, %c7_i32 : i32
    %27 = arith.extui %26 : i1 to i32
    %c0_i32_18 = arith.constant 0 : i32
    %28 = arith.cmpi ne, %27, %c0_i32_18 : i32
    scf.if %28 {
      %c0_19 = arith.constant 0 : index
      %c0_20 = arith.constant 0 : index
      %29 = vector.load %arg6[%c0_19, %c0_20] : memref<16x1xf32, #tpu.memory_space<vmem>>, vector<16x1xf32>
      %c0_21 = arith.constant 0 : index
      %c0_22 = arith.constant 0 : index
      %30 = vector.load %arg7[%c0_21, %c0_22] : memref<16x1xf32, #tpu.memory_space<vmem>>, vector<16x1xf32>
      %31 = math.log %30 : vector<16x1xf32>
      %32 = arith.addf %29, %31 : vector<16x1xf32>
      %c0_23 = arith.constant 0 : index
      %c0_24 = arith.constant 0 : index
      %33 = vector.load %arg5[%c0_23, %c0_24] : memref<16x1xf32, #tpu.memory_space<vmem>>, vector<16x1xf32>
      tpu.vector_store %arg5[%c0_23, %c0_24], %32 {strides = array<i32>} : memref<16x1xf32, #tpu.memory_space<vmem>>, vector<16x1xf32>,
    } else {
    }
    return
  }
  func.func @transform_0(%arg0: i32, %arg1: i32) -> (i32, i32) {
    %c0_i32 = arith.constant 0 : i32
    %c0_i32_0 = arith.constant 0 : i32
    return %arg0, %c0_i32 : i32, i32
  }
  func.func @transform_1(%arg0: i32, %arg1: i32) -> (i32, i32) {
    %c0_i32 = arith.constant 0 : i32
    %c0_i32_0 = arith.constant 0 : i32
    return %c0_i32, %arg1 : i32, i32
  }
  func.func @transform_2(%arg0: i32, %arg1: i32) -> (i32, i32) {
    %c0_i32 = arith.constant 0 : i32
    %c0_i32_0 = arith.constant 0 : i32
    return %c0_i32, %arg1 : i32, i32
  }
  func.func @transform_3(%arg0: i32, %arg1: i32) -> (i32, i32) {
    %c0_i32 = arith.constant 0 : i32
    %c0_i32_0 = arith.constant 0 : i32
    return %arg0, %c0_i32 : i32, i32
  }
}

</mosaic_0001>

<bundles_post_ra>
// kernel: gpt4rec_forward.2
= control target key start
LH: loop header
LB: loop body
LE: loop exit
PB: predicated region body
PF: predicated region fallthrough
CT: control target
= control target key end

     0   :  { %14 = vsyncpa [#allocation3], 0  ;;  %s2084_s0 = inlined_call_operand.vmem [shape: bf16[16,256], index: 0, kind: input, shape index: {}]   ;;  %s2085_s1 = inlined_call_operand.hbm [shape: bf16[256,768], index: 1, kind: input, shape index: {}]   ;;  %s2086_s2 = inlined_call_operand.hbm [shape: f32[1,768], index: 2, kind: input, shape index: {}]   ;;  %s2087_s3 = inlined_call_operand.hbm [shape: f32[1,768], index: 3, kind: input, shape index: {}]   ;;  %s2088_s4 = inlined_call_operand.vmem [shape: bf16[16,768], index: 4, kind: input, shape index: {}]   ;;  %s2089_s5 = inlined_call_operand.hbm [shape: f32[1,768], index: 5, kind: input, shape index: {}]   ;;  %s2090_s6 = inlined_call_operand.hbm [shape: f32[1,768], index: 6, kind: input, shape index: {}]   ;;  %s2091_s7 = inlined_call_operand.vmem [shape: f32[16,1], index: 7, kind: input, shape index: {}]   ;;  %s2092_s8 = inlined_call_operand.vmem [shape: f32[16,1], index: 8, kind: input, shape index: {}]   ;;  %s2093_s9 = inlined_call_operand.vmem [shape: bf16[16,768], index: 9, kind: output, shape index: {}]  }
   0x1   :  { %15 = vsyncpa [#allocation5], 0 }
   0x2   :  { %16 = vsyncpa [#allocation8], 0  ;;  %s1648_s30 = smov [#allocation4]   ;;  %s1649_s11 = smov [#allocation7]  }
   0x3   :  { %s37_s10 = sshll.u32 %s1648_s30, 4  ;;  %s59_s12 = sshll.u32 %s1649_s11, 4  ;;  %s38_s10 = int_to_ptr.vmem [resolvable:$true] %s37_s10  ;;  %s60_s12 = int_to_ptr.vmem [resolvable:$true] %s59_s12 }
   0x4   :  { %s1532_s15 = scalar_lea.hbm %s2086_s2, 96 }
   0x5   :  { %p1533_p0 = scmp.ne.s32.totalorder %s2086_s2, %s1532_s15  ;;  %p1536_p1 = scmp.lt.u32.totalorder %s1532_s15, %s2086_s2 }
   0x7   :  { %p1538_p2 = pnand %p1536_p1, %p1533_p0 }
   0x9   :  { %1541 = shalt.err (!%p1538_p2)
}
   0xa   :  { %s1542_s20 = scalar_lea.vmem %s38_s10, 96  ;;  %p1547_p4 = scmp.lt.s32.totalorder %s38_s10, %s38_s10 }
   0xb   :  { %p1543_p3 = scmp.ne.s32.totalorder %s38_s10, %s1542_s20  ;;  %p1548_p5 = scmp.lt.s32.totalorder %s1542_s20, %s1542_s20 }
   0xd   :  { %p1549_p6 = por %p1548_p5, %p1547_p4 }
   0xf   :  { %p1550_p7 = pnand %p1549_p6, %p1543_p3 }
  0x11   :  { %1553 = shalt.err (!%p1550_p7)
}
  0x12   :  { %40 = dma.hbm_to_vmem [thread:$0]  %s2086_s2, 96, %s38_s10, [#allocation5]  }
  0x13   :  { %s1554_s25 = scalar_lea.hbm %s2089_s5, 96 }
  0x14   :  { %p1555_p8 = scmp.ne.s32.totalorder %s2089_s5, %s1554_s25  ;;  %p1558_p9 = scmp.lt.u32.totalorder %s1554_s25, %s2089_s5 }
  0x16   :  { %p1560_p10 = pnand %p1558_p9, %p1555_p8 }
  0x18   :  { %1563 = shalt.err (!%p1560_p10)
}
  0x19   :  { %s1564_s30 = scalar_lea.vmem %s60_s12, 96  ;;  %p1569_p12 = scmp.lt.s32.totalorder %s60_s12, %s60_s12 }
  0x1a   :  { %p1565_p11 = scmp.ne.s32.totalorder %s60_s12, %s1564_s30  ;;  %p1570_p13 = scmp.lt.s32.totalorder %s1564_s30, %s1564_s30 }
  0x1c   :  { %p1571_p0 = por %p1570_p13, %p1569_p12 }
  0x1e   :  { %p1572_p1 = pnand %p1571_p0, %p1565_p11 }
  0x20   :  { %1575 = shalt.err (!%p1572_p1)
}
  0x21   :  { %62 = dma.hbm_to_vmem [thread:$0]  %s2089_s5, 96, %s60_s12, [#allocation8]  }
  0x22   :  { %s1650_s11 = smov [#allocation2]   ;;  %s1576_s16 = scalar_lea.hbm %s2085_s1, 12288 }
  0x23   :  { %s24_s13 = sshll.u32 %s1650_s11, 4  ;;  %p1577_p2 = scmp.ne.s32.totalorder %s2085_s1, %s1576_s16  ;;  %s25_s13 = int_to_ptr.vmem [resolvable:$true] %s24_s13 }
  0x24   :  { %p1580_p3 = scmp.lt.u32.totalorder %s1576_s16, %s2085_s1 }
  0x26   :  { %p1582_p4 = pnand %p1580_p3, %p1577_p2 }
  0x28   :  { %1585 = shalt.err (!%p1582_p4)
}
  0x29   :  { %s1586_s21 = scalar_lea.vmem %s25_s13, 12288  ;;  %p1591_p6 = scmp.lt.s32.totalorder %s25_s13, %s25_s13 }
  0x2a   :  { %p1587_p5 = scmp.ne.s32.totalorder %s25_s13, %s1586_s21  ;;  %p1592_p7 = scmp.lt.s32.totalorder %s1586_s21, %s1586_s21 }
  0x2c   :  { %p1593_p8 = por %p1592_p7, %p1591_p6 }
  0x2e   :  { %p1594_p9 = pnand %p1593_p8, %p1587_p5 }
  0x30   :  { %1597 = shalt.err (!%p1594_p9)
}
  0x31   :  { %s1651_s5 = smov 384   ;;  %s1652_s12 = smov 24  }
  0x32   :  { %30 = dma.hbm_to_vmem [thread:$0]  %s2085_s1, 12288, %s25_s13, [#allocation3], %s1651_s5, %s1651_s5, %s1652_s12  }
  0x33   :  { %s1653_s24 = smov [#allocation6]   ;;  %s1654_s26 = smov [#allocation9]  }
  0x34   :  { %s47_s25 = sshll.u32 %s1653_s24, 4  ;;  %s69_s27 = sshll.u32 %s1654_s26, 4  ;;  %s48_s25 = int_to_ptr.vmem [resolvable:$true] %s47_s25  ;;  %s70_s27 = int_to_ptr.vmem [resolvable:$true] %s69_s27 }
  0x35   :  { %s1598_s30 = scalar_lea.hbm %s2087_s3, 96 }
  0x36   :  { %p1599_p10 = scmp.ne.s32.totalorder %s2087_s3, %s1598_s30  ;;  %p1602_p11 = scmp.lt.u32.totalorder %s1598_s30, %s2087_s3 }
  0x38   :  { %p1604_p12 = pnand %p1602_p11, %p1599_p10 }
  0x3a   :  { %1607 = shalt.err (!%p1604_p12)
}
  0x3b   :  { %s1608_s1 = scalar_lea.vmem %s48_s25, 96  ;;  %p1613_p0 = scmp.lt.s32.totalorder %s48_s25, %s48_s25 }
  0x3c   :  { %p1609_p13 = scmp.ne.s32.totalorder %s48_s25, %s1608_s1  ;;  %p1614_p1 = scmp.lt.s32.totalorder %s1608_s1, %s1608_s1 }
  0x3e   :  { %p1615_p2 = por %p1614_p1, %p1613_p0 }
  0x40   :  { %p1616_p3 = pnand %p1615_p2, %p1609_p13 }
  0x42   :  { %1619 = shalt.err (!%p1616_p3)
}
  0x43   :  { %50 = dma.hbm_to_vmem [thread:$0]  %s2087_s3, 96, %s48_s25, [#allocation5]  }
  0x44   :  { %s1620_s18 = scalar_lea.hbm %s2090_s6, 96 }
  0x45   :  { %p1621_p4 = scmp.ne.s32.totalorder %s2090_s6, %s1620_s18  ;;  %p1624_p5 = scmp.lt.u32.totalorder %s1620_s18, %s2090_s6 }
  0x47   :  { %p1626_p6 = pnand %p1624_p5, %p1621_p4 }
  0x49   :  { %1629 = shalt.err (!%p1626_p6)
}
  0x4a   :  { %s1630_s12 = scalar_lea.vmem %s70_s27, 96  ;;  %p1635_p8 = scmp.lt.s32.totalorder %s70_s27, %s70_s27 }
  0x4b   :  { %p1631_p7 = scmp.ne.s32.totalorder %s70_s27, %s1630_s12  ;;  %p1636_p9 = scmp.lt.s32.totalorder %s1630_s12, %s1630_s12 }
  0x4d   :  { %p1637_p10 = por %p1636_p9, %p1635_p8 }
  0x4f   :  { %p1638_p11 = pnand %p1637_p10, %p1631_p7 }
  0x51   :  { %1641 = shalt.err (!%p1638_p11)
}
  0x52   :  { %72 = dma.hbm_to_vmem [thread:$0]  %s2090_s6, 96, %s70_s27, [#allocation8]  }
  0x53   :  { %1642 = dma.done.wait [#allocation3], 12288  }
  0x54   :  { %1643 = vsyncadd [#allocation3], 4294955008 }
  0x55   :  { %1644 = dma.done.wait [#allocation5], 192  }
  0x56   :  { %1645 = vsyncadd [#allocation5], 4294967104 }
  0x57   :  { %1646 = dma.done.wait [#allocation8], 192  }
  0x58   :  { %1647 = vsyncadd [#allocation8], 4294967104  ;;  %v1377_v0 = vld [vmem:[#allocation2 + $0x4] ss:$24 sps:$4 sm:$0xff]   ;;  %v1379_v1 = vld [vmem:[#allocation2] ss:$24 sps:$4 sm:$0xff]  }
  0x59   :  { %680 = vmatprep.subr.bf16.mxu0 %v1377_v0  ;;  %v1380_v2 = vld [vmem:[#allocation2 + $0xc] ss:$24 sps:$4 sm:$0xff]   ;;  %v1384_v4 = vld [vmem:[#allocation2 + $0x8] ss:$24 sps:$4 sm:$0xff]   ;;  %v1386_v6 = vld [vmem:[#allocation2 + $0x3c] ss:$24 sps:$4 sm:$0xff]  }
  0x5a   :  { %681 = vmatpush1.bf16.msra.mxu0 %v1379_v1  ;;  %v1382_v3 = vld [vmem:[#allocation2 + $0x34] ss:$24 sps:$4 sm:$0xff]   ;;  %v1385_v5 = vld [vmem:[#allocation2 + $0x30] ss:$24 sps:$4 sm:$0xff]   ;;  %723 = vmatprep.subr.bf16.mxu1 %v1380_v2  ;;  %v1388_v7 = vld [vmem:[#allocation2 + $0x64] ss:$24 sps:$4 sm:$0xff]  }
  0x5b   :  { %682 = vmatprep.subr.bf16.mxu0 %v1382_v3  ;;  %724 = vmatpush1.bf16.msra.mxu1 %v1384_v4  ;;  %v1390_v8 = vld [vmem:[#allocation2 + $0x38] ss:$24 sps:$4 sm:$0xff]   ;;  %v1392_v10 = vld [vmem:[#allocation2 + $0x6c] ss:$24 sps:$4 sm:$0xff]   ;;  %v1396_v12 = vld [vmem:[#allocation2 + $0x68] ss:$24 sps:$4 sm:$0xff]  }
  0x5c   :  { %725 = vmatprep.subr.bf16.mxu1 %v1386_v6  ;;  %v1391_v9 = vld [vmem:[#allocation2 + $0x60] ss:$24 sps:$4 sm:$0xff]   ;;  %v1394_v11 = vld [vmem:[#allocation2 + $0x94] ss:$24 sps:$4 sm:$0xff]   ;;  %v1397_v14 = vld [vmem:[#allocation2 + $0x90] ss:$24 sps:$4 sm:$0xff]  }
  0x5d   :  { %v1398_v13 = vld [vmem:[#allocation2 + $0x9c] ss:$24 sps:$4 sm:$0xff]   ;;  %v1402_v16 = vld [vmem:[#allocation2 + $0x98] ss:$24 sps:$4 sm:$0xff]   ;;  %v1404_v17 = vld [vmem:[#allocation2 + $0xcc] ss:$24 sps:$4 sm:$0xff]  }
  0x5e   :  { %683 = vmatpush1.bf16.msra.mxu0 %v1385_v5  ;;  %v1400_v15 = vld [vmem:[#allocation2 + $0xc4] ss:$24 sps:$4 sm:$0xff]   ;;  %v1403_v18 = vld [vmem:[#allocation2 + $0xc0] ss:$24 sps:$4 sm:$0xff]   ;;  %v1406_v19 = vld [vmem:[#allocation2 + $0xf4] ss:$24 sps:$4 sm:$0xff]  }
  0x5f   :  { %684 = vmatprep.subr.bf16.mxu0 %v1388_v7  ;;  %726 = vmatpush1.bf16.msra.mxu1 %v1390_v8  ;;  %v1408_v20 = vld [vmem:[#allocation2 + $0xc8] ss:$24 sps:$4 sm:$0xff]   ;;  %v1410_v21 = vld [vmem:[#allocation2 + $0xfc] ss:$24 sps:$4 sm:$0xff]   ;;  %v1414_v24 = vld [vmem:[#allocation2 + $0xf8] ss:$24 sps:$4 sm:$0xff]  }
  0x60   :  { %727 = vmatprep.subr.bf16.mxu1 %v1392_v10  ;;  %v1409_v22 = vld [vmem:[#allocation2 + $0xf0] ss:$24 sps:$4 sm:$0xff]   ;;  %v1412_v23 = vld [vmem:[#allocation2 + $0x124] ss:$24 sps:$4 sm:$0xff]   ;;  %v1415_v26 = vld [vmem:[#allocation2 + $0x120] ss:$24 sps:$4 sm:$0xff]  }
  0x61   :  { %v1416_v25 = vld [vmem:[#allocation2 + $0x12c] ss:$24 sps:$4 sm:$0xff]   ;;  %v1420_v28 = vld [vmem:[#allocation2 + $0x128] ss:$24 sps:$4 sm:$0xff]   ;;  %v1422_v29 = vld [vmem:[#allocation2 + $0x15c] ss:$24 sps:$4 sm:$0xff]  }
  0x62   :  { %685 = vmatpush1.bf16.msra.mxu0 %v1391_v9  ;;  %v1418_v27 = vld [vmem:[#allocation2 + $0x154] ss:$24 sps:$4 sm:$0xff]   ;;  %v1421_v30 = vld [vmem:[#allocation2 + $0x150] ss:$24 sps:$4 sm:$0xff]   ;;  %v1424_v31 = vld [vmem:[#allocation2 + $0x184] ss:$24 sps:$4 sm:$0xff]  }
  0x63   :  { %686 = vmatprep.subr.bf16.mxu0 %v1394_v11  ;;  %728 = vmatpush1.bf16.msra.mxu1 %v1396_v12  ;;  %v1426_v32 = vld [vmem:[#allocation2 + $0x158] ss:$24 sps:$4 sm:$0xff]   ;;  %v1428_v33 = vld [vmem:[#allocation2 + $0x18c] ss:$24 sps:$4 sm:$0xff]   ;;  %v1432_v36 = vld [vmem:[#allocation2 + $0x188] ss:$24 sps:$4 sm:$0xff]  }
  0x64   :  { %729 = vmatprep.subr.bf16.mxu1 %v1398_v13  ;;  %v1427_v34 = vld [vmem:[#allocation2 + $0x180] ss:$24 sps:$4 sm:$0xff]   ;;  %v1430_v35 = vld [vmem:[#allocation2 + $0x1b4] ss:$24 sps:$4 sm:$0xff]   ;;  %v1433_v38 = vld [vmem:[#allocation2 + $0x1b0] ss:$24 sps:$4 sm:$0xff]  }
  0x65   :  { %v1434_v37 = vld [vmem:[#allocation2 + $0x1bc] ss:$24 sps:$4 sm:$0xff]   ;;  %v1438_v40 = vld [vmem:[#allocation2 + $0x1b8] ss:$24 sps:$4 sm:$0xff]   ;;  %v1440_v41 = vld [vmem:[#allocation2 + $0x1ec] ss:$24 sps:$4 sm:$0xff]  }
  0x66   :  { %687 = vmatpush1.bf16.msra.mxu0 %v1397_v14  ;;  %v1436_v39 = vld [vmem:[#allocation2 + $0x1e4] ss:$24 sps:$4 sm:$0xff]   ;;  %v1439_v42 = vld [vmem:[#allocation2 + $0x1e0] ss:$24 sps:$4 sm:$0xff]   ;;  %v1442_v43 = vld [vmem:[#allocation2 + $0x214] ss:$24 sps:$4 sm:$0xff]  }
  0x67   :  { %688 = vmatprep.subr.bf16.mxu0 %v1400_v15  ;;  %730 = vmatpush1.bf16.msra.mxu1 %v1402_v16  ;;  %v1444_v44 = vld [vmem:[#allocation2 + $0x1e8] ss:$24 sps:$4 sm:$0xff]   ;;  %v1446_v45 = vld [vmem:[#allocation2 + $0x21c] ss:$24 sps:$4 sm:$0xff]   ;;  %v1769_v46 = vld [vmem:[%s2084_s0 + $0x4] ss:$8 sps:$4 sm:$0xff]  }
  0x68   :  { %731 = vmatprep.subr.bf16.mxu1 %v1404_v17  ;;  %v1445_v47 = vld [vmem:[#allocation2 + $0x210] ss:$24 sps:$4 sm:$0xff]   ;;  %v1448_v48 = vld [vmem:[#allocation2 + $0x244] ss:$24 sps:$4 sm:$0xff]   ;;  %712 = vmatprep.mubr.bf16.mxu0 %v1769_v46  ;;  %v1451_v51 = vld [vmem:[#allocation2 + $0x240] ss:$24 sps:$4 sm:$0xff]  }
  0x69   :  { %v1450_v49 = vld [vmem:[#allocation2 + $0x218] ss:$24 sps:$4 sm:$0xff]   ;;  %755 = vmatprep.mubr.bf16.mxu1 %v1769_v46  ;;  %v1452_v50 = vld [vmem:[#allocation2 + $0x24c] ss:$24 sps:$4 sm:$0xff]   ;;  %v1456_v53 = vld [vmem:[#allocation2 + $0x248] ss:$24 sps:$4 sm:$0xff]  }
  0x6a   :  { %689 = vmatpush1.bf16.msra.mxu0 %v1403_v18  ;;  %v1454_v52 = vld [vmem:[#allocation2 + $0x274] ss:$24 sps:$4 sm:$0xff]   ;;  %v1457_v55 = vld [vmem:[#allocation2 + $0x270] ss:$24 sps:$4 sm:$0xff]   ;;  %v1460_v56 = vld [vmem:[#allocation2 + $0x2a4] ss:$24 sps:$4 sm:$0xff]  }
  0x6b   :  { %690 = vmatprep.subr.bf16.mxu0 %v1406_v19  ;;  %732 = vmatpush1.bf16.msra.mxu1 %v1408_v20  ;;  %v1458_v54 = vld [vmem:[#allocation2 + $0x27c] ss:$24 sps:$4 sm:$0xff]   ;;  %v1462_v57 = vld [vmem:[#allocation2 + $0x278] ss:$24 sps:$4 sm:$0xff]   ;;  %v1464_v58 = vld [vmem:[#allocation2 + $0x2ac] ss:$24 sps:$4 sm:$0xff]  }
  0x6c   :  { %733 = vmatprep.subr.bf16.mxu1 %v1410_v21  ;;  %v1463_v59 = vld [vmem:[#allocation2 + $0x2a0] ss:$24 sps:$4 sm:$0xff]   ;;  %v1466_v60 = vld [vmem:[#allocation2 + $0x2d4] ss:$24 sps:$4 sm:$0xff]   ;;  %v1469_v63 = vld [vmem:[#allocation2 + $0x2d0] ss:$24 sps:$4 sm:$0xff]  }
  0x6d   :  { %v1468_v61 = vld [vmem:[#allocation2 + $0x2a8] ss:$24 sps:$4 sm:$0xff]   ;;  %v1472_v62 = vld [vmem:[#allocation2 + $0x2dc] ss:$24 sps:$4 sm:$0xff]   ;;  %v1475_v1 = vld [vmem:[#allocation2 + $0x2d8] ss:$24 sps:$4 sm:$0xff]  }
  0x6e   :  { %691 = vmatpush1.bf16.msra.mxu0 %v1409_v22  ;;  %v1478_v0 = vld [vmem:[#allocation2 + $0x14] ss:$24 sps:$4 sm:$0xff]   ;;  %v1776_v2 = vld [vmem:[%s2084_s0] ss:$8 sps:$4 sm:$0xff]   ;;  %v1481_v8 = vld [vmem:[#allocation2 + $0x44] ss:$24 sps:$4 sm:$0xff]  }
  0x6f   :  { %692 = vmatprep.subr.bf16.mxu0 %v1412_v23  ;;  %734 = vmatpush1.bf16.msra.mxu1 %v1414_v24  ;;  %v1781_v3 = vld [vmem:[%s2088_s4] sm:$0xff]  ;;  %v1476_v4 = vld [vmem:[#allocation2 + $0x10] ss:$24 sps:$4 sm:$0xff]   ;;  %v1804_v13 = vld [vmem:[%s2088_s4 + $0x18] sm:$0xff] }
  0x70   :  { %735 = vmatprep.subr.bf16.mxu1 %v1416_v25  ;;  %v1786_v5 = vld [vmem:[%s2088_s4 + $0x8] sm:$0xff]  ;;  %v1000_v6 = vunpack.c.l.bf16 %v1781_v3  ;;  %v1001_v7 = vunpack.c.h.bf16 %v1781_v3  ;;  %v1793_v9 = vld [vmem:[%s2088_s4 + $0x10] sm:$0xff]  ;;  %v1809_v14 = vld [vmem:[%s2088_s4 + $0x20] sm:$0xff]  ;;  %v1006_v15 = vunpack.c.l.bf16 %v1804_v13  ;;  %v1007_v16 = vunpack.c.h.bf16 %v1804_v13 }
  0x71   :  { %v1002_v10 = vunpack.c.l.bf16 %v1786_v5  ;;  %v1003_v11 = vunpack.c.h.bf16 %v1786_v5  ;;  %v1008_v17 = vunpack.c.l.bf16 %v1809_v14  ;;  %v1479_v18 = vld [vmem:[#allocation2 + $0x40] ss:$24 sps:$4 sm:$0xff]   ;;  %v1004_v19 = vunpack.c.l.bf16 %v1793_v9  ;;  %v1821_v21 = vld [vmem:[%s2088_s4 + $0x28] sm:$0xff] }
  0x72   :  { %693 = vmatpush1.bf16.msra.mxu0 %v1415_v26  ;;  %v1012_v12 = vadd.f32 %v1001_v7, %v1000_v6  ;;  %v1484_v22 = vld [vmem:[#allocation2 + $0x74] ss:$24 sps:$4 sm:$0xff]   ;;  %v1009_v23 = vunpack.c.h.bf16 %v1809_v14  ;;  %v1019_v24 = vadd.f32 %v1007_v16, %v1006_v15  ;;  %v1005_v25 = vunpack.c.h.bf16 %v1793_v9 }
  0x73   :  { %694 = vmatprep.subr.bf16.mxu0 %v1418_v27  ;;  %736 = vmatpush1.bf16.msra.mxu1 %v1420_v28  ;;  %v1010_v27 = vunpack.c.l.bf16 %v1821_v21 }
  0x74   :  { %737 = vmatprep.subr.bf16.mxu1 %v1422_v29  ;;  %v1013_v20 = vadd.f32 %v1012_v12, %v1002_v10  ;;  %v1020_v28 = vadd.f32 %v1019_v24, %v1008_v17  ;;  %v1482_v29 = vld [vmem:[#allocation2 + $0x70] ss:$24 sps:$4 sm:$0xff]  }
  0x76   :  { %695 = vmatpush1.bf16.msra.mxu0 %v1421_v30  ;;  %v1014_v26 = vadd.f32 %v1013_v20, %v1003_v11  ;;  %v1655_v20 = vmov 0  }
  0x77   :  { %696 = vmatprep.subr.bf16.mxu0 %v1424_v31  ;;  %738 = vmatpush1.bf16.msra.mxu1 %v1426_v32  ;;  %v1487_v31 = vld [vmem:[#allocation2 + $0xa4] ss:$24 sps:$4 sm:$0xff]   ;;  %v1011_v32 = vunpack.c.h.bf16 %v1821_v21  ;;  %v971_v21 = vld [vmem:[%s2091_s7 + $0x8] sm:$0xff] }
  0x78   :  { %739 = vmatprep.subr.bf16.mxu1 %v1428_v33  ;;  %v1015_v30 = vadd.f32 %v1014_v26, %v1004_v19  ;;  %v1021_v33 = vadd.f32 %v1020_v28, %v1009_v23  ;;  %1376 = vset.pattern.permute.xlu1 %v1655_v20 }
  0x79   :  { %1375 = vset.pattern.permute.xlu0 %v1655_v20 }
  0x7a   :  { %697 = vmatpush1.bf16.msra.mxu0 %v1427_v34  ;;  %v1016_v34 = vadd.f32 %v1015_v30, %v1005_v25 }
  0x7b   :  { %698 = vmatprep.subr.bf16.mxu0 %v1430_v35  ;;  %740 = vmatpush1.bf16.msra.mxu1 %v1432_v36  ;;  %v1022_v35 = vadd.f32 %v1021_v33, %v1010_v27  ;;  %v1485_v36 = vld [vmem:[#allocation2 + $0xa0] ss:$24 sps:$4 sm:$0xff]  }
  0x7c   :  { %741 = vmatprep.subr.bf16.mxu1 %v1434_v37  ;;  %1017 = vadd.xlane.f32.xlu1 %v1016_v34  ;;  %v1490_v37 = vld [vmem:[#allocation2 + $0xd4] ss:$24 sps:$4 sm:$0xff]  }
  0x7e   :  { %699 = vmatpush1.bf16.msra.mxu0 %v1433_v38  ;;  %v1023_v38 = vadd.f32 %v1022_v35, %v1011_v32 }
  0x7f   :  { %700 = vmatprep.subr.bf16.mxu0 %v1436_v39  ;;  %742 = vmatpush1.bf16.msra.mxu1 %v1438_v40  ;;  %v1488_v39 = vld [vmem:[#allocation2 + $0xd0] ss:$24 sps:$4 sm:$0xff]   ;;  %v1493_v40 = vld [vmem:[#allocation2 + $0x104] ss:$24 sps:$4 sm:$0xff]  }
  0x80   :  { %743 = vmatprep.subr.bf16.mxu1 %v1440_v41  ;;  %1024 = vadd.xlane.f32.xlu1 %v1023_v38  ;;  %v1491_v41 = vld [vmem:[#allocation2 + $0x100] ss:$24 sps:$4 sm:$0xff]  }
  0x82   :  { %701 = vmatpush1.bf16.msra.mxu0 %v1439_v42  ;;  %v1496_v42 = vld [vmem:[#allocation2 + $0x134] ss:$24 sps:$4 sm:$0xff]  }
  0x83   :  { %702 = vmatprep.subr.bf16.mxu0 %v1442_v43  ;;  %744 = vmatpush1.bf16.msra.mxu1 %v1444_v44  ;;  %v1494_v43 = vld [vmem:[#allocation2 + $0x130] ss:$24 sps:$4 sm:$0xff]   ;;  %v1499_v44 = vld [vmem:[#allocation2 + $0x164] ss:$24 sps:$4 sm:$0xff]  }
  0x84   :  { %745 = vmatprep.subr.bf16.mxu1 %v1446_v45  ;;  %v1497_v45 = vld [vmem:[#allocation2 + $0x160] ss:$24 sps:$4 sm:$0xff]  }
  0x86   :  { %703 = vmatpush1.bf16.msra.mxu0 %v1445_v47  ;;  %v1500_v47 = vld [vmem:[#allocation2 + $0x190] ss:$24 sps:$4 sm:$0xff]  }
  0x87   :  { %704 = vmatprep.subr.bf16.mxu0 %v1448_v48  ;;  %746 = vmatpush1.bf16.msra.mxu1 %v1450_v49  ;;  %v1505_v48 = vld [vmem:[#allocation2 + $0x1c4] ss:$24 sps:$4 sm:$0xff]   ;;  %v1503_v49 = vld [vmem:[#allocation2 + $0x1c0] ss:$24 sps:$4 sm:$0xff]  }
  0x88   :  { %747 = vmatprep.subr.bf16.mxu1 %v1452_v50  ;;  %v1508_v50 = vld [vmem:[#allocation2 + $0x1f4] ss:$24 sps:$4 sm:$0xff]  }
  0x8a   :  { %705 = vmatpush1.bf16.msra.mxu0 %v1451_v51  ;;  %v1506_v51 = vld [vmem:[#allocation2 + $0x1f0] ss:$24 sps:$4 sm:$0xff]  }
  0x8b   :  { %706 = vmatprep.subr.bf16.mxu0 %v1454_v52  ;;  %748 = vmatpush1.bf16.msra.mxu1 %v1456_v53  ;;  %v1511_v52 = vld [vmem:[#allocation2 + $0x224] ss:$24 sps:$4 sm:$0xff]   ;;  %v1509_v53 = vld [vmem:[#allocation2 + $0x220] ss:$24 sps:$4 sm:$0xff]  }
  0x8c   :  { %749 = vmatprep.subr.bf16.mxu1 %v1458_v54  ;;  %v1514_v54 = vld [vmem:[#allocation2 + $0x254] ss:$24 sps:$4 sm:$0xff]  }
  0x8e   :  { %707 = vmatpush1.bf16.msra.mxu0 %v1457_v55  ;;  %v1512_v55 = vld [vmem:[#allocation2 + $0x250] ss:$24 sps:$4 sm:$0xff]  }
  0x8f   :  { %708 = vmatprep.subr.bf16.mxu0 %v1460_v56  ;;  %750 = vmatpush1.bf16.msra.mxu1 %v1462_v57  ;;  %v1517_v56 = vld [vmem:[#allocation2 + $0x284] ss:$24 sps:$4 sm:$0xff]   ;;  %v1515_v57 = vld [vmem:[#allocation2 + $0x280] ss:$24 sps:$4 sm:$0xff]  }
  0x90   :  { %751 = vmatprep.subr.bf16.mxu1 %v1464_v58  ;;  %v1520_v58 = vld [vmem:[#allocation2 + $0x2b4] ss:$24 sps:$4 sm:$0xff]  }
  0x92   :  { %709 = vmatpush1.bf16.msra.mxu0 %v1463_v59  ;;  %v1518_v59 = vld [vmem:[#allocation2 + $0x2b0] ss:$24 sps:$4 sm:$0xff]  }
  0x93   :  { %710 = vmatprep.subr.bf16.mxu0 %v1466_v60  ;;  %752 = vmatpush1.bf16.msra.mxu1 %v1468_v61  ;;  %v1523_v60 = vld [vmem:[#allocation2 + $0x2e4] ss:$24 sps:$4 sm:$0xff]   ;;  %v1521_v61 = vld [vmem:[#allocation2 + $0x2e0] ss:$24 sps:$4 sm:$0xff]  }
  0x94   :  { %753 = vmatprep.subr.bf16.mxu1 %v1472_v62 }
  0x96   :  { %711 = vmatpush1.bf16.msra.mxu0 %v1469_v63 }
  0x97   :  { %766 = vmatprep.subr.bf16.mxu0 %v1478_v0  ;;  %754 = vmatpush1.bf16.msra.mxu1 %v1475_v1 }
  0x99   :  { %713 = vmatmul.mubr.bf16.vlgmr.msra.gmra.mrb[0].mxu0 %v1776_v2 }
  0x9a   :  { %767 = vmatpush1.bf16.msra.mxu0 %v1476_v4  ;;  %798 = vmatprep.mubr.bf16.mxu0 %v1769_v46  ;;  %v1502_v46 = vld [vmem:[#allocation2 + $0x194] ss:$24 sps:$4 sm:$0xff]  }
  0x9b   :  { %756 = vmatmul.mubr.bf16.vlgmr.msra.gmra.mrb[0].mxu1 %v1776_v2  ;;  %768 = vmatprep.subr.bf16.mxu0 %v1481_v8 }
  0x9e   :  { %769 = vmatpush1.bf16.msra.mxu0 %v1479_v18 }
  0x9f   :  { %770 = vmatprep.subr.bf16.mxu0 %v1484_v22 }
  0xa2   :  { %771 = vmatpush1.bf16.msra.mxu0 %v1482_v29  ;;  %v1172_v29 = vld [vmem:[%s2092_s8] sm:$0xff] }
  0xa3   :  { %772 = vmatprep.subr.bf16.mxu0 %v1487_v31 }
  0xa6   :  { %773 = vmatpush1.bf16.msra.mxu0 %v1485_v36 }
  0xa7   :  { %774 = vmatprep.subr.bf16.mxu0 %v1490_v37 }
  0xaa   :  { %775 = vmatpush1.bf16.msra.mxu0 %v1488_v39 }
  0xab   :  { %776 = vmatprep.subr.bf16.mxu0 %v1493_v40 }
  0xae   :  { %777 = vmatpush1.bf16.msra.mxu0 %v1491_v41 }
  0xaf   :  { %778 = vmatprep.subr.bf16.mxu0 %v1496_v42 }
  0xb2   :  { %779 = vmatpush1.bf16.msra.mxu0 %v1494_v43 }
  0xb3   :  { %780 = vmatprep.subr.bf16.mxu0 %v1499_v44 }
  0xb6   :  { %781 = vmatpush1.bf16.msra.mxu0 %v1497_v45 }
  0xb7   :  { %782 = vmatprep.subr.bf16.mxu0 %v1502_v46 }
  0xba   :  { %783 = vmatpush1.bf16.msra.mxu0 %v1500_v47 }
  0xbb   :  { %784 = vmatprep.subr.bf16.mxu0 %v1505_v48 }
  0xbe   :  { %785 = vmatpush1.bf16.msra.mxu0 %v1503_v49 }
  0xbf   :  { %786 = vmatprep.subr.bf16.mxu0 %v1508_v50 }
  0xc2   :  { %787 = vmatpush1.bf16.msra.mxu0 %v1506_v51 }
  0xc3   :  { %788 = vmatprep.subr.bf16.mxu0 %v1511_v52 }
  0xc6   :  { %789 = vmatpush1.bf16.msra.mxu0 %v1509_v53 }
  0xc7   :  { %790 = vmatprep.subr.bf16.mxu0 %v1514_v54 }
  0xca   :  { %791 = vmatpush1.bf16.msra.mxu0 %v1512_v55 }
  0xcb   :  { %792 = vmatprep.subr.bf16.mxu0 %v1517_v56 }
  0xce   :  { %793 = vmatpush1.bf16.msra.mxu0 %v1515_v57 }
  0xcf   :  { %794 = vmatprep.subr.bf16.mxu0 %v1520_v58 }
  0xd2   :  { %795 = vmatpush1.bf16.msra.mxu0 %v1518_v59 }
  0xd3   :  { %796 = vmatprep.subr.bf16.mxu0 %v1523_v60 }
  0xd6   :  { %797 = vmatpush1.bf16.msra.mxu0 %v1521_v61 }
  0xd9   :  { %799 = vmatmul.mubr.bf16.vlgmr.msra.gmra.mrb[4].mxu0 %v1776_v2 }
 0x109   :  { %v1018_v62 = vpop.xlane.xlu1 %1017 }
 0x10a   :  { %v1026_v44 = vmul.f32 0.0013020834, %v1018_v62 }
 0x10c   :  { %v1892_v45 = vsub.f32 %v1000_v6, %v1026_v44  ;;  %v1896_v46 = vsub.f32 %v1001_v7, %v1026_v44  ;;  %v1900_v47 = vsub.f32 %v1002_v10, %v1026_v44  ;;  %v1908_v50 = vsub.f32 %v1003_v11, %v1026_v44 }
 0x10d   :  { %v1025_v63 = vpop.xlane.xlu1 %1024  ;;  %v1914_v7 = vsub.f32 %v1004_v19, %v1026_v44  ;;  %v1920_v5 = vsub.f32 %v1005_v25, %v1026_v44 }
 0x10e   :  { %v1027_v0 = vmul.f32 0.0013020834, %v1025_v63  ;;  %v1040_v48 = vmul.f32 %v1892_v45, %v1892_v45  ;;  %v1041_v49 = vmul.f32 %v1896_v46, %v1896_v46  ;;  %v1042_v6 = vmul.f32 %v1900_v47, %v1900_v47 }
 0x10f   :  { %v1043_v10 = vmul.f32 %v1908_v50, %v1908_v50  ;;  %v1044_v11 = vmul.f32 %v1914_v7, %v1914_v7  ;;  %v1045_v60 = vmul.f32 %v1920_v5, %v1920_v5 }
 0x110   :  { %v1850_v1 = vsub.f32 %v1006_v15, %v1027_v0  ;;  %v1854_v4 = vsub.f32 %v1007_v16, %v1027_v0  ;;  %v1858_v8 = vsub.f32 %v1008_v17, %v1027_v0  ;;  %v1862_v12 = vsub.f32 %v1009_v23, %v1027_v0 }
 0x111   :  { %v1866_v2 = vsub.f32 %v1010_v27, %v1027_v0  ;;  %v1876_v17 = vsub.f32 %v1011_v32, %v1027_v0  ;;  %v1052_v3 = vadd.f32 %v1041_v49, %v1040_v48 }
 0x112   :  { %v1046_v15 = vmul.f32 %v1850_v1, %v1850_v1  ;;  %v1047_v13 = vmul.f32 %v1854_v4, %v1854_v4  ;;  %v1048_v16 = vmul.f32 %v1858_v8, %v1858_v8  ;;  %v1049_v14 = vmul.f32 %v1862_v12, %v1862_v12 }
 0x113   :  { %v1050_v22 = vmul.f32 %v1866_v2, %v1866_v2  ;;  %v1051_v24 = vmul.f32 %v1876_v17, %v1876_v17  ;;  %v1053_v51 = vadd.f32 %v1052_v3, %v1042_v6 }
 0x114   :  { %v1059_v18 = vadd.f32 %v1047_v13, %v1046_v15 }
 0x115   :  { %v1054_v55 = vadd.f32 %v1053_v51, %v1043_v10  ;;  %v1173_v51 = vld [vmem:[%s2092_s8 + $0x8] sm:$0xff] }
 0x116   :  { %v1060_v23 = vadd.f32 %v1059_v18, %v1048_v16 }
 0x117   :  { %v1055_v61 = vadd.f32 %v1054_v55, %v1044_v11 }
 0x118   :  { %v1061_v26 = vadd.f32 %v1060_v23, %v1049_v14 }
 0x119   :  { %v1056_v62 = vadd.f32 %v1055_v61, %v1045_v60 }
 0x11a   :  { %v1062_v27 = vadd.f32 %v1061_v26, %v1050_v22 }
 0x11c   :  { %v1063_v28 = vadd.f32 %v1062_v27, %v1051_v24 }
 0x11e   :  { %1064 = vadd.xlane.f32.xlu1 %v1063_v28 }
 0x12f   :  { %979 = vperm.xlu1 %1376, %v971_v21  }
 0x133   :  { %1176 = vperm.xlu1 %1376, %v1172_v29  }
 0x16c   :  { %v714_v30 = vpop.f32.mrb[0].mxu0 }
 0x16d   :  { %v716_v31 = vpop.f32.mrb[1].mxu0 }
 0x16e   :  { %v809_v32 = vadd.f32 %v716_v31, %v714_v30  ;;  %v718_v33 = vpop.f32.mrb[2].mxu0  ;;  %v757_v34 = vpop.f32.mrb[0].mxu1 }
 0x16f   :  { %v720_v35 = vpop.f32.mrb[3].mxu0  ;;  %v759_v36 = vpop.f32.mrb[1].mxu1 }
 0x170   :  { %v816_v37 = vadd.f32 %v720_v35, %v718_v33  ;;  %v810_v38 = vadd.f32 %v809_v32, %v757_v34  ;;  %v761_v39 = vpop.f32.mrb[2].mxu1 }
 0x171   :  { %v763_v40 = vpop.f32.mrb[3].mxu1 }
 0x172   :  { %v811_v41 = vadd.f32 %v810_v38, %v759_v36  ;;  %v817_v42 = vadd.f32 %v816_v37, %v761_v39 }
 0x174   :  { %v818_v43 = vadd.f32 %v817_v42, %v763_v40 }
 0x1ac   :  { %v800_v52 = vpop.f32.mrb[4].mxu0 }
 0x1ad   :  { %v812_v53 = vadd.f32 %v811_v41, %v800_v52  ;;  %v802_v54 = vpop.f32.mrb[5].mxu0 }
 0x1ae   :  { %v804_v56 = vpop.f32.mrb[6].mxu0 }
 0x1af   :  { %v819_v57 = vadd.f32 %v818_v43, %v804_v56  ;;  %v806_v58 = vpop.f32.mrb[7].mxu0  ;;  %v813_v19 = vadd.f32 %v812_v53, %v802_v54 }
 0x1b1   :  { %v820_v59 = vadd.f32 %v819_v57, %v806_v58  ;;  %814 = vadd.xlane.f32.xlu0 %v813_v19 }
 0x1b5   :  { %821 = vadd.xlane.f32.xlu0 %v820_v59 }
 0x1b9   :  { %1057 = vadd.xlane.f32.xlu0 %v1056_v62 }
 0x23e   :  { %v815_v9 = vpop.xlane.xlu0 %814 }
 0x23f   :  { %v824_v25 = vmul.f32 0.0013020834, %v815_v9 }
 0x241   :  { %v1926_v63 = vsub.f32 %v714_v30, %v824_v25  ;;  %v1928_v0 = vsub.f32 %v716_v31, %v824_v25  ;;  %v1930_v15 = vsub.f32 %v757_v34, %v824_v25  ;;  %v1932_v16 = vsub.f32 %v759_v36, %v824_v25 }
 0x242   :  { %v822_v13 = vpop.xlane.xlu0 %821  ;;  %v1938_v22 = vsub.f32 %v800_v52, %v824_v25  ;;  %v1948_v21 = vsub.f32 %v802_v54, %v824_v25  ;;  %v970_v52 = vld [vmem:[%s2091_s7] sm:$0xff]  ;;  %v1065_v54 = vpop.xlane.xlu1 %1064  ;;  %v1084_v25 = vld [vmem:[#allocation7] sm:$0x3f] }
 0x243   :  { %v825_v14 = vmul.f32 0.0013020834, %v822_v13  ;;  %v838_v18 = vmul.f32 %v1926_v63, %v1926_v63  ;;  %v839_v20 = vmul.f32 %v1928_v0, %v1928_v0  ;;  %v840_v23 = vmul.f32 %v1930_v15, %v1930_v15 }
 0x244   :  { %v841_v29 = vmul.f32 %v1932_v16, %v1932_v16  ;;  %v1067_v55 = vmul.f32 0.0013020834, %v1065_v54 }
 0x245   :  { %v850_v24 = vadd.f32 %v839_v20, %v838_v18  ;;  %v1942_v26 = vsub.f32 %v718_v33, %v825_v14  ;;  %v1944_v27 = vsub.f32 %v720_v35, %v825_v14  ;;  %v1946_v28 = vsub.f32 %v761_v39, %v825_v14  ;;  %v1128_v20 = vld [vmem:[#allocation9] sm:$0x3f] }
 0x246   :  { %v1952_v31 = vsub.f32 %v763_v40, %v825_v14  ;;  %v842_v33 = vmul.f32 %v1938_v22, %v1938_v22  ;;  %v1960_v36 = vsub.f32 %v804_v56, %v825_v14  ;;  %v843_v39 = vmul.f32 %v1948_v21, %v1948_v21  ;;  %v1058_v53 = vpop.xlane.xlu0 %1057  ;;  %v1990_v13 = vpop.permute.xlu1 %979 }
 0x247   :  { %v851_v30 = vadd.f32 %v850_v24, %v840_v23  ;;  %v844_v32 = vmul.f32 %v1942_v26, %v1942_v26  ;;  %v845_v34 = vmul.f32 %v1944_v27, %v1944_v27  ;;  %v846_v37 = vmul.f32 %v1946_v28, %v1946_v28 }
 0x248   :  { %v1966_v41 = vsub.f32 %v806_v58, %v825_v14  ;;  %v847_v42 = vmul.f32 %v1952_v31, %v1952_v31  ;;  %v848_v48 = vmul.f32 %v1960_v36, %v1960_v36  ;;  %v1066_v11 = vmul.f32 0.0013020834, %v1058_v53 }
 0x249   :  { %v852_v35 = vadd.f32 %v851_v30, %v841_v29  ;;  %v857_v38 = vadd.f32 %v845_v34, %v844_v32  ;;  %v1069_v57 = vadd.f32 1e-05, %v1067_v55  ;;  %v884_v58 = vlaneseq }
 0x24a   :  { %v849_v6 = vmul.f32 %v1966_v41, %v1966_v41  ;;  %v1068_v56 = vadd.f32 1e-05, %v1066_v11 }
 0x24b   :  { %v853_v40 = vadd.f32 %v852_v35, %v842_v33  ;;  %v858_v43 = vadd.f32 %v857_v38, %v846_v37  ;;  %v885_v19 = vshrl.u32 %v884_v58, 7 }
 0x24c   :  { %1524 = vrsqrt.f32 %v1068_v56 }
 0x24d   :  { %v854_v44 = vadd.f32 %v853_v40, %v843_v39  ;;  %v859_v49 = vadd.f32 %v858_v43, %v847_v42  ;;  %1526 = vrsqrt.f32 %v1069_v57  ;;  %v1980_v59 = vsub.s32 0, %v885_v19 }
 0x24e   :  { %v1982_v60 = vsub.s32 1, %v885_v19  ;;  %v1984_v61 = vsub.s32 2, %v885_v19  ;;  %v1986_v62 = vsub.s32 3, %v885_v19  ;;  %v1988_v9 = vsub.s32 4, %v885_v19 }
 0x24f   :  { %855 = vadd.xlane.f32.xlu0 %v854_v44  ;;  %v860_v3 = vadd.f32 %v859_v49, %v848_v48  ;;  %v1992_v14 = vsub.s32 5, %v885_v19  ;;  %v1089_v23 = vrot.slane %v1084_v25, %v1980_v59  ;;  %v1133_v35 = vrot.slane %v1128_v20, %v1980_v59  ;;  %v1177_v48 = vpop.permute.xlu1 %1176 }
 0x250   :  { %v1093_v29 = vrot.slane %v1084_v25, %v1982_v60  ;;  %v1097_v30 = vrot.slane %v1084_v25, %v1984_v61  ;;  %v1101_v32 = vrot.slane %v1084_v25, %v1986_v62  ;;  %v1105_v34 = vrot.slane %v1084_v25, %v1988_v9 }
 0x251   :  { %v861_v10 = vadd.f32 %v860_v3, %v849_v6  ;;  %v1109_v33 = vrot.slane %v1084_v25, %v1992_v14  ;;  %v1137_v37 = vrot.slane %v1128_v20, %v1982_v60  ;;  %v1141_v39 = vrot.slane %v1128_v20, %v1984_v61 }
 0x252   :  { %v1145_v44 = vrot.slane %v1128_v20, %v1986_v62 }
 0x253   :  { %862 = vadd.xlane.f32.xlu1 %v861_v10 }
 0x256   :  { %v1525_v18 = vpop.eup %1524 }
 0x257   :  { %v1527_v24 = vpop.eup %1526  ;;  %v1072_v38 = vmul.f32 %v1525_v18, %v1892_v45  ;;  %v1073_v40 = vmul.f32 %v1525_v18, %v1896_v46  ;;  %v1074_v42 = vmul.f32 %v1525_v18, %v1900_v47  ;;  %v1075_v43 = vmul.f32 %v1525_v18, %v1908_v50 }
 0x258   :  { %v1076_v49 = vmul.f32 %v1525_v18, %v1914_v7  ;;  %v1077_v6 = vmul.f32 %v1525_v18, %v1920_v5  ;;  %v1078_v10 = vmul.f32 %v1527_v24, %v1850_v1  ;;  %v1149_v45 = vrot.slane %v1128_v20, %v1988_v9 }
 0x259   :  { %v1080_v46 = vmul.f32 %v1527_v24, %v1858_v8  ;;  %v1116_v47 = vmul.f32 %v1089_v23, %v1072_v38  ;;  %v1081_v50 = vmul.f32 %v1527_v24, %v1862_v12  ;;  %v1082_v53 = vmul.f32 %v1527_v24, %v1866_v2 }
 0x25a   :  { %v1083_v54 = vmul.f32 %v1527_v24, %v1876_v17  ;;  %v1117_v7 = vmul.f32 %v1093_v29, %v1073_v40  ;;  %v1118_v11 = vmul.f32 %v1097_v30, %v1074_v42  ;;  %v1119_v5 = vmul.f32 %v1101_v32, %v1075_v43 }
 0x25b   :  { %v1153_v1 = vrot.slane %v1128_v20, %v1992_v14  ;;  %v1120_v56 = vmul.f32 %v1105_v34, %v1076_v49  ;;  %v1121_v57 = vmul.f32 %v1109_v33, %v1077_v6  ;;  %v1122_v19 = vmul.f32 %v1089_v23, %v1078_v10  ;;  %v882_v20 = vld [vmem:[#allocation4] sm:$0x3f] }
 0x25c   :  { %v1124_v25 = vmul.f32 %v1097_v30, %v1080_v46  ;;  %v1160_v18 = vadd.f32 %v1133_v35, %v1116_v47  ;;  %v1125_v12 = vmul.f32 %v1101_v32, %v1081_v50  ;;  %v1126_v38 = vmul.f32 %v1105_v34, %v1082_v53 }
 0x25d   :  { %v1127_v2 = vmul.f32 %v1109_v33, %v1083_v54  ;;  %v1162_v17 = vadd.f32 %v1141_v39, %v1118_v11  ;;  %v1164_v42 = vadd.f32 %v1149_v45, %v1120_v56  ;;  %v1165_v43 = vadd.f32 %v1153_v1, %v1121_v57  ;;  %v926_v33 = vld [vmem:[#allocation6] sm:$0x3f] }
 0x25e   :  { %v1166_v49 = vadd.f32 %v1133_v35, %v1122_v19  ;;  %v1169_v23 = vadd.f32 %v1145_v44, %v1125_v12  ;;  %v1170_v10 = vadd.f32 %v1149_v45, %v1126_v38  ;;  %v887_v35 = vrot.slane %v882_v20, %v1980_v59 }
 0x25f   :  { %v2022_v32 = vmul.f32 %v1177_v48, %v1162_v17  ;;  %v2028_v46 = vmul.f32 %v1177_v48, %v1165_v43  ;;  %v899_v45 = vrot.slane %v882_v20, %v1986_v62  ;;  %v903_v47 = vrot.slane %v882_v20, %v1988_v9 }
 0x260   :  { %v907_v50 = vrot.slane %v882_v20, %v1992_v14  ;;  %v931_v53 = vrot.slane %v926_v33, %v1980_v59  ;;  %v935_v54 = vrot.slane %v926_v33, %v1982_v60 }
 0x264   :  { %1181 = vperm.xlu1 %1376, %v1173_v51  }
 0x265   :  { %974 = vperm.xlu0 %1375, %v970_v52   ;;  %v1079_v52 = vmul.f32 %v1527_v24, %v1854_v4  ;;  %v1163_v24 = vadd.f32 %v1145_v44, %v1119_v5  ;;  %v895_v44 = vrot.slane %v882_v20, %v1984_v61  ;;  %v947_v5 = vrot.slane %v926_v33, %v1988_v9 }
 0x267   :  { %v1123_v8 = vmul.f32 %v1093_v29, %v1079_v52  ;;  %v2018_v29 = vmul.f32 %v1177_v48, %v1160_v18  ;;  %v2024_v34 = vmul.f32 %v1177_v48, %v1163_v24  ;;  %v2026_v52 = vmul.f32 %v1177_v48, %v1164_v42 }
 0x269   :  { %v1167_v6 = vadd.f32 %v1137_v37, %v1123_v8 }
 0x2dc   :  { %v856_v3 = vpop.xlane.xlu0 %855 }
 0x2dd   :  { %v864_v51 = vmul.f32 0.0013020834, %v856_v3  ;;  %v1161_v3 = vadd.f32 %v1137_v37, %v1117_v7  ;;  %v891_v37 = vrot.slane %v882_v20, %v1982_v60  ;;  %v943_v7 = vrot.slane %v926_v33, %v1986_v62 }
 0x2df   :  { %v866_v55 = vadd.f32 1e-05, %v864_v51  ;;  %v1168_v51 = vadd.f32 %v1141_v39, %v1124_v25  ;;  %v2020_v30 = vmul.f32 %v1177_v48, %v1161_v3  ;;  %v939_v48 = vrot.slane %v926_v33, %v1984_v61 }
 0x2e0   :  { %v863_v58 = vpop.xlane.xlu1 %862 }
 0x2e1   :  { %1528 = vrsqrt.f32 %v866_v55  ;;  %v865_v4 = vmul.f32 0.0013020834, %v863_v58  ;;  %v1171_v55 = vadd.f32 %v1153_v1, %v1127_v2  ;;  %v951_v1 = vrot.slane %v926_v33, %v1992_v14 }
 0x2e3   :  { %v867_v40 = vadd.f32 1e-05, %v865_v4 }
 0x2e4   :  { %v1182_v39 = vpop.permute.xlu1 %1181  ;;  %v975_v33 = vpop.permute.xlu0 %974 }
 0x2e5   :  { %1530 = vrsqrt.f32 %v867_v40  ;;  %v1190_v56 = vmul.f32 %v1182_v39, %v1166_v49  ;;  %v1191_v57 = vmul.f32 %v1182_v39, %v1167_v6  ;;  %v1192_v60 = vmul.f32 %v1182_v39, %v1168_v51 }
 0x2e6   :  { %v1193_v8 = vmul.f32 %v1182_v39, %v1169_v23  ;;  %v1194_v25 = vmul.f32 %v1182_v39, %v1170_v10  ;;  %v1195_v9 = vmul.f32 %v1182_v39, %v1171_v55 }
 0x2eb   :  { %v1529_v11 = vpop.eup %1528 }
 0x2ec   :  { %v870_v58 = vmul.f32 %v1529_v11, %v1926_v63  ;;  %v871_v19 = vmul.f32 %v1529_v11, %v1928_v0  ;;  %v872_v4 = vmul.f32 %v1529_v11, %v1930_v15  ;;  %v873_v59 = vmul.f32 %v1529_v11, %v1932_v16 }
 0x2ed   :  { %v874_v61 = vmul.f32 %v1529_v11, %v1938_v22  ;;  %v875_v62 = vmul.f32 %v1529_v11, %v1948_v21 }
 0x2ee   :  { %v914_v18 = vmul.f32 %v887_v35, %v870_v58  ;;  %v915_v14 = vmul.f32 %v891_v37, %v871_v19  ;;  %v916_v38 = vmul.f32 %v895_v44, %v872_v4  ;;  %v917_v2 = vmul.f32 %v899_v45, %v873_v59 }
 0x2ef   :  { %v1531_v12 = vpop.eup %1530  ;;  %v918_v63 = vmul.f32 %v903_v47, %v874_v61  ;;  %v919_v3 = vmul.f32 %v907_v50, %v875_v62 }
 0x2f0   :  { %v876_v0 = vmul.f32 %v1531_v12, %v1942_v26  ;;  %v877_v15 = vmul.f32 %v1531_v12, %v1944_v27  ;;  %v878_v16 = vmul.f32 %v1531_v12, %v1946_v28  ;;  %v879_v17 = vmul.f32 %v1531_v12, %v1952_v31 }
 0x2f1   :  { %v880_v22 = vmul.f32 %v1531_v12, %v1960_v36  ;;  %v881_v21 = vmul.f32 %v1531_v12, %v1966_v41  ;;  %v958_v24 = vadd.f32 %v931_v53, %v914_v18  ;;  %v959_v40 = vadd.f32 %v935_v54, %v915_v14 }
 0x2f2   :  { %v920_v42 = vmul.f32 %v887_v35, %v876_v0  ;;  %v921_v43 = vmul.f32 %v891_v37, %v877_v15  ;;  %v922_v20 = vmul.f32 %v895_v44, %v878_v16  ;;  %v923_v49 = vmul.f32 %v899_v45, %v879_v17 }
 0x2f3   :  { %v924_v6 = vmul.f32 %v903_v47, %v880_v22  ;;  %v925_v51 = vmul.f32 %v907_v50, %v881_v21  ;;  %v960_v23 = vadd.f32 %v939_v48, %v916_v38  ;;  %v961_v26 = vadd.f32 %v943_v7, %v917_v2 }
 0x2f4   :  { %v964_v10 = vadd.f32 %v931_v53, %v920_v42  ;;  %v965_v27 = vadd.f32 %v935_v54, %v921_v43  ;;  %v966_v55 = vadd.f32 %v939_v48, %v922_v20  ;;  %v967_v28 = vadd.f32 %v943_v7, %v923_v49 }
 0x2f5   :  { %v968_v31 = vadd.f32 %v947_v5, %v924_v6  ;;  %v969_v39 = vadd.f32 %v951_v1, %v925_v51  ;;  %v962_v36 = vadd.f32 %v947_v5, %v918_v63  ;;  %v963_v11 = vadd.f32 %v951_v1, %v919_v3 }
 0x2f6   :  { %v988_v41 = vmul.f32 %v1990_v13, %v964_v10  ;;  %v989_v35 = vmul.f32 %v1990_v13, %v965_v27  ;;  %v990_v37 = vmul.f32 %v1990_v13, %v966_v55  ;;  %v991_v44 = vmul.f32 %v1990_v13, %v967_v28 }
 0x2f7   :  { %v992_v45 = vmul.f32 %v1990_v13, %v968_v31  ;;  %v993_v47 = vmul.f32 %v1990_v13, %v969_v39  ;;  %v982_v50 = vmul.f32 %v975_v33, %v958_v24  ;;  %v983_v53 = vmul.f32 %v975_v33, %v959_v40 }
 0x2f8   :  { %v1202_v54 = vadd.f32 %v1190_v56, %v988_v41  ;;  %v1203_v48 = vadd.f32 %v1191_v57, %v989_v35  ;;  %v1204_v7 = vadd.f32 %v1192_v60, %v990_v37  ;;  %v1205_v58 = vadd.f32 %v1193_v8, %v991_v44 }
 0x2f9   :  { %v1206_v5 = vadd.f32 %v1194_v25, %v992_v45  ;;  %v1207_v1 = vadd.f32 %v1195_v9, %v993_v47  ;;  %v984_v19 = vmul.f32 %v975_v33, %v960_v23  ;;  %v985_v4 = vmul.f32 %v975_v33, %v961_v26 }
 0x2fa   :  { %v1364_v59 = vpack.c.bf16 %v1203_v48, %v1202_v54  ;;  %v1365_v61 = vpack.c.bf16 %v1205_v58, %v1204_v7  ;;  %v986_v62 = vmul.f32 %v975_v33, %v962_v36  ;;  %v987_v18 = vmul.f32 %v975_v33, %v963_v11 }
 0x2fb   :  { %v1366_v14 = vpack.c.bf16 %v1207_v1, %v1206_v5  ;;  %v1196_v12 = vadd.f32 %v2018_v29, %v982_v50  ;;  %v1197_v38 = vadd.f32 %v2020_v30, %v983_v53  ;;  %v1198_v13 = vadd.f32 %v2022_v32, %v984_v19 }
 0x2fc   :  { %1247 = vst [vmem:[%s2093_s9 + $0x18] sm:$0xff] %v1364_v59  ;;  %1248 = vst [vmem:[%s2093_s9 + $0x20] sm:$0xff] %v1365_v61  ;;  %v1199_v56 = vadd.f32 %v2024_v34, %v985_v4  ;;  %v1200_v57 = vadd.f32 %v2026_v52, %v986_v62  ;;  %v1201_v60 = vadd.f32 %v2028_v46, %v987_v18 }
 0x2fd   :  { %1249 = vst [vmem:[%s2093_s9 + $0x28] sm:$0xff] %v1366_v14  ;;  %v1361_v29 = vpack.c.bf16 %v1197_v38, %v1196_v12 }
 0x2fe   :  { %v1362_v30 = vpack.c.bf16 %v1199_v56, %v1198_v13  ;;  %v1363_v32 = vpack.c.bf16 %v1201_v60, %v1200_v57 }
 0x2ff   :  { %1244 = vst [vmem:[%s2093_s9] sm:$0xff] %v1361_v29 }
 0x300   :  { %1245 = vst [vmem:[%s2093_s9 + $0x8] sm:$0xff] %v1362_v30  ;;  %1246 = vst [vmem:[%s2093_s9 + $0x10] sm:$0xff] %v1363_v32 }
 0x301   :  { %1254 = vsyncpa [#allocation3], 1 }
 0x302   :  { %1255 = vsyncpa [#allocation5], 1 }
 0x303   :  { %1256 = vsyncpa [#allocation8], 1 }

// kernel: gpt4rec_forward.3
= control target key start
LH: loop header
LB: loop body
LE: loop exit
PB: predicated region body
PF: predicated region fallthrough
CT: control target
= control target key end

     0   :  { %8 = vsyncpa [#allocation5], 0  ;;  %s8721_s0 = inlined_call_operand.vmem [shape: bf16[16,768], index: 0, kind: input, shape index: {}]   ;;  %s8722_s1 = inlined_call_operand.hbm [shape: bf16[768,16384], index: 1, kind: input, shape index: {}]   ;;  %s8723_s2 = inlined_call_operand.vmem [shape: f32[1,16384], index: 2, kind: input, shape index: {}]   ;;  %s8724_s3 = inlined_call_operand.vmem [shape: f32[16,1], index: 3, kind: output, shape index: {}]  }
   0x1   :  { %10 = vsyncpa [#allocation5 + $0x1], 0  ;;  %s7484_s12 = smov 0   ;;  %s7486_s13 = smov 0  }
   0x2   :  { %s7488_s14 = smov 0   ;;  %s7490_s15 = smov 0  }
   0x3   :  { %s7492_s16 = smov 0   ;;  %s7494_s17 = smov 0  }
   0x4 LB: > { %s6326_s18 = sadd.s32 4294967295, %s7455_s17   ;;  %s25_s19 = sadd.s32 1, %s7451_s16  ;;  %s7455_s17 = sphi %s7494_s17, %s16_s17   ;;  %s7451_s16 = sphi %s7492_s16, %s8732_s16   ;;  %s7447_s15 = sphi %s7490_s15, %s8731_s15   ;;  %s7443_s14 = sphi %s7488_s14, %s8730_s14   ;;  %s7439_s13 = sphi %s7486_s13, %s8729_s13   ;;  %s7435_s12 = sphi %s7484_s12, %s8728_s12  }
   0x5   : > { %p26_p0 = scmp.ge.s32.totalorder %s25_s19, 8  ;;  %s61_s20 = sadd.s32 1, %s7443_s14 }
   0x6   : > { %p68_p1 = scmp.ne.s32.totalorder %s7443_s14, %s7439_s13  ;;  %p69_p2 = scmp.eq.s32.totalorder %s7455_s17, 0 }
   0x7   : > { %s8734_s19 = smov (%p26_p0, %s25_s19), 0  ;;  %p74_p4 = scmp.ne.s32.totalorder %s7439_s13, %s7435_s12 }
   0x8   : > { %p70_p3 = por %p69_p2, %p68_p1  ;;  %s58_s21 = ssub.s32 %s7451_s16, %s8734_s19 }
   0x9   : > { %p75_p5 = scmp.eq.s32.totalorder %s6326_s18, 0  ;;  %p59_p6 = scmp.eq.s32.totalorder %s58_s21, 0 }
   0xa   : > { %p7219_p8 = scmp.lt.s32.totalorder %s7455_s17, 8  ;;  %s160_s24 = sand.u32 1, %s7443_s14  }
   0xb   : > { %p7523_p7 = por %p75_p5, %p74_p4  ;;  %s7114_s25 = sshll.u32 %s7451_s16, 10 }
   0xc   : > { %s7529_s23 = scalar_select %p59_p6, %s7443_s14, %s61_s20  }
   0xd   : > { %s7211_s26 = smul.u32 6144, %s160_s24  ;;  %s7536_s29 = scalar_lea.hbm %s8722_s1, %s7114_s25 }
   0xe   : > { %p7538_p9 = pnand %p7219_p8, %p70_p3  ;;  %s7545_s6 = scalar_lea.sflag [#allocation5], %s160_s24 }
   0xf   : > { %s164_s4 = scalar_lea.vmem [#allocation4], %s7211_s26  ;;  %s7375_s7 = scalar_lea.hbm %s7536_s29, 98304 }
  0x10   : > { %s171_s5 = sshll.u32 %s164_s4, 4  ;;  %p7376_p11 = scmp.ne.s32.totalorder %s7536_s29, %s7375_s7  ;;  %s7542_s5 = int_to_ptr.vmem [resolvable:$true] %s171_s5 }
  0x11   : > { %p7377_p12 = pneg %p7538_p9  ;;  %s7380_s10 = scalar_lea.hbm %s8722_s1, 786432 }
  0x12   : > { %p7381_p1 = scmp.lt.u32.totalorder %s7536_s29, %s8722_s1  ;;  %p7382_p2 = scmp.lt.u32.totalorder %s7380_s10, %s7375_s7 }
  0x13   : > { %p7378_p13 = pnand %p7377_p12, %p7376_p11  ;;  %p7384_p4 = scmp.lt.u32.totalorder %s7375_s7, %s7536_s29 }
  0x14   : > { %p7383_p3 = por %p7382_p2, %p7381_p1 }
  0x15   : > { %p7379_p0 = pneg %p7378_p13 }
  0x16   : > { %p7385_p5 = por %p7384_p4, %p7383_p3 }
  0x18   : > { %p7386_p6 = pnand %p7385_p5, %p7379_p0 }
  0x1a   : > { %7389 = shalt.err (!%p7386_p6)
}
  0x1b   : > { %s7390_s18 = scalar_lea.vmem %s7542_s5, 98304  ;;  %s7457_s20 = smov [#allocation4]  }
  0x1c   : > { %p7391_p8 = scmp.ne.s32.totalorder %s7542_s5, %s7390_s18  ;;  %s7395_s21 = sshll.u32 %s7457_s20, 4  ;;  %s7396_s21 = int_to_ptr.vmem [resolvable:$false] %s7395_s21 }
  0x1d   : > { %s7397_s24 = scalar_lea.vmem %s7396_s21, 196608  ;;  %p7398_p10 = scmp.lt.s32.totalorder %s7542_s5, %s7396_s21 }
  0x1e   : > { %p7393_p11 = pnand %p7391_p8, %p7377_p12  ;;  %p7399_p1 = scmp.lt.s32.totalorder %s7397_s24, %s7390_s18 }
  0x20   : > { %p7394_p13 = pneg %p7393_p11  ;;  %p7400_p2 = por %p7399_p1, %p7398_p10 }
  0x22   : > { %p7401_p3 = pnand %p7400_p2, %p7394_p13 }
  0x24   : > { %7404 = shalt.err (!%p7401_p3)
}
  0x25   : > { %s7458_s25 = smov 8192   ;;  %s7459_s26 = smov 1024  }
  0x26   : > { %s7460_s27 = smov 64   ;;  %p187_p12 = scmp.lt.s32.totalorder %s7455_s17, 9 }
  0x27   : > { %7218 = dma.hbm_to_vmem [thread:$0]  (!%p7538_p9), %s7536_s29, 98304, %s7542_s5, %s7545_s6, %s7458_s25, %s7459_s26, %s7460_s27  }
  0x28   : > { %p8727_p0 = scmp.ge.s32.totalorder %s7455_s17, 1 }
  0x2a   : > { %p188_p4 = pnand %p8727_p0, %p187_p12 }
  0x2b   : > { %s193_s28 = sand.u32 (!%p188_p4), 1, %s7439_s13  }
  0x2c   : > { %191 = sbr.rel (%p188_p4) target bundleno = 1550 (0x60e), region = 32  ;;  %s194_s7 = scalar_lea.sflag (!%p188_p4), [#allocation5], %s193_s28 }
  0x2d   : > { %s7212_s4 = smul.u32 (!%p188_p4), 6144, %s193_s28 }
  0x2f   : > { %s7577_s8 = scalar_lea.vmem (!%p188_p4), [#allocation4], %s7212_s4 }
  0x33   : > { %7430 = dma.done.wait (%p7523_p7), %s194_s7, 98304  }
  0x34   : > { %7432 = vsyncadd (%p7523_p7), %s194_s7, 4294868992  ;;  %s6333_s9 = sshll.u32 %s7447_s15, 4  ;;  %p6334_p9 = scmp.ne.s32.totalorder %s7447_s15, 0 }
  0x35   : > { %p239_p10 = scmp.lt.s32.totalorder %s6333_s9, 127  ;;  %vm253_vm0 = vcmask (!%p6334_p9), 7168   ;;  %v7461_v0 = vmov (!%p6334_p9), -inf   ;;  %v7462_v1 = vmov (!%p6334_p9), 0.0  }
  0x36   : > { %252 = sbr.rel (%p6334_p9) target bundleno = 61 (0x3d), region = 40  ;;  %254 = vst.msk [vmem:[#allocation2] sm:$0xff] (!%p6334_p9), %vm253_vm0, %v7461_v0  ;;  %255 = vst.msk [vmem:[#allocation2 + $0x8] sm:$0xff] (!%p6334_p9), %vm253_vm0, %v7461_v0 }
  0x37   : > { %s8736_s9 = smov (!%p239_p10, %s6333_s9), 127  ;;  %256 = vst.msk [vmem:[#allocation3] sm:$0xff] (!%p6334_p9), %vm253_vm0, %v7462_v1  ;;  %257 = vst.msk [vmem:[#allocation3 + $0x8] sm:$0xff] (!%p6334_p9), %vm253_vm0, %v7462_v1 }
  0x38   : > { %s7587_s5 = scalar_lea.vmem %s8723_s2, %s8736_s9 }
  0x3d PF: > { %v264_v2 = vld [vmem:[%s7577_s8] sm:$0xff]  ;;  %v265_v4 = vld [vmem:[%s7577_s8 + $0x8] sm:$0xff]  ;;  %vm6208_vm1 = vcmask 7168   ;;  %p7109_p7 = scmp.ne.s32.totalorder %s7447_s15, 7 }
  0x3e   : > { %v272_v3 = vld [vmem:[%s7577_s8 + $0x40] sm:$0xff]  ;;  %v273_v6 = vld [vmem:[%s7577_s8 + $0x48] sm:$0xff] }
  0x3f   : > { %v6342_v5 = vcombine.high %v264_v2, %v272_v3  ;;  %v6341_v7 = vcombine.low %v264_v2, %v272_v3  ;;  %v280_v8 = vld [vmem:[%s7577_s8 + $0x80] sm:$0xff]  ;;  %v6344_v10 = vcombine.high %v265_v4, %v273_v6  ;;  %v6343_v11 = vcombine.low %v265_v4, %v273_v6  ;;  %v281_v13 = vld [vmem:[%s7577_s8 + $0x88] sm:$0xff] }
  0x40   : > { %v288_v9 = vld [vmem:[%s7577_s8 + $0xc0] sm:$0xff]  ;;  %v289_v14 = vld [vmem:[%s7577_s8 + $0xc8] sm:$0xff] }
  0x41   : > { %v6358_v12 = vcombine.high %v280_v8, %v288_v9  ;;  %v296_v15 = vld [vmem:[%s7577_s8 + $0x100] sm:$0xff]  ;;  %4986 = vmatprep.subr.bf16.mxu0 %v6342_v5  ;;  %v6360_v16 = vcombine.high %v281_v13, %v289_v14  ;;  %v297_v18 = vld [vmem:[%s7577_s8 + $0x108] sm:$0xff]  ;;  %5115 = vmatprep.subr.bf16.mxu1 %v6344_v10  ;;  %v6357_v20 = vcombine.low %v280_v8, %v288_v9 }
  0x42   : > { %v304_v17 = vld [vmem:[%s7577_s8 + $0x140] sm:$0xff]  ;;  %v305_v19 = vld [vmem:[%s7577_s8 + $0x148] sm:$0xff]  ;;  %4987 = vmatpush1.bf16.msra.mxu0 %v6341_v7  ;;  %5116 = vmatpush1.bf16.msra.mxu1 %v6343_v11  ;;  %v6359_v21 = vcombine.low %v281_v13, %v289_v14 }
  0x43   : > { %4988 = vmatprep.subr.bf16.mxu0 %v6358_v12  ;;  %v6374_v22 = vcombine.high %v296_v15, %v304_v17  ;;  %5117 = vmatprep.subr.bf16.mxu1 %v6360_v16  ;;  %v6376_v23 = vcombine.high %v297_v18, %v305_v19  ;;  %v312_v24 = vld [vmem:[%s7577_s8 + $0x180] sm:$0xff]  ;;  %v313_v26 = vld [vmem:[%s7577_s8 + $0x188] sm:$0xff]  ;;  %v6373_v28 = vcombine.low %v296_v15, %v304_v17 }
  0x44   : > { %v320_v25 = vld [vmem:[%s7577_s8 + $0x1c0] sm:$0xff]  ;;  %v321_v27 = vld [vmem:[%s7577_s8 + $0x1c8] sm:$0xff]  ;;  %v6375_v29 = vcombine.low %v297_v18, %v305_v19 }
  0x45   : > { %v6390_v30 = vcombine.high %v312_v24, %v320_v25  ;;  %v6392_v31 = vcombine.high %v313_v26, %v321_v27  ;;  %v328_v32 = vld [vmem:[%s7577_s8 + $0x200] sm:$0xff]  ;;  %v329_v34 = vld [vmem:[%s7577_s8 + $0x208] sm:$0xff]  ;;  %v6389_v36 = vcombine.low %v312_v24, %v320_v25  ;;  %v6391_v37 = vcombine.low %v313_v26, %v321_v27 }
  0x46   : > { %4989 = vmatpush1.bf16.msra.mxu0 %v6357_v20  ;;  %5118 = vmatpush1.bf16.msra.mxu1 %v6359_v21  ;;  %v336_v33 = vld [vmem:[%s7577_s8 + $0x240] sm:$0xff]  ;;  %v337_v35 = vld [vmem:[%s7577_s8 + $0x248] sm:$0xff] }
  0x47   : > { %4990 = vmatprep.subr.bf16.mxu0 %v6374_v22  ;;  %5119 = vmatprep.subr.bf16.mxu1 %v6376_v23  ;;  %v6406_v38 = vcombine.high %v328_v32, %v336_v33  ;;  %v6408_v39 = vcombine.high %v329_v34, %v337_v35  ;;  %v344_v40 = vld [vmem:[%s7577_s8 + $0x280] sm:$0xff]  ;;  %v345_v42 = vld [vmem:[%s7577_s8 + $0x288] sm:$0xff]  ;;  %v6405_v44 = vcombine.low %v328_v32, %v336_v33 }
  0x48   : > { %v352_v41 = vld [vmem:[%s7577_s8 + $0x2c0] sm:$0xff]  ;;  %v353_v43 = vld [vmem:[%s7577_s8 + $0x2c8] sm:$0xff]  ;;  %v6407_v45 = vcombine.low %v329_v34, %v337_v35 }
  0x49   : > { %v6422_v46 = vcombine.high %v344_v40, %v352_v41  ;;  %v6424_v47 = vcombine.high %v345_v42, %v353_v43  ;;  %v360_v48 = vld [vmem:[%s7577_s8 + $0x300] sm:$0xff]  ;;  %v361_v50 = vld [vmem:[%s7577_s8 + $0x308] sm:$0xff]  ;;  %v6421_v52 = vcombine.low %v344_v40, %v352_v41  ;;  %v6423_v53 = vcombine.low %v345_v42, %v353_v43 }
  0x4a   : > { %4991 = vmatpush1.bf16.msra.mxu0 %v6373_v28  ;;  %5120 = vmatpush1.bf16.msra.mxu1 %v6375_v29  ;;  %v368_v49 = vld [vmem:[%s7577_s8 + $0x340] sm:$0xff]  ;;  %v369_v51 = vld [vmem:[%s7577_s8 + $0x348] sm:$0xff] }
  0x4b   : > { %4992 = vmatprep.subr.bf16.mxu0 %v6390_v30  ;;  %5121 = vmatprep.subr.bf16.mxu1 %v6392_v31  ;;  %v6438_v54 = vcombine.high %v360_v48, %v368_v49  ;;  %v6440_v55 = vcombine.high %v361_v50, %v369_v51  ;;  %v376_v56 = vld [vmem:[%s7577_s8 + $0x380] sm:$0xff]  ;;  %v377_v59 = vld [vmem:[%s7577_s8 + $0x388] sm:$0xff]  ;;  %v6437_v61 = vcombine.low %v360_v48, %v368_v49 }
  0x4c   : > { %v384_v57 = vld [vmem:[%s7577_s8 + $0x3c0] sm:$0xff]  ;;  %v385_v60 = vld [vmem:[%s7577_s8 + $0x3c8] sm:$0xff]  ;;  %v6439_v62 = vcombine.low %v361_v50, %v369_v51 }
  0x4d   : > { %v7276_v58 = vld [vmem:[%s8721_s0 + $0x4] ss:$24 sps:$4 sm:$0xff]   ;;  %v6454_v63 = vcombine.high %v376_v56, %v384_v57  ;;  %v6456_v0 = vcombine.high %v377_v59, %v385_v60  ;;  %v393_v3 = vld [vmem:[%s7577_s8 + $0x408] sm:$0xff]  ;;  %v6453_v5 = vcombine.low %v376_v56, %v384_v57  ;;  %v6455_v6 = vcombine.low %v377_v59, %v385_v60 }
  0x4e   : > { %4993 = vmatpush1.bf16.msra.mxu0 %v6389_v36  ;;  %5122 = vmatpush1.bf16.msra.mxu1 %v6391_v37  ;;  %v392_v1 = vld [vmem:[%s7577_s8 + $0x400] sm:$0xff]  ;;  %v401_v4 = vld [vmem:[%s7577_s8 + $0x448] sm:$0xff] }
  0x4f   : > { %4994 = vmatprep.subr.bf16.mxu0 %v6406_v38  ;;  %5123 = vmatprep.subr.bf16.mxu1 %v6408_v39  ;;  %v400_v2 = vld [vmem:[%s7577_s8 + $0x440] sm:$0xff]  ;;  %v6472_v8 = vcombine.high %v393_v3, %v401_v4  ;;  %v409_v11 = vld [vmem:[%s7577_s8 + $0x488] sm:$0xff]  ;;  %v6471_v14 = vcombine.low %v393_v3, %v401_v4 }
  0x50   : > { %5018 = vmatprep.mubr.bf16.mxu0 %v7276_v58  ;;  %5147 = vmatprep.mubr.bf16.mxu1 %v7276_v58  ;;  %v6470_v7 = vcombine.high %v392_v1, %v400_v2  ;;  %v408_v9 = vld [vmem:[%s7577_s8 + $0x480] sm:$0xff]  ;;  %v417_v12 = vld [vmem:[%s7577_s8 + $0x4c8] sm:$0xff]  ;;  %v6469_v13 = vcombine.low %v392_v1, %v400_v2 }
  0x51   : > { %v416_v10 = vld [vmem:[%s7577_s8 + $0x4c0] sm:$0xff]  ;;  %v6488_v16 = vcombine.high %v409_v11, %v417_v12  ;;  %v425_v19 = vld [vmem:[%s7577_s8 + $0x508] sm:$0xff]  ;;  %v6487_v22 = vcombine.low %v409_v11, %v417_v12 }
  0x52   : > { %4995 = vmatpush1.bf16.msra.mxu0 %v6405_v44  ;;  %5124 = vmatpush1.bf16.msra.mxu1 %v6407_v45  ;;  %v6486_v15 = vcombine.high %v408_v9, %v416_v10  ;;  %v424_v17 = vld [vmem:[%s7577_s8 + $0x500] sm:$0xff]  ;;  %v433_v20 = vld [vmem:[%s7577_s8 + $0x548] sm:$0xff]  ;;  %v6485_v21 = vcombine.low %v408_v9, %v416_v10 }
  0x53   : > { %4996 = vmatprep.subr.bf16.mxu0 %v6422_v46  ;;  %5125 = vmatprep.subr.bf16.mxu1 %v6424_v47  ;;  %v432_v18 = vld [vmem:[%s7577_s8 + $0x540] sm:$0xff]  ;;  %v6504_v24 = vcombine.high %v425_v19, %v433_v20  ;;  %v441_v27 = vld [vmem:[%s7577_s8 + $0x588] sm:$0xff]  ;;  %v6503_v30 = vcombine.low %v425_v19, %v433_v20 }
  0x54   : > { %v6502_v23 = vcombine.high %v424_v17, %v432_v18  ;;  %v440_v25 = vld [vmem:[%s7577_s8 + $0x580] sm:$0xff]  ;;  %v449_v28 = vld [vmem:[%s7577_s8 + $0x5c8] sm:$0xff]  ;;  %v6501_v29 = vcombine.low %v424_v17, %v432_v18 }
  0x55   : > { %v448_v26 = vld [vmem:[%s7577_s8 + $0x5c0] sm:$0xff]  ;;  %v6520_v32 = vcombine.high %v441_v27, %v449_v28  ;;  %v457_v35 = vld [vmem:[%s7577_s8 + $0x608] sm:$0xff]  ;;  %v6519_v38 = vcombine.low %v441_v27, %v449_v28 }
  0x56   : > { %4997 = vmatpush1.bf16.msra.mxu0 %v6421_v52  ;;  %5126 = vmatpush1.bf16.msra.mxu1 %v6423_v53  ;;  %v6518_v31 = vcombine.high %v440_v25, %v448_v26  ;;  %v456_v33 = vld [vmem:[%s7577_s8 + $0x600] sm:$0xff]  ;;  %v465_v36 = vld [vmem:[%s7577_s8 + $0x648] sm:$0xff]  ;;  %v6517_v37 = vcombine.low %v440_v25, %v448_v26 }
  0x57   : > { %4998 = vmatprep.subr.bf16.mxu0 %v6438_v54  ;;  %5127 = vmatprep.subr.bf16.mxu1 %v6440_v55  ;;  %v464_v34 = vld [vmem:[%s7577_s8 + $0x640] sm:$0xff]  ;;  %v6536_v40 = vcombine.high %v457_v35, %v465_v36  ;;  %v473_v43 = vld [vmem:[%s7577_s8 + $0x688] sm:$0xff]  ;;  %v6535_v46 = vcombine.low %v457_v35, %v465_v36 }
  0x58   : > { %v6534_v39 = vcombine.high %v456_v33, %v464_v34  ;;  %v472_v41 = vld [vmem:[%s7577_s8 + $0x680] sm:$0xff]  ;;  %v481_v44 = vld [vmem:[%s7577_s8 + $0x6c8] sm:$0xff]  ;;  %v6533_v45 = vcombine.low %v456_v33, %v464_v34 }
  0x59   : > { %v480_v42 = vld [vmem:[%s7577_s8 + $0x6c0] sm:$0xff]  ;;  %v6552_v48 = vcombine.high %v473_v43, %v481_v44  ;;  %v489_v51 = vld [vmem:[%s7577_s8 + $0x708] sm:$0xff]  ;;  %v6551_v54 = vcombine.low %v473_v43, %v481_v44 }
  0x5a   : > { %4999 = vmatpush1.bf16.msra.mxu0 %v6437_v61  ;;  %5128 = vmatpush1.bf16.msra.mxu1 %v6439_v62  ;;  %v6550_v47 = vcombine.high %v472_v41, %v480_v42  ;;  %v488_v49 = vld [vmem:[%s7577_s8 + $0x700] sm:$0xff]  ;;  %v497_v52 = vld [vmem:[%s7577_s8 + $0x748] sm:$0xff]  ;;  %v6549_v53 = vcombine.low %v472_v41, %v480_v42 }
  0x5b   : > { %5000 = vmatprep.subr.bf16.mxu0 %v6454_v63  ;;  %5129 = vmatprep.subr.bf16.mxu1 %v6456_v0  ;;  %v496_v50 = vld [vmem:[%s7577_s8 + $0x740] sm:$0xff]  ;;  %v6568_v56 = vcombine.high %v489_v51, %v497_v52  ;;  %v505_v59 = vld [vmem:[%s7577_s8 + $0x788] sm:$0xff]  ;;  %v6567_v62 = vcombine.low %v489_v51, %v497_v52 }
  0x5c   : > { %v6566_v55 = vcombine.high %v488_v49, %v496_v50  ;;  %v504_v57 = vld [vmem:[%s7577_s8 + $0x780] sm:$0xff]  ;;  %v513_v60 = vld [vmem:[%s7577_s8 + $0x7c8] sm:$0xff]  ;;  %v6565_v61 = vcombine.low %v488_v49, %v496_v50 }
  0x5d   : > { %v512_v58 = vld [vmem:[%s7577_s8 + $0x7c0] sm:$0xff]  ;;  %v6584_v0 = vcombine.high %v505_v59, %v513_v60  ;;  %v521_v3 = vld [vmem:[%s7577_s8 + $0x808] sm:$0xff] }
  0x5e   : > { %5001 = vmatpush1.bf16.msra.mxu0 %v6453_v5  ;;  %5130 = vmatpush1.bf16.msra.mxu1 %v6455_v6  ;;  %v6582_v63 = vcombine.high %v504_v57, %v512_v58  ;;  %v520_v1 = vld [vmem:[%s7577_s8 + $0x800] sm:$0xff]  ;;  %v529_v4 = vld [vmem:[%s7577_s8 + $0x848] sm:$0xff]  ;;  %v6581_v5 = vcombine.low %v504_v57, %v512_v58  ;;  %v6583_v6 = vcombine.low %v505_v59, %v513_v60 }
  0x5f   : > { %5002 = vmatprep.subr.bf16.mxu0 %v6470_v7  ;;  %5131 = vmatprep.subr.bf16.mxu1 %v6472_v8  ;;  %v528_v2 = vld [vmem:[%s7577_s8 + $0x840] sm:$0xff]  ;;  %v6600_v8 = vcombine.high %v521_v3, %v529_v4  ;;  %v537_v12 = vld [vmem:[%s7577_s8 + $0x888] sm:$0xff] }
  0x60   : > { %v6598_v7 = vcombine.high %v520_v1, %v528_v2  ;;  %v536_v9 = vld [vmem:[%s7577_s8 + $0x880] sm:$0xff] }
  0x61   : > { %v544_v10 = vld [vmem:[%s7577_s8 + $0x8c0] sm:$0xff] }
  0x62   : > { %5003 = vmatpush1.bf16.msra.mxu0 %v6469_v13  ;;  %5132 = vmatpush1.bf16.msra.mxu1 %v6471_v14  ;;  %v7278_v11 = vld [vmem:[%s8721_s0] ss:$24 sps:$4 sm:$0xff]   ;;  %v545_v13 = vld [vmem:[%s7577_s8 + $0x8c8] sm:$0xff]  ;;  %v6597_v14 = vcombine.low %v520_v1, %v528_v2 }
  0x63   : > { %5004 = vmatprep.subr.bf16.mxu0 %v6486_v15  ;;  %5133 = vmatprep.subr.bf16.mxu1 %v6488_v16  ;;  %v6599_v15 = vcombine.low %v521_v3, %v529_v4  ;;  %v6614_v16 = vcombine.high %v536_v9, %v544_v10  ;;  %v552_v17 = vld [vmem:[%s7577_s8 + $0x900] sm:$0xff]  ;;  %v6616_v18 = vcombine.high %v537_v12, %v545_v13 }
  0x64   : > { %v560_v19 = vld [vmem:[%s7577_s8 + $0x940] sm:$0xff] }
  0x65   : > { %v7279_v20 = vld [vmem:[%s8721_s0 + $0xc] ss:$24 sps:$4 sm:$0xff]   ;;  %v6630_v25 = vcombine.high %v552_v17, %v560_v19 }
  0x66   : > { %5005 = vmatpush1.bf16.msra.mxu0 %v6485_v21  ;;  %5134 = vmatpush1.bf16.msra.mxu1 %v6487_v22  ;;  %v553_v21 = vld [vmem:[%s7577_s8 + $0x908] sm:$0xff]  ;;  %v568_v27 = vld [vmem:[%s7577_s8 + $0x980] sm:$0xff] }
  0x67   : > { %5006 = vmatprep.subr.bf16.mxu0 %v6502_v23  ;;  %5135 = vmatprep.subr.bf16.mxu1 %v6504_v24  ;;  %v561_v22 = vld [vmem:[%s7577_s8 + $0x948] sm:$0xff]  ;;  %v6613_v23 = vcombine.low %v536_v9, %v544_v10  ;;  %v6615_v24 = vcombine.low %v537_v12, %v545_v13  ;;  %v576_v28 = vld [vmem:[%s7577_s8 + $0x9c0] sm:$0xff] }
  0x68   : > { %v6632_v26 = vcombine.high %v553_v21, %v561_v22  ;;  %v6646_v33 = vcombine.high %v568_v27, %v576_v28  ;;  %v584_v35 = vld [vmem:[%s7577_s8 + $0xa00] sm:$0xff]  ;;  %v665_v13 = vld [vmem:[%s7577_s8 + $0xc88] sm:$0xff] }
  0x69   : > { %v592_v36 = vld [vmem:[%s7577_s8 + $0xa40] sm:$0xff] }
  0x6a   : > { %5007 = vmatpush1.bf16.msra.mxu0 %v6501_v29  ;;  %5136 = vmatpush1.bf16.msra.mxu1 %v6503_v30  ;;  %v569_v29 = vld [vmem:[%s7577_s8 + $0x988] sm:$0xff]  ;;  %v6662_v41 = vcombine.high %v584_v35, %v592_v36  ;;  %v600_v43 = vld [vmem:[%s7577_s8 + $0xa80] sm:$0xff] }
  0x6b   : > { %5008 = vmatprep.subr.bf16.mxu0 %v6518_v31  ;;  %5137 = vmatprep.subr.bf16.mxu1 %v6520_v32  ;;  %v577_v30 = vld [vmem:[%s7577_s8 + $0x9c8] sm:$0xff]  ;;  %v6629_v31 = vcombine.low %v552_v17, %v560_v19  ;;  %v6631_v32 = vcombine.low %v553_v21, %v561_v22  ;;  %v608_v44 = vld [vmem:[%s7577_s8 + $0xac0] sm:$0xff] }
  0x6c   : > { %v6648_v34 = vcombine.high %v569_v29, %v577_v30  ;;  %v6678_v49 = vcombine.high %v600_v43, %v608_v44  ;;  %v616_v51 = vld [vmem:[%s7577_s8 + $0xb00] sm:$0xff]  ;;  %v681_v21 = vld [vmem:[%s7577_s8 + $0xd08] sm:$0xff] }
  0x6d   : > { %v624_v52 = vld [vmem:[%s7577_s8 + $0xb40] sm:$0xff]  ;;  %v689_v22 = vld [vmem:[%s7577_s8 + $0xd48] sm:$0xff] }
  0x6e   : > { %5009 = vmatpush1.bf16.msra.mxu0 %v6517_v37  ;;  %5138 = vmatpush1.bf16.msra.mxu1 %v6519_v38  ;;  %v585_v37 = vld [vmem:[%s7577_s8 + $0xa08] sm:$0xff]  ;;  %v6694_v57 = vcombine.high %v616_v51, %v624_v52  ;;  %v632_v59 = vld [vmem:[%s7577_s8 + $0xb80] sm:$0xff] }
  0x6f   : > { %5010 = vmatprep.subr.bf16.mxu0 %v6534_v39  ;;  %5139 = vmatprep.subr.bf16.mxu1 %v6536_v40  ;;  %v593_v38 = vld [vmem:[%s7577_s8 + $0xa48] sm:$0xff]  ;;  %v6645_v39 = vcombine.low %v568_v27, %v576_v28  ;;  %v6647_v40 = vcombine.low %v569_v29, %v577_v30  ;;  %v640_v60 = vld [vmem:[%s7577_s8 + $0xbc0] sm:$0xff] }
  0x70   : > { %v6664_v42 = vcombine.high %v585_v37, %v593_v38  ;;  %v6710_v1 = vcombine.high %v632_v59, %v640_v60  ;;  %v648_v3 = vld [vmem:[%s7577_s8 + $0xc00] sm:$0xff]  ;;  %v697_v29 = vld [vmem:[%s7577_s8 + $0xd88] sm:$0xff] }
  0x71   : > { %v656_v4 = vld [vmem:[%s7577_s8 + $0xc40] sm:$0xff]  ;;  %v705_v30 = vld [vmem:[%s7577_s8 + $0xdc8] sm:$0xff] }
  0x72   : > { %5011 = vmatpush1.bf16.msra.mxu0 %v6533_v45  ;;  %5140 = vmatpush1.bf16.msra.mxu1 %v6535_v46  ;;  %v601_v45 = vld [vmem:[%s7577_s8 + $0xa88] sm:$0xff]  ;;  %v6726_v9 = vcombine.high %v648_v3, %v656_v4  ;;  %v672_v12 = vld [vmem:[%s7577_s8 + $0xcc0] sm:$0xff] }
  0x73   : > { %5012 = vmatprep.subr.bf16.mxu0 %v6550_v47  ;;  %5141 = vmatprep.subr.bf16.mxu1 %v6552_v48  ;;  %v609_v46 = vld [vmem:[%s7577_s8 + $0xac8] sm:$0xff]  ;;  %v6661_v47 = vcombine.low %v584_v35, %v592_v36  ;;  %v6663_v48 = vcombine.low %v585_v37, %v593_v38  ;;  %v680_v19 = vld [vmem:[%s7577_s8 + $0xd00] sm:$0xff] }
  0x74   : > { %v6680_v50 = vcombine.high %v601_v45, %v609_v46  ;;  %v696_v27 = vld [vmem:[%s7577_s8 + $0xd80] sm:$0xff]  ;;  %v713_v37 = vld [vmem:[%s7577_s8 + $0xe08] sm:$0xff] }
  0x75   : > { %v704_v28 = vld [vmem:[%s7577_s8 + $0xdc0] sm:$0xff]  ;;  %v721_v38 = vld [vmem:[%s7577_s8 + $0xe48] sm:$0xff] }
  0x76   : > { %5013 = vmatpush1.bf16.msra.mxu0 %v6549_v53  ;;  %5142 = vmatpush1.bf16.msra.mxu1 %v6551_v54  ;;  %v617_v53 = vld [vmem:[%s7577_s8 + $0xb08] sm:$0xff]  ;;  %v712_v35 = vld [vmem:[%s7577_s8 + $0xe00] sm:$0xff] }
  0x77   : > { %5014 = vmatprep.subr.bf16.mxu0 %v6566_v55  ;;  %5143 = vmatprep.subr.bf16.mxu1 %v6568_v56  ;;  %v625_v54 = vld [vmem:[%s7577_s8 + $0xb48] sm:$0xff]  ;;  %v6677_v55 = vcombine.low %v600_v43, %v608_v44  ;;  %v6679_v56 = vcombine.low %v601_v45, %v609_v46  ;;  %v720_v36 = vld [vmem:[%s7577_s8 + $0xe40] sm:$0xff] }
  0x78   : > { %v6696_v58 = vcombine.high %v617_v53, %v625_v54  ;;  %v728_v43 = vld [vmem:[%s7577_s8 + $0xe80] sm:$0xff]  ;;  %v729_v45 = vld [vmem:[%s7577_s8 + $0xe88] sm:$0xff] }
  0x79   : > { %v736_v44 = vld [vmem:[%s7577_s8 + $0xec0] sm:$0xff]  ;;  %v737_v46 = vld [vmem:[%s7577_s8 + $0xec8] sm:$0xff] }
  0x7a   : > { %5015 = vmatpush1.bf16.msra.mxu0 %v6565_v61  ;;  %5144 = vmatpush1.bf16.msra.mxu1 %v6567_v62  ;;  %v633_v61 = vld [vmem:[%s7577_s8 + $0xb88] sm:$0xff] }
  0x7b   : > { %5016 = vmatprep.subr.bf16.mxu0 %v6582_v63  ;;  %5145 = vmatprep.subr.bf16.mxu1 %v6584_v0  ;;  %v641_v62 = vld [vmem:[%s7577_s8 + $0xbc8] sm:$0xff]  ;;  %v6693_v63 = vcombine.low %v616_v51, %v624_v52  ;;  %v6695_v0 = vcombine.low %v617_v53, %v625_v54  ;;  %v744_v51 = vld [vmem:[%s7577_s8 + $0xf00] sm:$0xff] }
  0x7c   : > { %v6712_v2 = vcombine.high %v633_v61, %v641_v62  ;;  %v752_v52 = vld [vmem:[%s7577_s8 + $0xf40] sm:$0xff]  ;;  %v745_v53 = vld [vmem:[%s7577_s8 + $0xf08] sm:$0xff] }
  0x7d   : > { %v753_v54 = vld [vmem:[%s7577_s8 + $0xf48] sm:$0xff] }
  0x7e   : > { %5017 = vmatpush1.bf16.msra.mxu0 %v6581_v5  ;;  %5146 = vmatpush1.bf16.msra.mxu1 %v6583_v6  ;;  %v649_v5 = vld [vmem:[%s7577_s8 + $0xc08] sm:$0xff] }
  0x7f   : > { %5029 = vmatprep.subr.bf16.mxu0 %v6598_v7  ;;  %5158 = vmatprep.subr.bf16.mxu1 %v6600_v8  ;;  %v657_v6 = vld [vmem:[%s7577_s8 + $0xc48] sm:$0xff]  ;;  %v6709_v7 = vcombine.low %v632_v59, %v640_v60  ;;  %v6711_v8 = vcombine.low %v633_v61, %v641_v62  ;;  %v760_v59 = vld [vmem:[%s7577_s8 + $0xf80] sm:$0xff] }
  0x80   : > { %v6728_v10 = vcombine.high %v649_v5, %v657_v6  ;;  %v768_v60 = vld [vmem:[%s7577_s8 + $0xfc0] sm:$0xff]  ;;  %v761_v61 = vld [vmem:[%s7577_s8 + $0xf88] sm:$0xff] }
  0x81   : > { %5019 = vmatmul.mubr.bf16.vlgmr.msra.gmra.mrb[0].mxu0 %v7278_v11  ;;  %5148 = vmatmul.mubr.bf16.vlgmr.msra.gmra.mrb[0].mxu1 %v7278_v11  ;;  %v664_v11 = vld [vmem:[%s7577_s8 + $0xc80] sm:$0xff]  ;;  %v769_v62 = vld [vmem:[%s7577_s8 + $0xfc8] sm:$0xff] }
  0x82   : > { %5030 = vmatpush1.bf16.msra.mxu0 %v6597_v14  ;;  %5159 = vmatpush1.bf16.msra.mxu1 %v6599_v15  ;;  %v673_v14 = vld [vmem:[%s7577_s8 + $0xcc8] sm:$0xff]  ;;  %v6725_v15 = vcombine.low %v648_v3, %v656_v4  ;;  %v6742_v17 = vcombine.high %v664_v11, %v672_v12  ;;  %v776_v3 = vld [vmem:[%s7577_s8 + $0x1000] sm:$0xff] }
  0x83   : > { %5031 = vmatprep.subr.bf16.mxu0 %v6614_v16  ;;  %5160 = vmatprep.subr.bf16.mxu1 %v6616_v18  ;;  %v6727_v16 = vcombine.low %v649_v5, %v657_v6  ;;  %v6744_v18 = vcombine.high %v665_v13, %v673_v14  ;;  %v784_v4 = vld [vmem:[%s7577_s8 + $0x1040] sm:$0xff]  ;;  %v777_v5 = vld [vmem:[%s7577_s8 + $0x1008] sm:$0xff] }
  0x84   : > { %5061 = vmatprep.mubr.bf16.mxu0 %v7279_v20  ;;  %5190 = vmatprep.mubr.bf16.mxu1 %v7279_v20  ;;  %v688_v20 = vld [vmem:[%s7577_s8 + $0xd40] sm:$0xff]  ;;  %v785_v6 = vld [vmem:[%s7577_s8 + $0x1048] sm:$0xff] }
  0x86   : > { %5032 = vmatpush1.bf16.msra.mxu0 %v6613_v23  ;;  %5161 = vmatpush1.bf16.msra.mxu1 %v6615_v24  ;;  %v6741_v23 = vcombine.low %v664_v11, %v672_v12  ;;  %v6743_v24 = vcombine.low %v665_v13, %v673_v14  ;;  %v792_v11 = vld [vmem:[%s7577_s8 + $0x1080] sm:$0xff]  ;;  %v793_v14 = vld [vmem:[%s7577_s8 + $0x1088] sm:$0xff] }
  0x87   : > { %5033 = vmatprep.subr.bf16.mxu0 %v6630_v25  ;;  %5162 = vmatprep.subr.bf16.mxu1 %v6632_v26  ;;  %v6758_v25 = vcombine.high %v680_v19, %v688_v20  ;;  %v6760_v26 = vcombine.high %v681_v21, %v689_v22  ;;  %v800_v12 = vld [vmem:[%s7577_s8 + $0x10c0] sm:$0xff] }
  0x88   : > { %v7281_v13 = vld [vmem:[%s8721_s0 + $0x8] ss:$24 sps:$4 sm:$0xff]  }
  0x8a   : > { %5034 = vmatpush1.bf16.msra.mxu0 %v6629_v31  ;;  %5163 = vmatpush1.bf16.msra.mxu1 %v6631_v32  ;;  %v6757_v31 = vcombine.low %v680_v19, %v688_v20  ;;  %v6759_v32 = vcombine.low %v681_v21, %v689_v22  ;;  %v808_v20 = vld [vmem:[%s7577_s8 + $0x1100] sm:$0xff]  ;;  %v7282_v22 = vld [vmem:[%s8721_s0 + $0x14] ss:$24 sps:$4 sm:$0xff]  }
  0x8b   : > { %5035 = vmatprep.subr.bf16.mxu0 %v6646_v33  ;;  %5164 = vmatprep.subr.bf16.mxu1 %v6648_v34  ;;  %v6774_v33 = vcombine.high %v696_v27, %v704_v28  ;;  %v6776_v34 = vcombine.high %v697_v29, %v705_v30  ;;  %v816_v21 = vld [vmem:[%s7577_s8 + $0x1140] sm:$0xff] }
  0x8e   : > { %5036 = vmatpush1.bf16.msra.mxu0 %v6645_v39  ;;  %5165 = vmatpush1.bf16.msra.mxu1 %v6647_v40  ;;  %v6773_v39 = vcombine.low %v696_v27, %v704_v28  ;;  %v6775_v40 = vcombine.low %v697_v29, %v705_v30  ;;  %v6886_v27 = vcombine.high %v808_v20, %v816_v21  ;;  %v824_v29 = vld [vmem:[%s7577_s8 + $0x1180] sm:$0xff] }
  0x8f   : > { %5037 = vmatprep.subr.bf16.mxu0 %v6662_v41  ;;  %5166 = vmatprep.subr.bf16.mxu1 %v6664_v42  ;;  %v6790_v41 = vcombine.high %v712_v35, %v720_v36  ;;  %v6792_v42 = vcombine.high %v713_v37, %v721_v38  ;;  %v832_v30 = vld [vmem:[%s7577_s8 + $0x11c0] sm:$0xff] }
  0x92   : > { %5038 = vmatpush1.bf16.msra.mxu0 %v6661_v47  ;;  %5167 = vmatpush1.bf16.msra.mxu1 %v6663_v48  ;;  %v6789_v47 = vcombine.low %v712_v35, %v720_v36  ;;  %v6791_v48 = vcombine.low %v713_v37, %v721_v38  ;;  %v6902_v35 = vcombine.high %v824_v29, %v832_v30  ;;  %v840_v37 = vld [vmem:[%s7577_s8 + $0x1200] sm:$0xff] }
  0x93   : > { %5039 = vmatprep.subr.bf16.mxu0 %v6678_v49  ;;  %5168 = vmatprep.subr.bf16.mxu1 %v6680_v50  ;;  %v6806_v49 = vcombine.high %v728_v43, %v736_v44  ;;  %v6808_v50 = vcombine.high %v729_v45, %v737_v46  ;;  %v848_v38 = vld [vmem:[%s7577_s8 + $0x1240] sm:$0xff] }
  0x96   : > { %5040 = vmatpush1.bf16.msra.mxu0 %v6677_v55  ;;  %5169 = vmatpush1.bf16.msra.mxu1 %v6679_v56  ;;  %v6805_v55 = vcombine.low %v728_v43, %v736_v44  ;;  %v6807_v56 = vcombine.low %v729_v45, %v737_v46  ;;  %v6918_v43 = vcombine.high %v840_v37, %v848_v38  ;;  %v856_v45 = vld [vmem:[%s7577_s8 + $0x1280] sm:$0xff] }
  0x97   : > { %5041 = vmatprep.subr.bf16.mxu0 %v6694_v57  ;;  %5170 = vmatprep.subr.bf16.mxu1 %v6696_v58  ;;  %v6822_v57 = vcombine.high %v744_v51, %v752_v52  ;;  %v6824_v58 = vcombine.high %v745_v53, %v753_v54  ;;  %v864_v46 = vld [vmem:[%s7577_s8 + $0x12c0] sm:$0xff] }
  0x9a   : > { %5042 = vmatpush1.bf16.msra.mxu0 %v6693_v63  ;;  %5171 = vmatpush1.bf16.msra.mxu1 %v6695_v0  ;;  %v6821_v63 = vcombine.low %v744_v51, %v752_v52  ;;  %v6823_v0 = vcombine.low %v745_v53, %v753_v54  ;;  %v6934_v51 = vcombine.high %v856_v45, %v864_v46  ;;  %v872_v53 = vld [vmem:[%s7577_s8 + $0x1300] sm:$0xff] }
  0x9b   : > { %5043 = vmatprep.subr.bf16.mxu0 %v6710_v1  ;;  %5172 = vmatprep.subr.bf16.mxu1 %v6712_v2  ;;  %v6838_v1 = vcombine.high %v760_v59, %v768_v60  ;;  %v6840_v2 = vcombine.high %v761_v61, %v769_v62  ;;  %v880_v54 = vld [vmem:[%s7577_s8 + $0x1340] sm:$0xff] }
  0x9e   : > { %5044 = vmatpush1.bf16.msra.mxu0 %v6709_v7  ;;  %5173 = vmatpush1.bf16.msra.mxu1 %v6711_v8  ;;  %v6837_v7 = vcombine.low %v760_v59, %v768_v60  ;;  %v6839_v8 = vcombine.low %v761_v61, %v769_v62  ;;  %v6950_v59 = vcombine.high %v872_v53, %v880_v54  ;;  %v888_v61 = vld [vmem:[%s7577_s8 + $0x1380] sm:$0xff] }
  0x9f   : > { %5045 = vmatprep.subr.bf16.mxu0 %v6726_v9  ;;  %5174 = vmatprep.subr.bf16.mxu1 %v6728_v10  ;;  %v6854_v9 = vcombine.high %v776_v3, %v784_v4  ;;  %v6856_v10 = vcombine.high %v777_v5, %v785_v6  ;;  %v896_v62 = vld [vmem:[%s7577_s8 + $0x13c0] sm:$0xff] }
  0xa2   : > { %5046 = vmatpush1.bf16.msra.mxu0 %v6725_v15  ;;  %5175 = vmatpush1.bf16.msra.mxu1 %v6727_v16  ;;  %v801_v15 = vld [vmem:[%s7577_s8 + $0x10c8] sm:$0xff]  ;;  %v6853_v16 = vcombine.low %v776_v3, %v784_v4  ;;  %v6966_v3 = vcombine.high %v888_v61, %v896_v62 }
  0xa3   : > { %5047 = vmatprep.subr.bf16.mxu0 %v6742_v17  ;;  %5176 = vmatprep.subr.bf16.mxu1 %v6744_v18  ;;  %v6855_v17 = vcombine.low %v777_v5, %v785_v6  ;;  %v6870_v18 = vcombine.high %v792_v11, %v800_v12  ;;  %v6872_v19 = vcombine.high %v793_v14, %v801_v15  ;;  %v904_v5 = vld [vmem:[%s7577_s8 + $0x1400] sm:$0xff] }
  0xa4   : > { %v912_v6 = vld [vmem:[%s7577_s8 + $0x1440] sm:$0xff] }
  0xa6   : > { %5048 = vmatpush1.bf16.msra.mxu0 %v6741_v23  ;;  %5177 = vmatpush1.bf16.msra.mxu1 %v6743_v24  ;;  %v809_v23 = vld [vmem:[%s7577_s8 + $0x1108] sm:$0xff] }
  0xa7   : > { %5049 = vmatprep.subr.bf16.mxu0 %v6758_v25  ;;  %5178 = vmatprep.subr.bf16.mxu1 %v6760_v26  ;;  %v817_v24 = vld [vmem:[%s7577_s8 + $0x1148] sm:$0xff]  ;;  %v6869_v25 = vcombine.low %v792_v11, %v800_v12  ;;  %v6871_v26 = vcombine.low %v793_v14, %v801_v15  ;;  %v6982_v11 = vcombine.high %v904_v5, %v912_v6  ;;  %v928_v14 = vld [vmem:[%s7577_s8 + $0x14c0] sm:$0xff] }
  0xa8   : > { %v6888_v28 = vcombine.high %v809_v23, %v817_v24  ;;  %v921_v15 = vld [vmem:[%s7577_s8 + $0x1488] sm:$0xff] }
  0xaa   : > { %5050 = vmatpush1.bf16.msra.mxu0 %v6757_v31  ;;  %5179 = vmatpush1.bf16.msra.mxu1 %v6759_v32  ;;  %v825_v31 = vld [vmem:[%s7577_s8 + $0x1188] sm:$0xff] }
  0xab   : > { %5051 = vmatprep.subr.bf16.mxu0 %v6774_v33  ;;  %5180 = vmatprep.subr.bf16.mxu1 %v6776_v34  ;;  %v833_v32 = vld [vmem:[%s7577_s8 + $0x11c8] sm:$0xff]  ;;  %v6885_v33 = vcombine.low %v808_v20, %v816_v21  ;;  %v6887_v34 = vcombine.low %v809_v23, %v817_v24  ;;  %v936_v21 = vld [vmem:[%s7577_s8 + $0x1500] sm:$0xff] }
  0xac   : > { %v6904_v36 = vcombine.high %v825_v31, %v833_v32  ;;  %v937_v23 = vld [vmem:[%s7577_s8 + $0x1508] sm:$0xff] }
  0xad   : > { %v945_v24 = vld [vmem:[%s7577_s8 + $0x1548] sm:$0xff] }
  0xae   : > { %5052 = vmatpush1.bf16.msra.mxu0 %v6773_v39  ;;  %5181 = vmatpush1.bf16.msra.mxu1 %v6775_v40  ;;  %v841_v39 = vld [vmem:[%s7577_s8 + $0x1208] sm:$0xff] }
  0xaf   : > { %5053 = vmatprep.subr.bf16.mxu0 %v6790_v41  ;;  %5182 = vmatprep.subr.bf16.mxu1 %v6792_v42  ;;  %v849_v40 = vld [vmem:[%s7577_s8 + $0x1248] sm:$0xff]  ;;  %v6901_v41 = vcombine.low %v824_v29, %v832_v30  ;;  %v6903_v42 = vcombine.low %v825_v31, %v833_v32  ;;  %v952_v29 = vld [vmem:[%s7577_s8 + $0x1580] sm:$0xff] }
  0xb0   : > { %v6920_v44 = vcombine.high %v841_v39, %v849_v40  ;;  %v960_v30 = vld [vmem:[%s7577_s8 + $0x15c0] sm:$0xff]  ;;  %v953_v31 = vld [vmem:[%s7577_s8 + $0x1588] sm:$0xff] }
  0xb1   : > { %v961_v32 = vld [vmem:[%s7577_s8 + $0x15c8] sm:$0xff] }
  0xb2   : > { %5054 = vmatpush1.bf16.msra.mxu0 %v6789_v47  ;;  %5183 = vmatpush1.bf16.msra.mxu1 %v6791_v48  ;;  %v857_v47 = vld [vmem:[%s7577_s8 + $0x1288] sm:$0xff] }
  0xb3   : > { %5055 = vmatprep.subr.bf16.mxu0 %v6806_v49  ;;  %5184 = vmatprep.subr.bf16.mxu1 %v6808_v50  ;;  %v865_v48 = vld [vmem:[%s7577_s8 + $0x12c8] sm:$0xff]  ;;  %v6917_v49 = vcombine.low %v840_v37, %v848_v38  ;;  %v6919_v50 = vcombine.low %v841_v39, %v849_v40  ;;  %v968_v37 = vld [vmem:[%s7577_s8 + $0x1600] sm:$0xff] }
  0xb4   : > { %v6936_v52 = vcombine.high %v857_v47, %v865_v48  ;;  %v976_v38 = vld [vmem:[%s7577_s8 + $0x1640] sm:$0xff]  ;;  %v969_v39 = vld [vmem:[%s7577_s8 + $0x1608] sm:$0xff] }
  0xb5   : > { %v977_v40 = vld [vmem:[%s7577_s8 + $0x1648] sm:$0xff] }
  0xb6   : > { %5056 = vmatpush1.bf16.msra.mxu0 %v6805_v55  ;;  %5185 = vmatpush1.bf16.msra.mxu1 %v6807_v56  ;;  %v873_v55 = vld [vmem:[%s7577_s8 + $0x1308] sm:$0xff] }
  0xb7   : > { %5057 = vmatprep.subr.bf16.mxu0 %v6822_v57  ;;  %5186 = vmatprep.subr.bf16.mxu1 %v6824_v58  ;;  %v881_v56 = vld [vmem:[%s7577_s8 + $0x1348] sm:$0xff]  ;;  %v6933_v57 = vcombine.low %v856_v45, %v864_v46  ;;  %v6935_v58 = vcombine.low %v857_v47, %v865_v48  ;;  %v984_v45 = vld [vmem:[%s7577_s8 + $0x1680] sm:$0xff] }
  0xb8   : > { %v6952_v60 = vcombine.high %v873_v55, %v881_v56  ;;  %v992_v46 = vld [vmem:[%s7577_s8 + $0x16c0] sm:$0xff]  ;;  %v985_v47 = vld [vmem:[%s7577_s8 + $0x1688] sm:$0xff] }
  0xb9   : > { %v993_v48 = vld [vmem:[%s7577_s8 + $0x16c8] sm:$0xff] }
  0xba   : > { %5058 = vmatpush1.bf16.msra.mxu0 %v6821_v63  ;;  %5187 = vmatpush1.bf16.msra.mxu1 %v6823_v0  ;;  %v889_v63 = vld [vmem:[%s7577_s8 + $0x1388] sm:$0xff] }
  0xbb   : > { %5059 = vmatprep.subr.bf16.mxu0 %v6838_v1  ;;  %5188 = vmatprep.subr.bf16.mxu1 %v6840_v2  ;;  %v897_v0 = vld [vmem:[%s7577_s8 + $0x13c8] sm:$0xff]  ;;  %v6949_v1 = vcombine.low %v872_v53, %v880_v54  ;;  %v6951_v2 = vcombine.low %v873_v55, %v881_v56  ;;  %v1000_v53 = vld [vmem:[%s7577_s8 + $0x1700] sm:$0xff] }
  0xbc   : > { %v6968_v4 = vcombine.high %v889_v63, %v897_v0  ;;  %v1008_v54 = vld [vmem:[%s7577_s8 + $0x1740] sm:$0xff]  ;;  %v1001_v55 = vld [vmem:[%s7577_s8 + $0x1708] sm:$0xff] }
  0xbd   : > { %v1009_v56 = vld [vmem:[%s7577_s8 + $0x1748] sm:$0xff] }
  0xbe   : > { %5060 = vmatpush1.bf16.msra.mxu0 %v6837_v7  ;;  %5189 = vmatpush1.bf16.msra.mxu1 %v6839_v8  ;;  %v905_v7 = vld [vmem:[%s7577_s8 + $0x1408] sm:$0xff] }
  0xbf   : > { %5072 = vmatprep.subr.bf16.mxu0 %v6854_v9  ;;  %5201 = vmatprep.subr.bf16.mxu1 %v6856_v10  ;;  %v913_v8 = vld [vmem:[%s7577_s8 + $0x1448] sm:$0xff]  ;;  %v6965_v9 = vcombine.low %v888_v61, %v896_v62  ;;  %v6967_v10 = vcombine.low %v889_v63, %v897_v0  ;;  %v1016_v61 = vld [vmem:[%s7577_s8 + $0x1780] sm:$0xff] }
  0xc0   : > { %v6984_v12 = vcombine.high %v905_v7, %v913_v8  ;;  %v1024_v62 = vld [vmem:[%s7577_s8 + $0x17c0] sm:$0xff]  ;;  %v1017_v63 = vld [vmem:[%s7577_s8 + $0x1788] sm:$0xff] }
  0xc1   : > { %5062 = vmatmul.mubr.bf16.vlgmr.msra.gmra.mrb[0].mxu0 %v7281_v13  ;;  %5191 = vmatmul.mubr.bf16.vlgmr.msra.gmra.mrb[0].mxu1 %v7281_v13  ;;  %v920_v13 = vld [vmem:[%s7577_s8 + $0x1480] sm:$0xff]  ;;  %v1025_v0 = vld [vmem:[%s7577_s8 + $0x17c8] sm:$0xff] }
  0xc2   : > { %5073 = vmatpush1.bf16.msra.mxu0 %v6853_v16  ;;  %5202 = vmatpush1.bf16.msra.mxu1 %v6855_v17  ;;  %v929_v16 = vld [vmem:[%s7577_s8 + $0x14c8] sm:$0xff]  ;;  %v6981_v17 = vcombine.low %v904_v5, %v912_v6  ;;  %v266_v5 = vld [vmem:[%s7577_s8 + $0x10] sm:$0xff] }
  0xc3   : > { %5074 = vmatprep.subr.bf16.mxu0 %v6870_v18  ;;  %5203 = vmatprep.subr.bf16.mxu1 %v6872_v19  ;;  %v6983_v18 = vcombine.low %v905_v7, %v913_v8  ;;  %v6998_v19 = vcombine.high %v920_v13, %v928_v14  ;;  %v7000_v20 = vcombine.high %v921_v15, %v929_v16  ;;  %v274_v6 = vld [vmem:[%s7577_s8 + $0x50] sm:$0xff]  ;;  %v267_v7 = vld [vmem:[%s7577_s8 + $0x18] sm:$0xff] }
  0xc4   : > { %5104 = vmatprep.mubr.bf16.mxu0 %v7282_v22  ;;  %5233 = vmatprep.mubr.bf16.mxu1 %v7282_v22  ;;  %v944_v22 = vld [vmem:[%s7577_s8 + $0x1540] sm:$0xff]  ;;  %v275_v8 = vld [vmem:[%s7577_s8 + $0x58] sm:$0xff] }
  0xc6   : > { %5075 = vmatpush1.bf16.msra.mxu0 %v6869_v25  ;;  %5204 = vmatpush1.bf16.msra.mxu1 %v6871_v26  ;;  %v6997_v25 = vcombine.low %v920_v13, %v928_v14  ;;  %v6999_v26 = vcombine.low %v921_v15, %v929_v16  ;;  %v282_v13 = vld [vmem:[%s7577_s8 + $0x90] sm:$0xff]  ;;  %v283_v16 = vld [vmem:[%s7577_s8 + $0x98] sm:$0xff] }
  0xc7   : > { %5076 = vmatprep.subr.bf16.mxu0 %v6886_v27  ;;  %5205 = vmatprep.subr.bf16.mxu1 %v6888_v28  ;;  %v7014_v27 = vcombine.high %v936_v21, %v944_v22  ;;  %v7016_v28 = vcombine.high %v937_v23, %v945_v24  ;;  %v290_v14 = vld [vmem:[%s7577_s8 + $0xd0] sm:$0xff] }
  0xc8   : > { %v7284_v15 = vld [vmem:[%s8721_s0 + $0x10] ss:$24 sps:$4 sm:$0xff]  }
  0xca   : > { %5077 = vmatpush1.bf16.msra.mxu0 %v6885_v33  ;;  %5206 = vmatpush1.bf16.msra.mxu1 %v6887_v34  ;;  %v7013_v33 = vcombine.low %v936_v21, %v944_v22  ;;  %v7015_v34 = vcombine.low %v937_v23, %v945_v24  ;;  %v298_v22 = vld [vmem:[%s7577_s8 + $0x110] sm:$0xff]  ;;  %v299_v24 = vld [vmem:[%s7577_s8 + $0x118] sm:$0xff] }
  0xcb   : > { %5078 = vmatprep.subr.bf16.mxu0 %v6902_v35  ;;  %5207 = vmatprep.subr.bf16.mxu1 %v6904_v36  ;;  %v7030_v35 = vcombine.high %v952_v29, %v960_v30  ;;  %v7032_v36 = vcombine.high %v953_v31, %v961_v32  ;;  %v306_v23 = vld [vmem:[%s7577_s8 + $0x150] sm:$0xff] }
  0xce   : > { %5079 = vmatpush1.bf16.msra.mxu0 %v6901_v41  ;;  %5208 = vmatpush1.bf16.msra.mxu1 %v6903_v42  ;;  %v7029_v41 = vcombine.low %v952_v29, %v960_v30  ;;  %v7031_v42 = vcombine.low %v953_v31, %v961_v32  ;;  %v314_v30 = vld [vmem:[%s7577_s8 + $0x190] sm:$0xff]  ;;  %v7353_v32 = vld [vmem:[%s8721_s0 + $0x4] ss:$24 sps:$4 sm:$0xff]  }
  0xcf   : > { %5080 = vmatprep.subr.bf16.mxu0 %v6918_v43  ;;  %5209 = vmatprep.subr.bf16.mxu1 %v6920_v44  ;;  %v7046_v43 = vcombine.high %v968_v37, %v976_v38  ;;  %v7048_v44 = vcombine.high %v969_v39, %v977_v40  ;;  %v322_v31 = vld [vmem:[%s7577_s8 + $0x1d0] sm:$0xff] }
  0xd2   : > { %5081 = vmatpush1.bf16.msra.mxu0 %v6917_v49  ;;  %5210 = vmatpush1.bf16.msra.mxu1 %v6919_v50  ;;  %v7045_v49 = vcombine.low %v968_v37, %v976_v38  ;;  %v7047_v50 = vcombine.low %v969_v39, %v977_v40  ;;  %v6394_v37 = vcombine.high %v314_v30, %v322_v31  ;;  %v330_v39 = vld [vmem:[%s7577_s8 + $0x210] sm:$0xff] }
  0xd3   : > { %5082 = vmatprep.subr.bf16.mxu0 %v6934_v51  ;;  %5211 = vmatprep.subr.bf16.mxu1 %v6936_v52  ;;  %v7062_v51 = vcombine.high %v984_v45, %v992_v46  ;;  %v7064_v52 = vcombine.high %v985_v47, %v993_v48  ;;  %v338_v40 = vld [vmem:[%s7577_s8 + $0x250] sm:$0xff] }
  0xd6   : > { %5083 = vmatpush1.bf16.msra.mxu0 %v6933_v57  ;;  %5212 = vmatpush1.bf16.msra.mxu1 %v6935_v58  ;;  %v7061_v57 = vcombine.low %v984_v45, %v992_v46  ;;  %v7063_v58 = vcombine.low %v985_v47, %v993_v48  ;;  %v6410_v45 = vcombine.high %v330_v39, %v338_v40  ;;  %v346_v47 = vld [vmem:[%s7577_s8 + $0x290] sm:$0xff] }
  0xd7   : > { %5084 = vmatprep.subr.bf16.mxu0 %v6950_v59  ;;  %5213 = vmatprep.subr.bf16.mxu1 %v6952_v60  ;;  %v7078_v59 = vcombine.high %v1000_v53, %v1008_v54  ;;  %v7080_v60 = vcombine.high %v1001_v55, %v1009_v56  ;;  %v354_v48 = vld [vmem:[%s7577_s8 + $0x2d0] sm:$0xff] }
  0xda   : > { %5085 = vmatpush1.bf16.msra.mxu0 %v6949_v1  ;;  %5214 = vmatpush1.bf16.msra.mxu1 %v6951_v2  ;;  %v7077_v1 = vcombine.low %v1000_v53, %v1008_v54  ;;  %v7079_v2 = vcombine.low %v1001_v55, %v1009_v56  ;;  %v6426_v53 = vcombine.high %v346_v47, %v354_v48  ;;  %v362_v55 = vld [vmem:[%s7577_s8 + $0x310] sm:$0xff] }
  0xdb   : > { %5086 = vmatprep.subr.bf16.mxu0 %v6966_v3  ;;  %5215 = vmatprep.subr.bf16.mxu1 %v6968_v4  ;;  %v7094_v3 = vcombine.high %v1016_v61, %v1024_v62  ;;  %v7096_v4 = vcombine.high %v1017_v63, %v1025_v0  ;;  %v370_v56 = vld [vmem:[%s7577_s8 + $0x350] sm:$0xff] }
  0xde   : > { %5087 = vmatpush1.bf16.msra.mxu0 %v6965_v9  ;;  %5216 = vmatpush1.bf16.msra.mxu1 %v6967_v10  ;;  %v7093_v9 = vcombine.low %v1016_v61, %v1024_v62  ;;  %v7095_v10 = vcombine.low %v1017_v63, %v1025_v0  ;;  %v6442_v61 = vcombine.high %v362_v55, %v370_v56  ;;  %v378_v63 = vld [vmem:[%s7577_s8 + $0x390] sm:$0xff] }
  0xdf   : > { %5088 = vmatprep.subr.bf16.mxu0 %v6982_v11  ;;  %5217 = vmatprep.subr.bf16.mxu1 %v6984_v12  ;;  %v6346_v11 = vcombine.high %v266_v5, %v274_v6  ;;  %v6348_v12 = vcombine.high %v267_v7, %v275_v8  ;;  %v386_v0 = vld [vmem:[%s7577_s8 + $0x3d0] sm:$0xff] }
  0xe2   : > { %5089 = vmatpush1.bf16.msra.mxu0 %v6981_v17  ;;  %5218 = vmatpush1.bf16.msra.mxu1 %v6983_v18  ;;  %v291_v17 = vld [vmem:[%s7577_s8 + $0xd8] sm:$0xff]  ;;  %v6345_v18 = vcombine.low %v266_v5, %v274_v6  ;;  %v6458_v5 = vcombine.high %v378_v63, %v386_v0 }
  0xe3   : > { %5090 = vmatprep.subr.bf16.mxu0 %v6998_v19  ;;  %5219 = vmatprep.subr.bf16.mxu1 %v7000_v20  ;;  %v6347_v19 = vcombine.low %v267_v7, %v275_v8  ;;  %v6362_v20 = vcombine.high %v282_v13, %v290_v14  ;;  %v6364_v21 = vcombine.high %v283_v16, %v291_v17  ;;  %v394_v7 = vld [vmem:[%s7577_s8 + $0x410] sm:$0xff] }
  0xe4   : > { %v402_v8 = vld [vmem:[%s7577_s8 + $0x450] sm:$0xff] }
  0xe6   : > { %5091 = vmatpush1.bf16.msra.mxu0 %v6997_v25  ;;  %5220 = vmatpush1.bf16.msra.mxu1 %v6999_v26  ;;  %v307_v25 = vld [vmem:[%s7577_s8 + $0x158] sm:$0xff]  ;;  %v6361_v26 = vcombine.low %v282_v13, %v290_v14  ;;  %v6474_v13 = vcombine.high %v394_v7, %v402_v8 }
  0xe7   : > { %5092 = vmatprep.subr.bf16.mxu0 %v7014_v27  ;;  %5221 = vmatprep.subr.bf16.mxu1 %v7016_v28  ;;  %v6363_v27 = vcombine.low %v283_v16, %v291_v17  ;;  %v6378_v28 = vcombine.high %v298_v22, %v306_v23  ;;  %v6380_v29 = vcombine.high %v299_v24, %v307_v25  ;;  %v418_v16 = vld [vmem:[%s7577_s8 + $0x4d0] sm:$0xff]  ;;  %v411_v17 = vld [vmem:[%s7577_s8 + $0x498] sm:$0xff] }
  0xea   : > { %5093 = vmatpush1.bf16.msra.mxu0 %v7013_v33  ;;  %5222 = vmatpush1.bf16.msra.mxu1 %v7015_v34  ;;  %v315_v33 = vld [vmem:[%s7577_s8 + $0x198] sm:$0xff] }
  0xeb   : > { %5094 = vmatprep.subr.bf16.mxu0 %v7030_v35  ;;  %5223 = vmatprep.subr.bf16.mxu1 %v7032_v36  ;;  %v323_v34 = vld [vmem:[%s7577_s8 + $0x1d8] sm:$0xff]  ;;  %v6377_v35 = vcombine.low %v298_v22, %v306_v23  ;;  %v6379_v36 = vcombine.low %v299_v24, %v307_v25  ;;  %v426_v23 = vld [vmem:[%s7577_s8 + $0x510] sm:$0xff] }
  0xec   : > { %v6396_v38 = vcombine.high %v315_v33, %v323_v34  ;;  %v434_v24 = vld [vmem:[%s7577_s8 + $0x550] sm:$0xff]  ;;  %v427_v25 = vld [vmem:[%s7577_s8 + $0x518] sm:$0xff] }
  0xee   : > { %5095 = vmatpush1.bf16.msra.mxu0 %v7029_v41  ;;  %5224 = vmatpush1.bf16.msra.mxu1 %v7031_v42  ;;  %v331_v41 = vld [vmem:[%s7577_s8 + $0x218] sm:$0xff] }
  0xef   : > { %5096 = vmatprep.subr.bf16.mxu0 %v7046_v43  ;;  %5225 = vmatprep.subr.bf16.mxu1 %v7048_v44  ;;  %v339_v42 = vld [vmem:[%s7577_s8 + $0x258] sm:$0xff]  ;;  %v6393_v43 = vcombine.low %v314_v30, %v322_v31  ;;  %v6395_v44 = vcombine.low %v315_v33, %v323_v34  ;;  %v442_v31 = vld [vmem:[%s7577_s8 + $0x590] sm:$0xff] }
  0xf0   : > { %v6412_v46 = vcombine.high %v331_v41, %v339_v42  ;;  %v443_v33 = vld [vmem:[%s7577_s8 + $0x598] sm:$0xff] }
  0xf1   : > { %v451_v34 = vld [vmem:[%s7577_s8 + $0x5d8] sm:$0xff] }
  0xf2   : > { %5097 = vmatpush1.bf16.msra.mxu0 %v7045_v49  ;;  %5226 = vmatpush1.bf16.msra.mxu1 %v7047_v50  ;;  %v347_v49 = vld [vmem:[%s7577_s8 + $0x298] sm:$0xff] }
  0xf3   : > { %5098 = vmatprep.subr.bf16.mxu0 %v7062_v51  ;;  %5227 = vmatprep.subr.bf16.mxu1 %v7064_v52  ;;  %v355_v50 = vld [vmem:[%s7577_s8 + $0x2d8] sm:$0xff]  ;;  %v6409_v51 = vcombine.low %v330_v39, %v338_v40  ;;  %v6411_v52 = vcombine.low %v331_v41, %v339_v42  ;;  %v458_v39 = vld [vmem:[%s7577_s8 + $0x610] sm:$0xff] }
  0xf4   : > { %v6428_v54 = vcombine.high %v347_v49, %v355_v50  ;;  %v466_v40 = vld [vmem:[%s7577_s8 + $0x650] sm:$0xff]  ;;  %v459_v41 = vld [vmem:[%s7577_s8 + $0x618] sm:$0xff] }
  0xf5   : > { %v467_v42 = vld [vmem:[%s7577_s8 + $0x658] sm:$0xff] }
  0xf6   : > { %5099 = vmatpush1.bf16.msra.mxu0 %v7061_v57  ;;  %5228 = vmatpush1.bf16.msra.mxu1 %v7063_v58  ;;  %v363_v57 = vld [vmem:[%s7577_s8 + $0x318] sm:$0xff] }
  0xf7   : > { %5100 = vmatprep.subr.bf16.mxu0 %v7078_v59  ;;  %5229 = vmatprep.subr.bf16.mxu1 %v7080_v60  ;;  %v371_v58 = vld [vmem:[%s7577_s8 + $0x358] sm:$0xff]  ;;  %v6425_v59 = vcombine.low %v346_v47, %v354_v48  ;;  %v6427_v60 = vcombine.low %v347_v49, %v355_v50  ;;  %v474_v47 = vld [vmem:[%s7577_s8 + $0x690] sm:$0xff] }
  0xf8   : > { %v6444_v62 = vcombine.high %v363_v57, %v371_v58  ;;  %v482_v48 = vld [vmem:[%s7577_s8 + $0x6d0] sm:$0xff]  ;;  %v475_v49 = vld [vmem:[%s7577_s8 + $0x698] sm:$0xff] }
  0xf9   : > { %v483_v50 = vld [vmem:[%s7577_s8 + $0x6d8] sm:$0xff] }
  0xfa   : > { %5101 = vmatpush1.bf16.msra.mxu0 %v7077_v1  ;;  %5230 = vmatpush1.bf16.msra.mxu1 %v7079_v2  ;;  %v379_v1 = vld [vmem:[%s7577_s8 + $0x398] sm:$0xff] }
  0xfb   : > { %5102 = vmatprep.subr.bf16.mxu0 %v7094_v3  ;;  %5231 = vmatprep.subr.bf16.mxu1 %v7096_v4  ;;  %v387_v2 = vld [vmem:[%s7577_s8 + $0x3d8] sm:$0xff]  ;;  %v6441_v3 = vcombine.low %v362_v55, %v370_v56  ;;  %v6443_v4 = vcombine.low %v363_v57, %v371_v58  ;;  %v490_v55 = vld [vmem:[%s7577_s8 + $0x710] sm:$0xff] }
  0xfc   : > { %v6460_v6 = vcombine.high %v379_v1, %v387_v2  ;;  %v498_v56 = vld [vmem:[%s7577_s8 + $0x750] sm:$0xff]  ;;  %v491_v57 = vld [vmem:[%s7577_s8 + $0x718] sm:$0xff] }
  0xfd   : > { %v499_v58 = vld [vmem:[%s7577_s8 + $0x758] sm:$0xff] }
  0xfe   : > { %5103 = vmatpush1.bf16.msra.mxu0 %v7093_v9  ;;  %5232 = vmatpush1.bf16.msra.mxu1 %v7095_v10  ;;  %v395_v9 = vld [vmem:[%s7577_s8 + $0x418] sm:$0xff] }
  0xff   : > { %5244 = vmatprep.subr.bf16.mxu0 %v6346_v11  ;;  %5373 = vmatprep.subr.bf16.mxu1 %v6348_v12  ;;  %v403_v10 = vld [vmem:[%s7577_s8 + $0x458] sm:$0xff]  ;;  %v6457_v11 = vcombine.low %v378_v63, %v386_v0  ;;  %v6459_v12 = vcombine.low %v379_v1, %v387_v2  ;;  %v506_v63 = vld [vmem:[%s7577_s8 + $0x790] sm:$0xff] }
 0x100   : > { %v6476_v14 = vcombine.high %v395_v9, %v403_v10  ;;  %v514_v0 = vld [vmem:[%s7577_s8 + $0x7d0] sm:$0xff]  ;;  %v507_v1 = vld [vmem:[%s7577_s8 + $0x798] sm:$0xff] }
 0x101   : > { %5105 = vmatmul.mubr.bf16.vlgmr.msra.gmra.mrb[0].mxu0 %v7284_v15  ;;  %5234 = vmatmul.mubr.bf16.vlgmr.msra.gmra.mrb[0].mxu1 %v7284_v15  ;;  %v410_v15 = vld [vmem:[%s7577_s8 + $0x490] sm:$0xff]  ;;  %v515_v2 = vld [vmem:[%s7577_s8 + $0x7d8] sm:$0xff] }
 0x102   : > { %5245 = vmatpush1.bf16.msra.mxu0 %v6345_v18  ;;  %5374 = vmatpush1.bf16.msra.mxu1 %v6347_v19  ;;  %v419_v18 = vld [vmem:[%s7577_s8 + $0x4d8] sm:$0xff]  ;;  %v6473_v19 = vcombine.low %v394_v7, %v402_v8  ;;  %v522_v7 = vld [vmem:[%s7577_s8 + $0x810] sm:$0xff] }
 0x103   : > { %5246 = vmatprep.subr.bf16.mxu0 %v6362_v20  ;;  %5375 = vmatprep.subr.bf16.mxu1 %v6364_v21  ;;  %v6475_v20 = vcombine.low %v395_v9, %v403_v10  ;;  %v6490_v21 = vcombine.high %v410_v15, %v418_v16  ;;  %v6492_v22 = vcombine.high %v411_v17, %v419_v18  ;;  %v530_v8 = vld [vmem:[%s7577_s8 + $0x850] sm:$0xff]  ;;  %v523_v9 = vld [vmem:[%s7577_s8 + $0x818] sm:$0xff] }
 0x104   : > { %5276 = vmatprep.mubr.bf16.mxu0 %v7353_v32  ;;  %5405 = vmatprep.mubr.bf16.mxu1 %v7353_v32  ;;  %v450_v32 = vld [vmem:[%s7577_s8 + $0x5d0] sm:$0xff]  ;;  %v531_v10 = vld [vmem:[%s7577_s8 + $0x858] sm:$0xff] }
 0x106   : > { %5247 = vmatpush1.bf16.msra.mxu0 %v6361_v26  ;;  %5376 = vmatpush1.bf16.msra.mxu1 %v6363_v27  ;;  %v435_v26 = vld [vmem:[%s7577_s8 + $0x558] sm:$0xff]  ;;  %v6489_v27 = vcombine.low %v410_v15, %v418_v16  ;;  %v538_v15 = vld [vmem:[%s7577_s8 + $0x890] sm:$0xff] }
 0x107   : > { %5248 = vmatprep.subr.bf16.mxu0 %v6378_v28  ;;  %5377 = vmatprep.subr.bf16.mxu1 %v6380_v29  ;;  %v6491_v28 = vcombine.low %v411_v17, %v419_v18  ;;  %v6506_v29 = vcombine.high %v426_v23, %v434_v24  ;;  %v6508_v30 = vcombine.high %v427_v25, %v435_v26  ;;  %v546_v16 = vld [vmem:[%s7577_s8 + $0x8d0] sm:$0xff]  ;;  %v539_v17 = vld [vmem:[%s7577_s8 + $0x898] sm:$0xff] }
 0x108   : > { %v547_v18 = vld [vmem:[%s7577_s8 + $0x8d8] sm:$0xff] }
 0x10a   : > { %5249 = vmatpush1.bf16.msra.mxu0 %v6377_v35  ;;  %5378 = vmatpush1.bf16.msra.mxu1 %v6379_v36  ;;  %v6505_v35 = vcombine.low %v426_v23, %v434_v24  ;;  %v6507_v36 = vcombine.low %v427_v25, %v435_v26  ;;  %v554_v23 = vld [vmem:[%s7577_s8 + $0x910] sm:$0xff]  ;;  %v7354_v25 = vld [vmem:[%s8721_s0] ss:$24 sps:$4 sm:$0xff]  }
 0x10b   : > { %5250 = vmatprep.subr.bf16.mxu0 %v6394_v37  ;;  %5379 = vmatprep.subr.bf16.mxu1 %v6396_v38  ;;  %v6522_v37 = vcombine.high %v442_v31, %v450_v32  ;;  %v6524_v38 = vcombine.high %v443_v33, %v451_v34  ;;  %v562_v24 = vld [vmem:[%s7577_s8 + $0x950] sm:$0xff]  ;;  %v555_v26 = vld [vmem:[%s7577_s8 + $0x918] sm:$0xff] }
 0x10e   : > { %5251 = vmatpush1.bf16.msra.mxu0 %v6393_v43  ;;  %5380 = vmatpush1.bf16.msra.mxu1 %v6395_v44  ;;  %v6521_v43 = vcombine.low %v442_v31, %v450_v32  ;;  %v6523_v44 = vcombine.low %v443_v33, %v451_v34  ;;  %v570_v32 = vld [vmem:[%s7577_s8 + $0x990] sm:$0xff]  ;;  %v7355_v34 = vld [vmem:[%s8721_s0 + $0xc] ss:$24 sps:$4 sm:$0xff]  }
 0x10f   : > { %5252 = vmatprep.subr.bf16.mxu0 %v6410_v45  ;;  %5381 = vmatprep.subr.bf16.mxu1 %v6412_v46  ;;  %v6538_v45 = vcombine.high %v458_v39, %v466_v40  ;;  %v6540_v46 = vcombine.high %v459_v41, %v467_v42  ;;  %v578_v33 = vld [vmem:[%s7577_s8 + $0x9d0] sm:$0xff] }
 0x112   : > { %5253 = vmatpush1.bf16.msra.mxu0 %v6409_v51  ;;  %5382 = vmatpush1.bf16.msra.mxu1 %v6411_v52  ;;  %v6537_v51 = vcombine.low %v458_v39, %v466_v40  ;;  %v6539_v52 = vcombine.low %v459_v41, %v467_v42  ;;  %v6650_v39 = vcombine.high %v570_v32, %v578_v33  ;;  %v586_v41 = vld [vmem:[%s7577_s8 + $0xa10] sm:$0xff] }
 0x113   : > { %5254 = vmatprep.subr.bf16.mxu0 %v6426_v53  ;;  %5383 = vmatprep.subr.bf16.mxu1 %v6428_v54  ;;  %v6554_v53 = vcombine.high %v474_v47, %v482_v48  ;;  %v6556_v54 = vcombine.high %v475_v49, %v483_v50  ;;  %v594_v42 = vld [vmem:[%s7577_s8 + $0xa50] sm:$0xff] }
 0x116   : > { %5255 = vmatpush1.bf16.msra.mxu0 %v6425_v59  ;;  %5384 = vmatpush1.bf16.msra.mxu1 %v6427_v60  ;;  %v6553_v59 = vcombine.low %v474_v47, %v482_v48  ;;  %v6555_v60 = vcombine.low %v475_v49, %v483_v50  ;;  %v6666_v47 = vcombine.high %v586_v41, %v594_v42  ;;  %v602_v49 = vld [vmem:[%s7577_s8 + $0xa90] sm:$0xff] }
 0x117   : > { %5256 = vmatprep.subr.bf16.mxu0 %v6442_v61  ;;  %5385 = vmatprep.subr.bf16.mxu1 %v6444_v62  ;;  %v6570_v61 = vcombine.high %v490_v55, %v498_v56  ;;  %v6572_v62 = vcombine.high %v491_v57, %v499_v58  ;;  %v610_v50 = vld [vmem:[%s7577_s8 + $0xad0] sm:$0xff] }
 0x11a   : > { %5257 = vmatpush1.bf16.msra.mxu0 %v6441_v3  ;;  %5386 = vmatpush1.bf16.msra.mxu1 %v6443_v4  ;;  %v6569_v3 = vcombine.low %v490_v55, %v498_v56  ;;  %v6571_v4 = vcombine.low %v491_v57, %v499_v58  ;;  %v6682_v55 = vcombine.high %v602_v49, %v610_v50  ;;  %v618_v57 = vld [vmem:[%s7577_s8 + $0xb10] sm:$0xff] }
 0x11b   : > { %5258 = vmatprep.subr.bf16.mxu0 %v6458_v5  ;;  %5387 = vmatprep.subr.bf16.mxu1 %v6460_v6  ;;  %v6586_v5 = vcombine.high %v506_v63, %v514_v0  ;;  %v6588_v6 = vcombine.high %v507_v1, %v515_v2  ;;  %v626_v58 = vld [vmem:[%s7577_s8 + $0xb50] sm:$0xff] }
 0x11e   : > { %5259 = vmatpush1.bf16.msra.mxu0 %v6457_v11  ;;  %5388 = vmatpush1.bf16.msra.mxu1 %v6459_v12  ;;  %v6585_v11 = vcombine.low %v506_v63, %v514_v0  ;;  %v6587_v12 = vcombine.low %v507_v1, %v515_v2  ;;  %v6698_v63 = vcombine.high %v618_v57, %v626_v58  ;;  %v634_v1 = vld [vmem:[%s7577_s8 + $0xb90] sm:$0xff] }
 0x11f   : > { %5260 = vmatprep.subr.bf16.mxu0 %v6474_v13  ;;  %5389 = vmatprep.subr.bf16.mxu1 %v6476_v14  ;;  %v6602_v13 = vcombine.high %v522_v7, %v530_v8  ;;  %v6604_v14 = vcombine.high %v523_v9, %v531_v10  ;;  %v642_v2 = vld [vmem:[%s7577_s8 + $0xbd0] sm:$0xff] }
 0x122   : > { %5261 = vmatpush1.bf16.msra.mxu0 %v6473_v19  ;;  %5390 = vmatpush1.bf16.msra.mxu1 %v6475_v20  ;;  %v6601_v19 = vcombine.low %v522_v7, %v530_v8  ;;  %v6603_v20 = vcombine.low %v523_v9, %v531_v10  ;;  %v6714_v7 = vcombine.high %v634_v1, %v642_v2  ;;  %v650_v9 = vld [vmem:[%s7577_s8 + $0xc10] sm:$0xff] }
 0x123   : > { %5262 = vmatprep.subr.bf16.mxu0 %v6490_v21  ;;  %5391 = vmatprep.subr.bf16.mxu1 %v6492_v22  ;;  %v6618_v21 = vcombine.high %v538_v15, %v546_v16  ;;  %v6620_v22 = vcombine.high %v539_v17, %v547_v18  ;;  %v658_v10 = vld [vmem:[%s7577_s8 + $0xc50] sm:$0xff] }
 0x126   : > { %5263 = vmatpush1.bf16.msra.mxu0 %v6489_v27  ;;  %5392 = vmatpush1.bf16.msra.mxu1 %v6491_v28  ;;  %v563_v27 = vld [vmem:[%s7577_s8 + $0x958] sm:$0xff]  ;;  %v6617_v28 = vcombine.low %v538_v15, %v546_v16  ;;  %v6730_v15 = vcombine.high %v650_v9, %v658_v10 }
 0x127   : > { %5264 = vmatprep.subr.bf16.mxu0 %v6506_v29  ;;  %5393 = vmatprep.subr.bf16.mxu1 %v6508_v30  ;;  %v6619_v29 = vcombine.low %v539_v17, %v547_v18  ;;  %v6634_v30 = vcombine.high %v554_v23, %v562_v24  ;;  %v6636_v31 = vcombine.high %v555_v26, %v563_v27  ;;  %v666_v17 = vld [vmem:[%s7577_s8 + $0xc90] sm:$0xff] }
 0x128   : > { %v674_v18 = vld [vmem:[%s7577_s8 + $0xcd0] sm:$0xff] }
 0x12a   : > { %5265 = vmatpush1.bf16.msra.mxu0 %v6505_v35  ;;  %5394 = vmatpush1.bf16.msra.mxu1 %v6507_v36  ;;  %v571_v35 = vld [vmem:[%s7577_s8 + $0x998] sm:$0xff] }
 0x12b   : > { %5266 = vmatprep.subr.bf16.mxu0 %v6522_v37  ;;  %5395 = vmatprep.subr.bf16.mxu1 %v6524_v38  ;;  %v579_v36 = vld [vmem:[%s7577_s8 + $0x9d8] sm:$0xff]  ;;  %v6633_v37 = vcombine.low %v554_v23, %v562_v24  ;;  %v6635_v38 = vcombine.low %v555_v26, %v563_v27  ;;  %v6746_v23 = vcombine.high %v666_v17, %v674_v18  ;;  %v690_v26 = vld [vmem:[%s7577_s8 + $0xd50] sm:$0xff] }
 0x12c   : > { %v6652_v40 = vcombine.high %v571_v35, %v579_v36  ;;  %v683_v27 = vld [vmem:[%s7577_s8 + $0xd18] sm:$0xff] }
 0x12e   : > { %5267 = vmatpush1.bf16.msra.mxu0 %v6521_v43  ;;  %5396 = vmatpush1.bf16.msra.mxu1 %v6523_v44  ;;  %v587_v43 = vld [vmem:[%s7577_s8 + $0xa18] sm:$0xff] }
 0x12f   : > { %5268 = vmatprep.subr.bf16.mxu0 %v6538_v45  ;;  %5397 = vmatprep.subr.bf16.mxu1 %v6540_v46  ;;  %v595_v44 = vld [vmem:[%s7577_s8 + $0xa58] sm:$0xff]  ;;  %v6649_v45 = vcombine.low %v570_v32, %v578_v33  ;;  %v6651_v46 = vcombine.low %v571_v35, %v579_v36  ;;  %v698_v33 = vld [vmem:[%s7577_s8 + $0xd90] sm:$0xff] }
 0x130   : > { %v6668_v48 = vcombine.high %v587_v43, %v595_v44  ;;  %v699_v35 = vld [vmem:[%s7577_s8 + $0xd98] sm:$0xff] }
 0x131   : > { %v707_v36 = vld [vmem:[%s7577_s8 + $0xdd8] sm:$0xff] }
 0x132   : > { %5269 = vmatpush1.bf16.msra.mxu0 %v6537_v51  ;;  %5398 = vmatpush1.bf16.msra.mxu1 %v6539_v52  ;;  %v603_v51 = vld [vmem:[%s7577_s8 + $0xa98] sm:$0xff] }
 0x133   : > { %5270 = vmatprep.subr.bf16.mxu0 %v6554_v53  ;;  %5399 = vmatprep.subr.bf16.mxu1 %v6556_v54  ;;  %v611_v52 = vld [vmem:[%s7577_s8 + $0xad8] sm:$0xff]  ;;  %v6665_v53 = vcombine.low %v586_v41, %v594_v42  ;;  %v6667_v54 = vcombine.low %v587_v43, %v595_v44  ;;  %v714_v41 = vld [vmem:[%s7577_s8 + $0xe10] sm:$0xff] }
 0x134   : > { %v6684_v56 = vcombine.high %v603_v51, %v611_v52  ;;  %v722_v42 = vld [vmem:[%s7577_s8 + $0xe50] sm:$0xff]  ;;  %v715_v43 = vld [vmem:[%s7577_s8 + $0xe18] sm:$0xff] }
 0x135   : > { %v723_v44 = vld [vmem:[%s7577_s8 + $0xe58] sm:$0xff] }
 0x136   : > { %5271 = vmatpush1.bf16.msra.mxu0 %v6553_v59  ;;  %5400 = vmatpush1.bf16.msra.mxu1 %v6555_v60  ;;  %v619_v59 = vld [vmem:[%s7577_s8 + $0xb18] sm:$0xff] }
 0x137   : > { %5272 = vmatprep.subr.bf16.mxu0 %v6570_v61  ;;  %5401 = vmatprep.subr.bf16.mxu1 %v6572_v62  ;;  %v627_v60 = vld [vmem:[%s7577_s8 + $0xb58] sm:$0xff]  ;;  %v6681_v61 = vcombine.low %v602_v49, %v610_v50  ;;  %v6683_v62 = vcombine.low %v603_v51, %v611_v52  ;;  %v730_v49 = vld [vmem:[%s7577_s8 + $0xe90] sm:$0xff] }
 0x138   : > { %v6700_v0 = vcombine.high %v619_v59, %v627_v60  ;;  %v738_v50 = vld [vmem:[%s7577_s8 + $0xed0] sm:$0xff]  ;;  %v731_v51 = vld [vmem:[%s7577_s8 + $0xe98] sm:$0xff] }
 0x139   : > { %v739_v52 = vld [vmem:[%s7577_s8 + $0xed8] sm:$0xff] }
 0x13a   : > { %5273 = vmatpush1.bf16.msra.mxu0 %v6569_v3  ;;  %5402 = vmatpush1.bf16.msra.mxu1 %v6571_v4  ;;  %v635_v3 = vld [vmem:[%s7577_s8 + $0xb98] sm:$0xff] }
 0x13b   : > { %5274 = vmatprep.subr.bf16.mxu0 %v6586_v5  ;;  %5403 = vmatprep.subr.bf16.mxu1 %v6588_v6  ;;  %v643_v4 = vld [vmem:[%s7577_s8 + $0xbd8] sm:$0xff]  ;;  %v6697_v5 = vcombine.low %v618_v57, %v626_v58  ;;  %v6699_v6 = vcombine.low %v619_v59, %v627_v60  ;;  %v746_v57 = vld [vmem:[%s7577_s8 + $0xf10] sm:$0xff] }
 0x13c   : > { %v6716_v8 = vcombine.high %v635_v3, %v643_v4  ;;  %v754_v58 = vld [vmem:[%s7577_s8 + $0xf50] sm:$0xff]  ;;  %v747_v59 = vld [vmem:[%s7577_s8 + $0xf18] sm:$0xff] }
 0x13d   : > { %v755_v60 = vld [vmem:[%s7577_s8 + $0xf58] sm:$0xff] }
 0x13e   : > { %5275 = vmatpush1.bf16.msra.mxu0 %v6585_v11  ;;  %5404 = vmatpush1.bf16.msra.mxu1 %v6587_v12  ;;  %v651_v11 = vld [vmem:[%s7577_s8 + $0xc18] sm:$0xff] }
 0x13f   : > { %5287 = vmatprep.subr.bf16.mxu0 %v6602_v13  ;;  %5416 = vmatprep.subr.bf16.mxu1 %v6604_v14  ;;  %v659_v12 = vld [vmem:[%s7577_s8 + $0xc58] sm:$0xff]  ;;  %v6713_v13 = vcombine.low %v634_v1, %v642_v2  ;;  %v6715_v14 = vcombine.low %v635_v3, %v643_v4  ;;  %v762_v1 = vld [vmem:[%s7577_s8 + $0xf90] sm:$0xff] }
 0x140   : > { %v6732_v16 = vcombine.high %v651_v11, %v659_v12  ;;  %v770_v2 = vld [vmem:[%s7577_s8 + $0xfd0] sm:$0xff]  ;;  %v763_v3 = vld [vmem:[%s7577_s8 + $0xf98] sm:$0xff] }
 0x141   : > { %5277 = vmatmul.mubr.bf16.vlgmr.msra.gmra.mrb[4].mxu0 %v7354_v25  ;;  %5406 = vmatmul.mubr.bf16.vlgmr.msra.gmra.mrb[4].mxu1 %v7354_v25  ;;  %v682_v25 = vld [vmem:[%s7577_s8 + $0xd10] sm:$0xff]  ;;  %v771_v4 = vld [vmem:[%s7577_s8 + $0xfd8] sm:$0xff] }
 0x142   : > { %5288 = vmatpush1.bf16.msra.mxu0 %v6601_v19  ;;  %5417 = vmatpush1.bf16.msra.mxu1 %v6603_v20  ;;  %v667_v19 = vld [vmem:[%s7577_s8 + $0xc98] sm:$0xff] }
 0x143   : > { %5289 = vmatprep.subr.bf16.mxu0 %v6618_v21  ;;  %5418 = vmatprep.subr.bf16.mxu1 %v6620_v22  ;;  %v675_v20 = vld [vmem:[%s7577_s8 + $0xcd8] sm:$0xff]  ;;  %v6729_v21 = vcombine.low %v650_v9, %v658_v10  ;;  %v6731_v22 = vcombine.low %v651_v11, %v659_v12  ;;  %v778_v9 = vld [vmem:[%s7577_s8 + $0x1010] sm:$0xff] }
 0x144   : > { %5319 = vmatprep.mubr.bf16.mxu0 %v7355_v34  ;;  %5448 = vmatprep.mubr.bf16.mxu1 %v7355_v34  ;;  %v6748_v24 = vcombine.high %v667_v19, %v675_v20  ;;  %v706_v34 = vld [vmem:[%s7577_s8 + $0xdd0] sm:$0xff]  ;;  %v779_v11 = vld [vmem:[%s7577_s8 + $0x1018] sm:$0xff] }
 0x145   : > { %v786_v10 = vld [vmem:[%s7577_s8 + $0x1050] sm:$0xff]  ;;  %v787_v12 = vld [vmem:[%s7577_s8 + $0x1058] sm:$0xff] }
 0x146   : > { %5290 = vmatpush1.bf16.msra.mxu0 %v6617_v28  ;;  %5419 = vmatpush1.bf16.msra.mxu1 %v6619_v29  ;;  %v691_v28 = vld [vmem:[%s7577_s8 + $0xd58] sm:$0xff]  ;;  %v6745_v29 = vcombine.low %v666_v17, %v674_v18  ;;  %v794_v17 = vld [vmem:[%s7577_s8 + $0x1090] sm:$0xff] }
 0x147   : > { %5291 = vmatprep.subr.bf16.mxu0 %v6634_v30  ;;  %5420 = vmatprep.subr.bf16.mxu1 %v6636_v31  ;;  %v6747_v30 = vcombine.low %v667_v19, %v675_v20  ;;  %v6762_v31 = vcombine.high %v682_v25, %v690_v26  ;;  %v6764_v32 = vcombine.high %v683_v27, %v691_v28  ;;  %v802_v18 = vld [vmem:[%s7577_s8 + $0x10d0] sm:$0xff]  ;;  %v795_v19 = vld [vmem:[%s7577_s8 + $0x1098] sm:$0xff] }
 0x148   : > { %v803_v20 = vld [vmem:[%s7577_s8 + $0x10d8] sm:$0xff] }
 0x14a   : > { %5292 = vmatpush1.bf16.msra.mxu0 %v6633_v37  ;;  %5421 = vmatpush1.bf16.msra.mxu1 %v6635_v38  ;;  %v6761_v37 = vcombine.low %v682_v25, %v690_v26  ;;  %v6763_v38 = vcombine.low %v683_v27, %v691_v28  ;;  %v810_v25 = vld [vmem:[%s7577_s8 + $0x1110] sm:$0xff]  ;;  %v7356_v27 = vld [vmem:[%s8721_s0 + $0x8] ss:$24 sps:$4 sm:$0xff]   ;;  %v811_v28 = vld [vmem:[%s7577_s8 + $0x1118] sm:$0xff] }
 0x14b   : > { %5293 = vmatprep.subr.bf16.mxu0 %v6650_v39  ;;  %5422 = vmatprep.subr.bf16.mxu1 %v6652_v40  ;;  %v6778_v39 = vcombine.high %v698_v33, %v706_v34  ;;  %v6780_v40 = vcombine.high %v699_v35, %v707_v36  ;;  %v818_v26 = vld [vmem:[%s7577_s8 + $0x1150] sm:$0xff] }
 0x14e   : > { %5294 = vmatpush1.bf16.msra.mxu0 %v6649_v45  ;;  %5423 = vmatpush1.bf16.msra.mxu1 %v6651_v46  ;;  %v6777_v45 = vcombine.low %v698_v33, %v706_v34  ;;  %v6779_v46 = vcombine.low %v699_v35, %v707_v36  ;;  %v826_v34 = vld [vmem:[%s7577_s8 + $0x1190] sm:$0xff] }
 0x14f   : > { %5295 = vmatprep.subr.bf16.mxu0 %v6666_v47  ;;  %5424 = vmatprep.subr.bf16.mxu1 %v6668_v48  ;;  %v6794_v47 = vcombine.high %v714_v41, %v722_v42  ;;  %v6796_v48 = vcombine.high %v715_v43, %v723_v44  ;;  %v834_v35 = vld [vmem:[%s7577_s8 + $0x11d0] sm:$0xff] }
 0x150   : > { %v7357_v36 = vld [vmem:[%s8721_s0 + $0x14] ss:$24 sps:$4 sm:$0xff]  }
 0x152   : > { %5296 = vmatpush1.bf16.msra.mxu0 %v6665_v53  ;;  %5425 = vmatpush1.bf16.msra.mxu1 %v6667_v54  ;;  %v6793_v53 = vcombine.low %v714_v41, %v722_v42  ;;  %v6795_v54 = vcombine.low %v715_v43, %v723_v44  ;;  %v6906_v41 = vcombine.high %v826_v34, %v834_v35  ;;  %v842_v43 = vld [vmem:[%s7577_s8 + $0x1210] sm:$0xff] }
 0x153   : > { %5297 = vmatprep.subr.bf16.mxu0 %v6682_v55  ;;  %5426 = vmatprep.subr.bf16.mxu1 %v6684_v56  ;;  %v6810_v55 = vcombine.high %v730_v49, %v738_v50  ;;  %v6812_v56 = vcombine.high %v731_v51, %v739_v52  ;;  %v850_v44 = vld [vmem:[%s7577_s8 + $0x1250] sm:$0xff] }
 0x156   : > { %5298 = vmatpush1.bf16.msra.mxu0 %v6681_v61  ;;  %5427 = vmatpush1.bf16.msra.mxu1 %v6683_v62  ;;  %v6809_v61 = vcombine.low %v730_v49, %v738_v50  ;;  %v6811_v62 = vcombine.low %v731_v51, %v739_v52  ;;  %v6922_v49 = vcombine.high %v842_v43, %v850_v44  ;;  %v858_v51 = vld [vmem:[%s7577_s8 + $0x1290] sm:$0xff] }
 0x157   : > { %5299 = vmatprep.subr.bf16.mxu0 %v6698_v63  ;;  %5428 = vmatprep.subr.bf16.mxu1 %v6700_v0  ;;  %v6826_v63 = vcombine.high %v746_v57, %v754_v58  ;;  %v6828_v0 = vcombine.high %v747_v59, %v755_v60  ;;  %v866_v52 = vld [vmem:[%s7577_s8 + $0x12d0] sm:$0xff] }
 0x15a   : > { %5300 = vmatpush1.bf16.msra.mxu0 %v6697_v5  ;;  %5429 = vmatpush1.bf16.msra.mxu1 %v6699_v6  ;;  %v6825_v5 = vcombine.low %v746_v57, %v754_v58  ;;  %v6827_v6 = vcombine.low %v747_v59, %v755_v60  ;;  %v6938_v57 = vcombine.high %v858_v51, %v866_v52  ;;  %v874_v59 = vld [vmem:[%s7577_s8 + $0x1310] sm:$0xff] }
 0x15b   : > { %5301 = vmatprep.subr.bf16.mxu0 %v6714_v7  ;;  %5430 = vmatprep.subr.bf16.mxu1 %v6716_v8  ;;  %v6842_v7 = vcombine.high %v762_v1, %v770_v2  ;;  %v6844_v8 = vcombine.high %v763_v3, %v771_v4  ;;  %v882_v60 = vld [vmem:[%s7577_s8 + $0x1350] sm:$0xff] }
 0x15e   : > { %5302 = vmatpush1.bf16.msra.mxu0 %v6713_v13  ;;  %5431 = vmatpush1.bf16.msra.mxu1 %v6715_v14  ;;  %v6841_v13 = vcombine.low %v762_v1, %v770_v2  ;;  %v6843_v14 = vcombine.low %v763_v3, %v771_v4  ;;  %v6954_v1 = vcombine.high %v874_v59, %v882_v60  ;;  %v890_v3 = vld [vmem:[%s7577_s8 + $0x1390] sm:$0xff] }
 0x15f   : > { %5303 = vmatprep.subr.bf16.mxu0 %v6730_v15  ;;  %5432 = vmatprep.subr.bf16.mxu1 %v6732_v16  ;;  %v6858_v15 = vcombine.high %v778_v9, %v786_v10  ;;  %v6860_v16 = vcombine.high %v779_v11, %v787_v12  ;;  %v898_v4 = vld [vmem:[%s7577_s8 + $0x13d0] sm:$0xff] }
 0x162   : > { %5304 = vmatpush1.bf16.msra.mxu0 %v6729_v21  ;;  %5433 = vmatpush1.bf16.msra.mxu1 %v6731_v22  ;;  %v6857_v21 = vcombine.low %v778_v9, %v786_v10  ;;  %v6859_v22 = vcombine.low %v779_v11, %v787_v12  ;;  %v6970_v9 = vcombine.high %v890_v3, %v898_v4  ;;  %v906_v11 = vld [vmem:[%s7577_s8 + $0x1410] sm:$0xff] }
 0x163   : > { %5305 = vmatprep.subr.bf16.mxu0 %v6746_v23  ;;  %5434 = vmatprep.subr.bf16.mxu1 %v6748_v24  ;;  %v6874_v23 = vcombine.high %v794_v17, %v802_v18  ;;  %v6876_v24 = vcombine.high %v795_v19, %v803_v20  ;;  %v914_v12 = vld [vmem:[%s7577_s8 + $0x1450] sm:$0xff] }
 0x166   : > { %5306 = vmatpush1.bf16.msra.mxu0 %v6745_v29  ;;  %5435 = vmatpush1.bf16.msra.mxu1 %v6747_v30  ;;  %v819_v29 = vld [vmem:[%s7577_s8 + $0x1158] sm:$0xff]  ;;  %v6873_v30 = vcombine.low %v794_v17, %v802_v18  ;;  %v6986_v17 = vcombine.high %v906_v11, %v914_v12 }
 0x167   : > { %5307 = vmatprep.subr.bf16.mxu0 %v6762_v31  ;;  %5436 = vmatprep.subr.bf16.mxu1 %v6764_v32  ;;  %v6875_v31 = vcombine.low %v795_v19, %v803_v20  ;;  %v6890_v32 = vcombine.high %v810_v25, %v818_v26  ;;  %v6892_v33 = vcombine.high %v811_v28, %v819_v29  ;;  %v922_v19 = vld [vmem:[%s7577_s8 + $0x1490] sm:$0xff] }
 0x168   : > { %v930_v20 = vld [vmem:[%s7577_s8 + $0x14d0] sm:$0xff] }
 0x16a   : > { %5308 = vmatpush1.bf16.msra.mxu0 %v6761_v37  ;;  %5437 = vmatpush1.bf16.msra.mxu1 %v6763_v38  ;;  %v827_v37 = vld [vmem:[%s7577_s8 + $0x1198] sm:$0xff] }
 0x16b   : > { %5309 = vmatprep.subr.bf16.mxu0 %v6778_v39  ;;  %5438 = vmatprep.subr.bf16.mxu1 %v6780_v40  ;;  %v835_v38 = vld [vmem:[%s7577_s8 + $0x11d8] sm:$0xff]  ;;  %v6889_v39 = vcombine.low %v810_v25, %v818_v26  ;;  %v6891_v40 = vcombine.low %v811_v28, %v819_v29  ;;  %v7002_v25 = vcombine.high %v922_v19, %v930_v20  ;;  %v946_v28 = vld [vmem:[%s7577_s8 + $0x1550] sm:$0xff] }
 0x16c   : > { %v6908_v42 = vcombine.high %v827_v37, %v835_v38  ;;  %v939_v29 = vld [vmem:[%s7577_s8 + $0x1518] sm:$0xff] }
 0x16e   : > { %5310 = vmatpush1.bf16.msra.mxu0 %v6777_v45  ;;  %5439 = vmatpush1.bf16.msra.mxu1 %v6779_v46  ;;  %v843_v45 = vld [vmem:[%s7577_s8 + $0x1218] sm:$0xff] }
 0x16f   : > { %5311 = vmatprep.subr.bf16.mxu0 %v6794_v47  ;;  %5440 = vmatprep.subr.bf16.mxu1 %v6796_v48  ;;  %v851_v46 = vld [vmem:[%s7577_s8 + $0x1258] sm:$0xff]  ;;  %v6905_v47 = vcombine.low %v826_v34, %v834_v35  ;;  %v6907_v48 = vcombine.low %v827_v37, %v835_v38  ;;  %v954_v35 = vld [vmem:[%s7577_s8 + $0x1590] sm:$0xff] }
 0x170   : > { %v6924_v50 = vcombine.high %v843_v45, %v851_v46  ;;  %v955_v37 = vld [vmem:[%s7577_s8 + $0x1598] sm:$0xff] }
 0x171   : > { %v963_v38 = vld [vmem:[%s7577_s8 + $0x15d8] sm:$0xff] }
 0x172   : > { %5312 = vmatpush1.bf16.msra.mxu0 %v6793_v53  ;;  %5441 = vmatpush1.bf16.msra.mxu1 %v6795_v54  ;;  %v859_v53 = vld [vmem:[%s7577_s8 + $0x1298] sm:$0xff] }
 0x173   : > { %5313 = vmatprep.subr.bf16.mxu0 %v6810_v55  ;;  %5442 = vmatprep.subr.bf16.mxu1 %v6812_v56  ;;  %v867_v54 = vld [vmem:[%s7577_s8 + $0x12d8] sm:$0xff]  ;;  %v6921_v55 = vcombine.low %v842_v43, %v850_v44  ;;  %v6923_v56 = vcombine.low %v843_v45, %v851_v46  ;;  %v970_v43 = vld [vmem:[%s7577_s8 + $0x1610] sm:$0xff] }
 0x174   : > { %v6940_v58 = vcombine.high %v859_v53, %v867_v54  ;;  %v978_v44 = vld [vmem:[%s7577_s8 + $0x1650] sm:$0xff]  ;;  %v971_v45 = vld [vmem:[%s7577_s8 + $0x1618] sm:$0xff] }
 0x175   : > { %v979_v46 = vld [vmem:[%s7577_s8 + $0x1658] sm:$0xff] }
 0x176   : > { %5314 = vmatpush1.bf16.msra.mxu0 %v6809_v61  ;;  %5443 = vmatpush1.bf16.msra.mxu1 %v6811_v62  ;;  %v875_v61 = vld [vmem:[%s7577_s8 + $0x1318] sm:$0xff] }
 0x177   : > { %5315 = vmatprep.subr.bf16.mxu0 %v6826_v63  ;;  %5444 = vmatprep.subr.bf16.mxu1 %v6828_v0  ;;  %v883_v62 = vld [vmem:[%s7577_s8 + $0x1358] sm:$0xff]  ;;  %v6937_v63 = vcombine.low %v858_v51, %v866_v52  ;;  %v6939_v0 = vcombine.low %v859_v53, %v867_v54  ;;  %v986_v51 = vld [vmem:[%s7577_s8 + $0x1690] sm:$0xff] }
 0x178   : > { %v6956_v2 = vcombine.high %v875_v61, %v883_v62  ;;  %v994_v52 = vld [vmem:[%s7577_s8 + $0x16d0] sm:$0xff]  ;;  %v987_v53 = vld [vmem:[%s7577_s8 + $0x1698] sm:$0xff] }
 0x179   : > { %v995_v54 = vld [vmem:[%s7577_s8 + $0x16d8] sm:$0xff] }
 0x17a   : > { %5316 = vmatpush1.bf16.msra.mxu0 %v6825_v5  ;;  %5445 = vmatpush1.bf16.msra.mxu1 %v6827_v6  ;;  %v891_v5 = vld [vmem:[%s7577_s8 + $0x1398] sm:$0xff] }
 0x17b   : > { %5317 = vmatprep.subr.bf16.mxu0 %v6842_v7  ;;  %5446 = vmatprep.subr.bf16.mxu1 %v6844_v8  ;;  %v899_v6 = vld [vmem:[%s7577_s8 + $0x13d8] sm:$0xff]  ;;  %v6953_v7 = vcombine.low %v874_v59, %v882_v60  ;;  %v6955_v8 = vcombine.low %v875_v61, %v883_v62  ;;  %v1002_v59 = vld [vmem:[%s7577_s8 + $0x1710] sm:$0xff] }
 0x17c   : > { %v6972_v10 = vcombine.high %v891_v5, %v899_v6  ;;  %v1010_v60 = vld [vmem:[%s7577_s8 + $0x1750] sm:$0xff]  ;;  %v1003_v61 = vld [vmem:[%s7577_s8 + $0x1718] sm:$0xff] }
 0x17d   : > { %v1011_v62 = vld [vmem:[%s7577_s8 + $0x1758] sm:$0xff] }
 0x17e   : > { %5318 = vmatpush1.bf16.msra.mxu0 %v6841_v13  ;;  %5447 = vmatpush1.bf16.msra.mxu1 %v6843_v14  ;;  %v907_v13 = vld [vmem:[%s7577_s8 + $0x1418] sm:$0xff] }
 0x17f   : > { %5330 = vmatprep.subr.bf16.mxu0 %v6858_v15  ;;  %5459 = vmatprep.subr.bf16.mxu1 %v6860_v16  ;;  %v915_v14 = vld [vmem:[%s7577_s8 + $0x1458] sm:$0xff]  ;;  %v6969_v15 = vcombine.low %v890_v3, %v898_v4  ;;  %v6971_v16 = vcombine.low %v891_v5, %v899_v6  ;;  %v1018_v3 = vld [vmem:[%s7577_s8 + $0x1790] sm:$0xff] }
 0x180   : > { %v6988_v18 = vcombine.high %v907_v13, %v915_v14  ;;  %v1026_v4 = vld [vmem:[%s7577_s8 + $0x17d0] sm:$0xff]  ;;  %v1019_v5 = vld [vmem:[%s7577_s8 + $0x1798] sm:$0xff] }
 0x181   : > { %5320 = vmatmul.mubr.bf16.vlgmr.msra.gmra.mrb[4].mxu0 %v7356_v27  ;;  %5449 = vmatmul.mubr.bf16.vlgmr.msra.gmra.mrb[4].mxu1 %v7356_v27  ;;  %v938_v27 = vld [vmem:[%s7577_s8 + $0x1510] sm:$0xff]  ;;  %v1027_v6 = vld [vmem:[%s7577_s8 + $0x17d8] sm:$0xff] }
 0x182   : > { %5331 = vmatpush1.bf16.msra.mxu0 %v6857_v21  ;;  %5460 = vmatpush1.bf16.msra.mxu1 %v6859_v22  ;;  %v923_v21 = vld [vmem:[%s7577_s8 + $0x1498] sm:$0xff] }
 0x183   : > { %5332 = vmatprep.subr.bf16.mxu0 %v6874_v23  ;;  %5461 = vmatprep.subr.bf16.mxu1 %v6876_v24  ;;  %v931_v22 = vld [vmem:[%s7577_s8 + $0x14d8] sm:$0xff]  ;;  %v6985_v23 = vcombine.low %v906_v11, %v914_v12  ;;  %v6987_v24 = vcombine.low %v907_v13, %v915_v14  ;;  %v268_v11 = vld [vmem:[%s7577_s8 + $0x20] sm:$0xff]  ;;  %v269_v13 = vld [vmem:[%s7577_s8 + $0x28] sm:$0xff] }
 0x184   : > { %5362 = vmatprep.mubr.bf16.mxu0 %v7357_v36  ;;  %5491 = vmatprep.mubr.bf16.mxu1 %v7357_v36  ;;  %v7004_v26 = vcombine.high %v923_v21, %v931_v22  ;;  %v962_v36 = vld [vmem:[%s7577_s8 + $0x15d0] sm:$0xff]  ;;  %v276_v12 = vld [vmem:[%s7577_s8 + $0x60] sm:$0xff]  ;;  %v277_v14 = vld [vmem:[%s7577_s8 + $0x68] sm:$0xff] }
 0x186   : > { %5333 = vmatpush1.bf16.msra.mxu0 %v6873_v30  ;;  %5462 = vmatpush1.bf16.msra.mxu1 %v6875_v31  ;;  %v947_v30 = vld [vmem:[%s7577_s8 + $0x1558] sm:$0xff]  ;;  %v7001_v31 = vcombine.low %v922_v19, %v930_v20  ;;  %v284_v19 = vld [vmem:[%s7577_s8 + $0xa0] sm:$0xff] }
 0x187   : > { %5334 = vmatprep.subr.bf16.mxu0 %v6890_v32  ;;  %5463 = vmatprep.subr.bf16.mxu1 %v6892_v33  ;;  %v7003_v32 = vcombine.low %v923_v21, %v931_v22  ;;  %v7018_v33 = vcombine.high %v938_v27, %v946_v28  ;;  %v7020_v34 = vcombine.high %v939_v29, %v947_v30  ;;  %v292_v20 = vld [vmem:[%s7577_s8 + $0xe0] sm:$0xff]  ;;  %v285_v21 = vld [vmem:[%s7577_s8 + $0xa8] sm:$0xff] }
 0x188   : > { %v293_v22 = vld [vmem:[%s7577_s8 + $0xe8] sm:$0xff] }
 0x18a   : > { %5335 = vmatpush1.bf16.msra.mxu0 %v6889_v39  ;;  %5464 = vmatpush1.bf16.msra.mxu1 %v6891_v40  ;;  %v7017_v39 = vcombine.low %v938_v27, %v946_v28  ;;  %v7019_v40 = vcombine.low %v939_v29, %v947_v30  ;;  %v300_v27 = vld [vmem:[%s7577_s8 + $0x120] sm:$0xff]  ;;  %v7358_v29 = vld [vmem:[%s8721_s0 + $0x10] ss:$24 sps:$4 sm:$0xff]  }
 0x18b   : > { %5336 = vmatprep.subr.bf16.mxu0 %v6906_v41  ;;  %5465 = vmatprep.subr.bf16.mxu1 %v6908_v42  ;;  %v7034_v41 = vcombine.high %v954_v35, %v962_v36  ;;  %v7036_v42 = vcombine.high %v955_v37, %v963_v38  ;;  %v308_v28 = vld [vmem:[%s7577_s8 + $0x160] sm:$0xff]  ;;  %v301_v30 = vld [vmem:[%s7577_s8 + $0x128] sm:$0xff] }
 0x18e   : > { %5337 = vmatpush1.bf16.msra.mxu0 %v6905_v47  ;;  %5466 = vmatpush1.bf16.msra.mxu1 %v6907_v48  ;;  %v7033_v47 = vcombine.low %v954_v35, %v962_v36  ;;  %v7035_v48 = vcombine.low %v955_v37, %v963_v38  ;;  %v316_v36 = vld [vmem:[%s7577_s8 + $0x1a0] sm:$0xff] }
 0x18f   : > { %5338 = vmatprep.subr.bf16.mxu0 %v6922_v49  ;;  %5467 = vmatprep.subr.bf16.mxu1 %v6924_v50  ;;  %v7050_v49 = vcombine.high %v970_v43, %v978_v44  ;;  %v7052_v50 = vcombine.high %v971_v45, %v979_v46  ;;  %v324_v37 = vld [vmem:[%s7577_s8 + $0x1e0] sm:$0xff] }
 0x190   : > { %v7359_v38 = vld [vmem:[%s8721_s0 + $0x4] ss:$24 sps:$4 sm:$0xff]  }
 0x192   : > { %5339 = vmatpush1.bf16.msra.mxu0 %v6921_v55  ;;  %5468 = vmatpush1.bf16.msra.mxu1 %v6923_v56  ;;  %v7049_v55 = vcombine.low %v970_v43, %v978_v44  ;;  %v7051_v56 = vcombine.low %v971_v45, %v979_v46  ;;  %v6398_v43 = vcombine.high %v316_v36, %v324_v37  ;;  %v332_v45 = vld [vmem:[%s7577_s8 + $0x220] sm:$0xff] }
 0x193   : > { %5340 = vmatprep.subr.bf16.mxu0 %v6938_v57  ;;  %5469 = vmatprep.subr.bf16.mxu1 %v6940_v58  ;;  %v7066_v57 = vcombine.high %v986_v51, %v994_v52  ;;  %v7068_v58 = vcombine.high %v987_v53, %v995_v54  ;;  %v340_v46 = vld [vmem:[%s7577_s8 + $0x260] sm:$0xff] }
 0x196   : > { %5341 = vmatpush1.bf16.msra.mxu0 %v6937_v63  ;;  %5470 = vmatpush1.bf16.msra.mxu1 %v6939_v0  ;;  %v7065_v63 = vcombine.low %v986_v51, %v994_v52  ;;  %v7067_v0 = vcombine.low %v987_v53, %v995_v54  ;;  %v6414_v51 = vcombine.high %v332_v45, %v340_v46  ;;  %v348_v53 = vld [vmem:[%s7577_s8 + $0x2a0] sm:$0xff] }
 0x197   : > { %5342 = vmatprep.subr.bf16.mxu0 %v6954_v1  ;;  %5471 = vmatprep.subr.bf16.mxu1 %v6956_v2  ;;  %v7082_v1 = vcombine.high %v1002_v59, %v1010_v60  ;;  %v7084_v2 = vcombine.high %v1003_v61, %v1011_v62  ;;  %v356_v54 = vld [vmem:[%s7577_s8 + $0x2e0] sm:$0xff] }
 0x19a   : > { %5343 = vmatpush1.bf16.msra.mxu0 %v6953_v7  ;;  %5472 = vmatpush1.bf16.msra.mxu1 %v6955_v8  ;;  %v7081_v7 = vcombine.low %v1002_v59, %v1010_v60  ;;  %v7083_v8 = vcombine.low %v1003_v61, %v1011_v62  ;;  %v6430_v59 = vcombine.high %v348_v53, %v356_v54  ;;  %v364_v61 = vld [vmem:[%s7577_s8 + $0x320] sm:$0xff] }
 0x19b   : > { %5344 = vmatprep.subr.bf16.mxu0 %v6970_v9  ;;  %5473 = vmatprep.subr.bf16.mxu1 %v6972_v10  ;;  %v7098_v9 = vcombine.high %v1018_v3, %v1026_v4  ;;  %v7100_v10 = vcombine.high %v1019_v5, %v1027_v6  ;;  %v372_v62 = vld [vmem:[%s7577_s8 + $0x360] sm:$0xff] }
 0x19e   : > { %5345 = vmatpush1.bf16.msra.mxu0 %v6969_v15  ;;  %5474 = vmatpush1.bf16.msra.mxu1 %v6971_v16  ;;  %v7097_v15 = vcombine.low %v1018_v3, %v1026_v4  ;;  %v7099_v16 = vcombine.low %v1019_v5, %v1027_v6  ;;  %v6446_v3 = vcombine.high %v364_v61, %v372_v62  ;;  %v380_v6 = vld [vmem:[%s7577_s8 + $0x3a0] sm:$0xff] }
 0x19f   : > { %5346 = vmatprep.subr.bf16.mxu0 %v6986_v17  ;;  %5475 = vmatprep.subr.bf16.mxu1 %v6988_v18  ;;  %v6350_v17 = vcombine.high %v268_v11, %v276_v12  ;;  %v6352_v18 = vcombine.high %v269_v13, %v277_v14 }
 0x1a2   : > { %5347 = vmatpush1.bf16.msra.mxu0 %v6985_v23  ;;  %5476 = vmatpush1.bf16.msra.mxu1 %v6987_v24  ;;  %v6349_v23 = vcombine.low %v268_v11, %v276_v12  ;;  %v6351_v24 = vcombine.low %v269_v13, %v277_v14  ;;  %v389_v11 = vld [vmem:[%s7577_s8 + $0x3e8] sm:$0xff]  ;;  %v6445_v14 = vcombine.low %v364_v61, %v372_v62  ;;  %v476_v61 = vld [vmem:[%s7577_s8 + $0x6a0] sm:$0xff] }
 0x1a3   : > { %5348 = vmatprep.subr.bf16.mxu0 %v7002_v25  ;;  %5477 = vmatprep.subr.bf16.mxu1 %v7004_v26  ;;  %v6366_v25 = vcombine.high %v284_v19, %v292_v20  ;;  %v6368_v26 = vcombine.high %v285_v21, %v293_v22  ;;  %v484_v62 = vld [vmem:[%s7577_s8 + $0x6e0] sm:$0xff] }
 0x1a6   : > { %5349 = vmatpush1.bf16.msra.mxu0 %v7001_v31  ;;  %5478 = vmatpush1.bf16.msra.mxu1 %v7003_v32  ;;  %v309_v31 = vld [vmem:[%s7577_s8 + $0x168] sm:$0xff]  ;;  %v6365_v32 = vcombine.low %v284_v19, %v292_v20 }
 0x1a7   : > { %5350 = vmatprep.subr.bf16.mxu0 %v7018_v33  ;;  %5479 = vmatprep.subr.bf16.mxu1 %v7020_v34  ;;  %v6367_v33 = vcombine.low %v285_v21, %v293_v22  ;;  %v6382_v34 = vcombine.high %v300_v27, %v308_v28  ;;  %v6384_v35 = vcombine.high %v301_v30, %v309_v31  ;;  %v396_v21 = vld [vmem:[%s7577_s8 + $0x420] sm:$0xff] }
 0x1a8   : > { %v404_v22 = vld [vmem:[%s7577_s8 + $0x460] sm:$0xff] }
 0x1aa   : > { %5351 = vmatpush1.bf16.msra.mxu0 %v7017_v39  ;;  %5480 = vmatpush1.bf16.msra.mxu1 %v7019_v40  ;;  %v317_v39 = vld [vmem:[%s7577_s8 + $0x1a8] sm:$0xff] }
 0x1ab   : > { %5352 = vmatprep.subr.bf16.mxu0 %v7034_v41  ;;  %5481 = vmatprep.subr.bf16.mxu1 %v7036_v42  ;;  %v325_v40 = vld [vmem:[%s7577_s8 + $0x1e8] sm:$0xff]  ;;  %v6381_v41 = vcombine.low %v300_v27, %v308_v28  ;;  %v6383_v42 = vcombine.low %v301_v30, %v309_v31  ;;  %v6478_v27 = vcombine.high %v396_v21, %v404_v22  ;;  %v420_v30 = vld [vmem:[%s7577_s8 + $0x4e0] sm:$0xff] }
 0x1ac   : > { %v6400_v44 = vcombine.high %v317_v39, %v325_v40  ;;  %v413_v31 = vld [vmem:[%s7577_s8 + $0x4a8] sm:$0xff] }
 0x1ae   : > { %5353 = vmatpush1.bf16.msra.mxu0 %v7033_v47  ;;  %5482 = vmatpush1.bf16.msra.mxu1 %v7035_v48  ;;  %v333_v47 = vld [vmem:[%s7577_s8 + $0x228] sm:$0xff] }
 0x1af   : > { %5354 = vmatprep.subr.bf16.mxu0 %v7050_v49  ;;  %5483 = vmatprep.subr.bf16.mxu1 %v7052_v50  ;;  %v341_v48 = vld [vmem:[%s7577_s8 + $0x268] sm:$0xff]  ;;  %v6397_v49 = vcombine.low %v316_v36, %v324_v37  ;;  %v6399_v50 = vcombine.low %v317_v39, %v325_v40  ;;  %v428_v37 = vld [vmem:[%s7577_s8 + $0x520] sm:$0xff] }
 0x1b0   : > { %v6416_v52 = vcombine.high %v333_v47, %v341_v48  ;;  %v429_v39 = vld [vmem:[%s7577_s8 + $0x528] sm:$0xff] }
 0x1b1   : > { %v437_v40 = vld [vmem:[%s7577_s8 + $0x568] sm:$0xff] }
 0x1b2   : > { %5355 = vmatpush1.bf16.msra.mxu0 %v7049_v55  ;;  %5484 = vmatpush1.bf16.msra.mxu1 %v7051_v56  ;;  %v349_v55 = vld [vmem:[%s7577_s8 + $0x2a8] sm:$0xff] }
 0x1b3   : > { %5356 = vmatprep.subr.bf16.mxu0 %v7066_v57  ;;  %5485 = vmatprep.subr.bf16.mxu1 %v7068_v58  ;;  %v357_v56 = vld [vmem:[%s7577_s8 + $0x2e8] sm:$0xff]  ;;  %v6413_v57 = vcombine.low %v332_v45, %v340_v46  ;;  %v6415_v58 = vcombine.low %v333_v47, %v341_v48  ;;  %v444_v45 = vld [vmem:[%s7577_s8 + $0x5a0] sm:$0xff] }
 0x1b4   : > { %v6432_v60 = vcombine.high %v349_v55, %v357_v56  ;;  %v452_v46 = vld [vmem:[%s7577_s8 + $0x5e0] sm:$0xff]  ;;  %v445_v47 = vld [vmem:[%s7577_s8 + $0x5a8] sm:$0xff] }
 0x1b5   : > { %v453_v48 = vld [vmem:[%s7577_s8 + $0x5e8] sm:$0xff] }
 0x1b6   : > { %5357 = vmatpush1.bf16.msra.mxu0 %v7065_v63  ;;  %5486 = vmatpush1.bf16.msra.mxu1 %v7067_v0  ;;  %v365_v63 = vld [vmem:[%s7577_s8 + $0x328] sm:$0xff] }
 0x1b7   : > { %5358 = vmatprep.subr.bf16.mxu0 %v7082_v1  ;;  %5487 = vmatprep.subr.bf16.mxu1 %v7084_v2  ;;  %v373_v0 = vld [vmem:[%s7577_s8 + $0x368] sm:$0xff]  ;;  %v6429_v1 = vcombine.low %v348_v53, %v356_v54  ;;  %v6431_v2 = vcombine.low %v349_v55, %v357_v56  ;;  %v460_v53 = vld [vmem:[%s7577_s8 + $0x620] sm:$0xff] }
 0x1b8   : > { %v6448_v5 = vcombine.high %v365_v63, %v373_v0  ;;  %v468_v54 = vld [vmem:[%s7577_s8 + $0x660] sm:$0xff]  ;;  %v461_v55 = vld [vmem:[%s7577_s8 + $0x628] sm:$0xff] }
 0x1b9   : > { %v469_v56 = vld [vmem:[%s7577_s8 + $0x668] sm:$0xff] }
 0x1ba   : > { %5359 = vmatpush1.bf16.msra.mxu0 %v7081_v7  ;;  %5488 = vmatpush1.bf16.msra.mxu1 %v7083_v8  ;;  %v388_v7 = vld [vmem:[%s7577_s8 + $0x3e0] sm:$0xff] }
 0x1bb   : > { %5360 = vmatprep.subr.bf16.mxu0 %v7098_v9  ;;  %5489 = vmatprep.subr.bf16.mxu1 %v7100_v10  ;;  %v381_v10 = vld [vmem:[%s7577_s8 + $0x3a8] sm:$0xff] }
 0x1bc   : > { %v6464_v20 = vcombine.high %v381_v10, %v389_v11 }
 0x1be   : > { %5361 = vmatpush1.bf16.msra.mxu0 %v7097_v15  ;;  %5490 = vmatpush1.bf16.msra.mxu1 %v7099_v16 }
 0x1bf   : > { %5502 = vmatprep.subr.bf16.mxu0 %v6350_v17  ;;  %5631 = vmatprep.subr.bf16.mxu1 %v6352_v18  ;;  %v6447_v17 = vcombine.low %v365_v63, %v373_v0  ;;  %v6462_v18 = vcombine.high %v380_v6, %v388_v7  ;;  %v477_v63 = vld [vmem:[%s7577_s8 + $0x6a8] sm:$0xff] }
 0x1c0   : > { %v485_v0 = vld [vmem:[%s7577_s8 + $0x6e8] sm:$0xff] }
 0x1c1   : > { %5363 = vmatmul.mubr.bf16.vlgmr.msra.gmra.mrb[4].mxu0 %v7358_v29  ;;  %5492 = vmatmul.mubr.bf16.vlgmr.msra.gmra.mrb[4].mxu1 %v7358_v29  ;;  %v412_v29 = vld [vmem:[%s7577_s8 + $0x4a0] sm:$0xff] }
 0x1c2   : > { %5503 = vmatpush1.bf16.msra.mxu0 %v6349_v23  ;;  %5632 = vmatpush1.bf16.msra.mxu1 %v6351_v24  ;;  %v397_v23 = vld [vmem:[%s7577_s8 + $0x428] sm:$0xff] }
 0x1c3   : > { %5504 = vmatprep.subr.bf16.mxu0 %v6366_v25  ;;  %5633 = vmatprep.subr.bf16.mxu1 %v6368_v26  ;;  %v405_v24 = vld [vmem:[%s7577_s8 + $0x468] sm:$0xff]  ;;  %v6461_v25 = vcombine.low %v380_v6, %v388_v7  ;;  %v6463_v26 = vcombine.low %v381_v10, %v389_v11  ;;  %v492_v6 = vld [vmem:[%s7577_s8 + $0x720] sm:$0xff] }
 0x1c4   : > { %5534 = vmatprep.mubr.bf16.mxu0 %v7359_v38  ;;  %5663 = vmatprep.mubr.bf16.mxu1 %v7359_v38  ;;  %v6480_v28 = vcombine.high %v397_v23, %v405_v24  ;;  %v436_v38 = vld [vmem:[%s7577_s8 + $0x560] sm:$0xff]  ;;  %v493_v10 = vld [vmem:[%s7577_s8 + $0x728] sm:$0xff] }
 0x1c5   : > { %v500_v7 = vld [vmem:[%s7577_s8 + $0x760] sm:$0xff]  ;;  %v501_v11 = vld [vmem:[%s7577_s8 + $0x768] sm:$0xff] }
 0x1c6   : > { %5505 = vmatpush1.bf16.msra.mxu0 %v6365_v32  ;;  %5634 = vmatpush1.bf16.msra.mxu1 %v6367_v33  ;;  %v421_v32 = vld [vmem:[%s7577_s8 + $0x4e8] sm:$0xff]  ;;  %v6477_v33 = vcombine.low %v396_v21, %v404_v22  ;;  %v508_v21 = vld [vmem:[%s7577_s8 + $0x7a0] sm:$0xff] }
 0x1c7   : > { %5506 = vmatprep.subr.bf16.mxu0 %v6382_v34  ;;  %5635 = vmatprep.subr.bf16.mxu1 %v6384_v35  ;;  %v6479_v34 = vcombine.low %v397_v23, %v405_v24  ;;  %v6494_v35 = vcombine.high %v412_v29, %v420_v30  ;;  %v6496_v36 = vcombine.high %v413_v31, %v421_v32  ;;  %v516_v22 = vld [vmem:[%s7577_s8 + $0x7e0] sm:$0xff]  ;;  %v509_v23 = vld [vmem:[%s7577_s8 + $0x7a8] sm:$0xff] }
 0x1c8   : > { %v517_v24 = vld [vmem:[%s7577_s8 + $0x7e8] sm:$0xff] }
 0x1ca   : > { %5507 = vmatpush1.bf16.msra.mxu0 %v6381_v41  ;;  %5636 = vmatpush1.bf16.msra.mxu1 %v6383_v42  ;;  %v6493_v41 = vcombine.low %v412_v29, %v420_v30  ;;  %v6495_v42 = vcombine.low %v413_v31, %v421_v32  ;;  %v524_v29 = vld [vmem:[%s7577_s8 + $0x820] sm:$0xff]  ;;  %v525_v31 = vld [vmem:[%s7577_s8 + $0x828] sm:$0xff] }
 0x1cb   : > { %5508 = vmatprep.subr.bf16.mxu0 %v6398_v43  ;;  %5637 = vmatprep.subr.bf16.mxu1 %v6400_v44  ;;  %v6510_v43 = vcombine.high %v428_v37, %v436_v38  ;;  %v6512_v44 = vcombine.high %v429_v39, %v437_v40  ;;  %v532_v30 = vld [vmem:[%s7577_s8 + $0x860] sm:$0xff]  ;;  %v533_v32 = vld [vmem:[%s7577_s8 + $0x868] sm:$0xff] }
 0x1ce   : > { %5509 = vmatpush1.bf16.msra.mxu0 %v6397_v49  ;;  %5638 = vmatpush1.bf16.msra.mxu1 %v6399_v50  ;;  %v6509_v49 = vcombine.low %v428_v37, %v436_v38  ;;  %v6511_v50 = vcombine.low %v429_v39, %v437_v40  ;;  %v540_v37 = vld [vmem:[%s7577_s8 + $0x8a0] sm:$0xff]  ;;  %v541_v39 = vld [vmem:[%s7577_s8 + $0x8a8] sm:$0xff] }
 0x1cf   : > { %5510 = vmatprep.subr.bf16.mxu0 %v6414_v51  ;;  %5639 = vmatprep.subr.bf16.mxu1 %v6416_v52  ;;  %v6526_v51 = vcombine.high %v444_v45, %v452_v46  ;;  %v6528_v52 = vcombine.high %v445_v47, %v453_v48  ;;  %v548_v38 = vld [vmem:[%s7577_s8 + $0x8e0] sm:$0xff]  ;;  %v549_v40 = vld [vmem:[%s7577_s8 + $0x8e8] sm:$0xff] }
 0x1d2   : > { %5511 = vmatpush1.bf16.msra.mxu0 %v6413_v57  ;;  %5640 = vmatpush1.bf16.msra.mxu1 %v6415_v58  ;;  %v6525_v57 = vcombine.low %v444_v45, %v452_v46  ;;  %v6527_v58 = vcombine.low %v445_v47, %v453_v48  ;;  %v556_v45 = vld [vmem:[%s7577_s8 + $0x920] sm:$0xff]  ;;  %v557_v48 = vld [vmem:[%s7577_s8 + $0x928] sm:$0xff] }
 0x1d3   : > { %5512 = vmatprep.subr.bf16.mxu0 %v6430_v59  ;;  %5641 = vmatprep.subr.bf16.mxu1 %v6432_v60  ;;  %v6542_v59 = vcombine.high %v460_v53, %v468_v54  ;;  %v6544_v60 = vcombine.high %v461_v55, %v469_v56  ;;  %v564_v46 = vld [vmem:[%s7577_s8 + $0x960] sm:$0xff] }
 0x1d4   : > { %v8041_v4 = vpop.f32.mrb[0].mxu0  ;;  %v8045_v8 = vpop.f32.mrb[0].mxu1  ;;  %v7360_v47 = vld [vmem:[%s8721_s0] ss:$24 sps:$4 sm:$0xff]  }
 0x1d5   : > { %v8047_v9 = vpop.f32.mrb[1].mxu0  ;;  %v8051_v12 = vpop.f32.mrb[1].mxu1 }
 0x1d6   : > { %v8053_v13 = vpop.f32.mrb[2].mxu0  ;;  %5513 = vmatpush1.bf16.msra.mxu0 %v6429_v1  ;;  %v8055_v15 = vpop.f32.mrb[2].mxu1  ;;  %5642 = vmatpush1.bf16.msra.mxu1 %v6431_v2  ;;  %v6541_v1 = vcombine.low %v460_v53, %v468_v54  ;;  %v6543_v2 = vcombine.low %v461_v55, %v469_v56  ;;  %v572_v54 = vld [vmem:[%s7577_s8 + $0x9a0] sm:$0xff] }
 0x1d7   : > { %v8057_v16 = vpop.f32.mrb[3].mxu0  ;;  %5514 = vmatprep.subr.bf16.mxu0 %v6446_v3  ;;  %v8059_v19 = vpop.f32.mrb[3].mxu1  ;;  %5643 = vmatprep.subr.bf16.mxu1 %v6448_v5  ;;  %v6558_v3 = vcombine.high %v476_v61, %v484_v62  ;;  %v6560_v5 = vcombine.high %v477_v63, %v485_v0  ;;  %v580_v55 = vld [vmem:[%s7577_s8 + $0x9e0] sm:$0xff] }
 0x1d8   : > { %v7361_v56 = vld [vmem:[%s8721_s0 + $0xc] ss:$24 sps:$4 sm:$0xff]  }
 0x1da   : > { %5515 = vmatpush1.bf16.msra.mxu0 %v6445_v14  ;;  %5644 = vmatpush1.bf16.msra.mxu1 %v6447_v17  ;;  %v6557_v14 = vcombine.low %v476_v61, %v484_v62  ;;  %v6559_v17 = vcombine.low %v477_v63, %v485_v0  ;;  %v6654_v61 = vcombine.high %v572_v54, %v580_v55  ;;  %v588_v63 = vld [vmem:[%s7577_s8 + $0xa20] sm:$0xff] }
 0x1db   : > { %5516 = vmatprep.subr.bf16.mxu0 %v6462_v18  ;;  %5645 = vmatprep.subr.bf16.mxu1 %v6464_v20  ;;  %v6574_v18 = vcombine.high %v492_v6, %v500_v7  ;;  %v6576_v20 = vcombine.high %v493_v10, %v501_v11  ;;  %v596_v0 = vld [vmem:[%s7577_s8 + $0xa60] sm:$0xff] }
 0x1de   : > { %5517 = vmatpush1.bf16.msra.mxu0 %v6461_v25  ;;  %5646 = vmatpush1.bf16.msra.mxu1 %v6463_v26  ;;  %v6573_v25 = vcombine.low %v492_v6, %v500_v7  ;;  %v6575_v26 = vcombine.low %v493_v10, %v501_v11  ;;  %v6670_v6 = vcombine.high %v588_v63, %v596_v0  ;;  %v604_v10 = vld [vmem:[%s7577_s8 + $0xaa0] sm:$0xff] }
 0x1df   : > { %5518 = vmatprep.subr.bf16.mxu0 %v6478_v27  ;;  %5647 = vmatprep.subr.bf16.mxu1 %v6480_v28  ;;  %v6590_v27 = vcombine.high %v508_v21, %v516_v22  ;;  %v6592_v28 = vcombine.high %v509_v23, %v517_v24  ;;  %v612_v11 = vld [vmem:[%s7577_s8 + $0xae0] sm:$0xff] }
 0x1e2   : > { %5519 = vmatpush1.bf16.msra.mxu0 %v6477_v33  ;;  %5648 = vmatpush1.bf16.msra.mxu1 %v6479_v34  ;;  %v6589_v33 = vcombine.low %v508_v21, %v516_v22  ;;  %v6591_v34 = vcombine.low %v509_v23, %v517_v24  ;;  %v6686_v21 = vcombine.high %v604_v10, %v612_v11  ;;  %v620_v23 = vld [vmem:[%s7577_s8 + $0xb20] sm:$0xff] }
 0x1e3   : > { %5520 = vmatprep.subr.bf16.mxu0 %v6494_v35  ;;  %5649 = vmatprep.subr.bf16.mxu1 %v6496_v36  ;;  %v6606_v35 = vcombine.high %v524_v29, %v532_v30  ;;  %v6608_v36 = vcombine.high %v525_v31, %v533_v32  ;;  %v628_v24 = vld [vmem:[%s7577_s8 + $0xb60] sm:$0xff] }
 0x1e6   : > { %5521 = vmatpush1.bf16.msra.mxu0 %v6493_v41  ;;  %5650 = vmatpush1.bf16.msra.mxu1 %v6495_v42  ;;  %v6605_v41 = vcombine.low %v524_v29, %v532_v30  ;;  %v6607_v42 = vcombine.low %v525_v31, %v533_v32  ;;  %v6702_v29 = vcombine.high %v620_v23, %v628_v24  ;;  %v636_v31 = vld [vmem:[%s7577_s8 + $0xba0] sm:$0xff] }
 0x1e7   : > { %5522 = vmatprep.subr.bf16.mxu0 %v6510_v43  ;;  %5651 = vmatprep.subr.bf16.mxu1 %v6512_v44  ;;  %v6622_v43 = vcombine.high %v540_v37, %v548_v38  ;;  %v6624_v44 = vcombine.high %v541_v39, %v549_v40  ;;  %v644_v32 = vld [vmem:[%s7577_s8 + $0xbe0] sm:$0xff] }
 0x1ea   : > { %5523 = vmatpush1.bf16.msra.mxu0 %v6509_v49  ;;  %5652 = vmatpush1.bf16.msra.mxu1 %v6511_v50  ;;  %v565_v49 = vld [vmem:[%s7577_s8 + $0x968] sm:$0xff]  ;;  %v6621_v50 = vcombine.low %v540_v37, %v548_v38  ;;  %v6718_v37 = vcombine.high %v636_v31, %v644_v32 }
 0x1eb   : > { %5524 = vmatprep.subr.bf16.mxu0 %v6526_v51  ;;  %5653 = vmatprep.subr.bf16.mxu1 %v6528_v52  ;;  %v6623_v51 = vcombine.low %v541_v39, %v549_v40  ;;  %v6638_v52 = vcombine.high %v556_v45, %v564_v46  ;;  %v6640_v53 = vcombine.high %v557_v48, %v565_v49  ;;  %v652_v39 = vld [vmem:[%s7577_s8 + $0xc20] sm:$0xff] }
 0x1ec   : > { %v660_v40 = vld [vmem:[%s7577_s8 + $0xc60] sm:$0xff] }
 0x1ee   : > { %5525 = vmatpush1.bf16.msra.mxu0 %v6525_v57  ;;  %5654 = vmatpush1.bf16.msra.mxu1 %v6527_v58  ;;  %v573_v57 = vld [vmem:[%s7577_s8 + $0x9a8] sm:$0xff] }
 0x1ef   : > { %5526 = vmatprep.subr.bf16.mxu0 %v6542_v59  ;;  %5655 = vmatprep.subr.bf16.mxu1 %v6544_v60  ;;  %v581_v58 = vld [vmem:[%s7577_s8 + $0x9e8] sm:$0xff]  ;;  %v6637_v59 = vcombine.low %v556_v45, %v564_v46  ;;  %v6639_v60 = vcombine.low %v557_v48, %v565_v49  ;;  %v6734_v45 = vcombine.high %v652_v39, %v660_v40  ;;  %v676_v48 = vld [vmem:[%s7577_s8 + $0xce0] sm:$0xff] }
 0x1f0   : > { %v6656_v62 = vcombine.high %v573_v57, %v581_v58  ;;  %v669_v49 = vld [vmem:[%s7577_s8 + $0xca8] sm:$0xff] }
 0x1f2   : > { %5527 = vmatpush1.bf16.msra.mxu0 %v6541_v1  ;;  %5656 = vmatpush1.bf16.msra.mxu1 %v6543_v2  ;;  %v589_v1 = vld [vmem:[%s7577_s8 + $0xa28] sm:$0xff] }
 0x1f3   : > { %5528 = vmatprep.subr.bf16.mxu0 %v6558_v3  ;;  %5657 = vmatprep.subr.bf16.mxu1 %v6560_v5  ;;  %v597_v2 = vld [vmem:[%s7577_s8 + $0xa68] sm:$0xff]  ;;  %v6653_v3 = vcombine.low %v572_v54, %v580_v55  ;;  %v6655_v5 = vcombine.low %v573_v57, %v581_v58  ;;  %v684_v55 = vld [vmem:[%s7577_s8 + $0xd20] sm:$0xff] }
 0x1f4   : > { %v6672_v7 = vcombine.high %v589_v1, %v597_v2  ;;  %v685_v57 = vld [vmem:[%s7577_s8 + $0xd28] sm:$0xff] }
 0x1f5   : > { %v693_v58 = vld [vmem:[%s7577_s8 + $0xd68] sm:$0xff] }
 0x1f6   : > { %5529 = vmatpush1.bf16.msra.mxu0 %v6557_v14  ;;  %5658 = vmatpush1.bf16.msra.mxu1 %v6559_v17  ;;  %v605_v14 = vld [vmem:[%s7577_s8 + $0xaa8] sm:$0xff] }
 0x1f7   : > { %5530 = vmatprep.subr.bf16.mxu0 %v6574_v18  ;;  %5659 = vmatprep.subr.bf16.mxu1 %v6576_v20  ;;  %v613_v17 = vld [vmem:[%s7577_s8 + $0xae8] sm:$0xff]  ;;  %v6669_v18 = vcombine.low %v588_v63, %v596_v0  ;;  %v6671_v20 = vcombine.low %v589_v1, %v597_v2  ;;  %v700_v63 = vld [vmem:[%s7577_s8 + $0xda0] sm:$0xff] }
 0x1f8   : > { %v6688_v22 = vcombine.high %v605_v14, %v613_v17  ;;  %v708_v0 = vld [vmem:[%s7577_s8 + $0xde0] sm:$0xff]  ;;  %v701_v1 = vld [vmem:[%s7577_s8 + $0xda8] sm:$0xff] }
 0x1f9   : > { %v709_v2 = vld [vmem:[%s7577_s8 + $0xde8] sm:$0xff] }
 0x1fa   : > { %5531 = vmatpush1.bf16.msra.mxu0 %v6573_v25  ;;  %5660 = vmatpush1.bf16.msra.mxu1 %v6575_v26  ;;  %v621_v25 = vld [vmem:[%s7577_s8 + $0xb28] sm:$0xff] }
 0x1fb   : > { %5532 = vmatprep.subr.bf16.mxu0 %v6590_v27  ;;  %5661 = vmatprep.subr.bf16.mxu1 %v6592_v28  ;;  %v629_v26 = vld [vmem:[%s7577_s8 + $0xb68] sm:$0xff]  ;;  %v6685_v27 = vcombine.low %v604_v10, %v612_v11  ;;  %v6687_v28 = vcombine.low %v605_v14, %v613_v17  ;;  %v716_v10 = vld [vmem:[%s7577_s8 + $0xe20] sm:$0xff] }
 0x1fc   : > { %v6704_v30 = vcombine.high %v621_v25, %v629_v26  ;;  %v724_v11 = vld [vmem:[%s7577_s8 + $0xe60] sm:$0xff]  ;;  %v717_v14 = vld [vmem:[%s7577_s8 + $0xe28] sm:$0xff] }
 0x1fd   : > { %v725_v17 = vld [vmem:[%s7577_s8 + $0xe68] sm:$0xff] }
 0x1fe   : > { %5533 = vmatpush1.bf16.msra.mxu0 %v6589_v33  ;;  %5662 = vmatpush1.bf16.msra.mxu1 %v6591_v34  ;;  %v637_v33 = vld [vmem:[%s7577_s8 + $0xba8] sm:$0xff] }
 0x1ff   : > { %5545 = vmatprep.subr.bf16.mxu0 %v6606_v35  ;;  %5674 = vmatprep.subr.bf16.mxu1 %v6608_v36  ;;  %v645_v34 = vld [vmem:[%s7577_s8 + $0xbe8] sm:$0xff]  ;;  %v6701_v35 = vcombine.low %v620_v23, %v628_v24  ;;  %v6703_v36 = vcombine.low %v621_v25, %v629_v26  ;;  %v732_v23 = vld [vmem:[%s7577_s8 + $0xea0] sm:$0xff] }
 0x200   : > { %v6720_v38 = vcombine.high %v637_v33, %v645_v34  ;;  %v740_v24 = vld [vmem:[%s7577_s8 + $0xee0] sm:$0xff]  ;;  %v733_v25 = vld [vmem:[%s7577_s8 + $0xea8] sm:$0xff] }
 0x201   : > { %5535 = vmatmul.mubr.bf16.vlgmr.msra.gmra.mrb[8].mxu0 %v7360_v47  ;;  %5664 = vmatmul.mubr.bf16.vlgmr.msra.gmra.mrb[8].mxu1 %v7360_v47  ;;  %v668_v47 = vld [vmem:[%s7577_s8 + $0xca0] sm:$0xff]  ;;  %v741_v26 = vld [vmem:[%s7577_s8 + $0xee8] sm:$0xff] }
 0x202   : > { %5546 = vmatpush1.bf16.msra.mxu0 %v6605_v41  ;;  %5675 = vmatpush1.bf16.msra.mxu1 %v6607_v42  ;;  %v653_v41 = vld [vmem:[%s7577_s8 + $0xc28] sm:$0xff] }
 0x203   : > { %5547 = vmatprep.subr.bf16.mxu0 %v6622_v43  ;;  %5676 = vmatprep.subr.bf16.mxu1 %v6624_v44  ;;  %v661_v42 = vld [vmem:[%s7577_s8 + $0xc68] sm:$0xff]  ;;  %v6717_v43 = vcombine.low %v636_v31, %v644_v32  ;;  %v6719_v44 = vcombine.low %v637_v33, %v645_v34  ;;  %v748_v31 = vld [vmem:[%s7577_s8 + $0xf20] sm:$0xff] }
 0x204   : > { %5577 = vmatprep.mubr.bf16.mxu0 %v7361_v56  ;;  %5706 = vmatprep.mubr.bf16.mxu1 %v7361_v56  ;;  %v6736_v46 = vcombine.high %v653_v41, %v661_v42  ;;  %v692_v56 = vld [vmem:[%s7577_s8 + $0xd60] sm:$0xff]  ;;  %v749_v33 = vld [vmem:[%s7577_s8 + $0xf28] sm:$0xff] }
 0x205   : > { %v756_v32 = vld [vmem:[%s7577_s8 + $0xf60] sm:$0xff]  ;;  %v757_v34 = vld [vmem:[%s7577_s8 + $0xf68] sm:$0xff] }
 0x206   : > { %5548 = vmatpush1.bf16.msra.mxu0 %v6621_v50  ;;  %5677 = vmatpush1.bf16.msra.mxu1 %v6623_v51  ;;  %v677_v50 = vld [vmem:[%s7577_s8 + $0xce8] sm:$0xff]  ;;  %v6733_v51 = vcombine.low %v652_v39, %v660_v40  ;;  %v764_v39 = vld [vmem:[%s7577_s8 + $0xfa0] sm:$0xff] }
 0x207   : > { %5549 = vmatprep.subr.bf16.mxu0 %v6638_v52  ;;  %5678 = vmatprep.subr.bf16.mxu1 %v6640_v53  ;;  %v6735_v52 = vcombine.low %v653_v41, %v661_v42  ;;  %v6750_v53 = vcombine.high %v668_v47, %v676_v48  ;;  %v6752_v54 = vcombine.high %v669_v49, %v677_v50  ;;  %v772_v40 = vld [vmem:[%s7577_s8 + $0xfe0] sm:$0xff]  ;;  %v765_v41 = vld [vmem:[%s7577_s8 + $0xfa8] sm:$0xff] }
 0x208   : > { %v773_v42 = vld [vmem:[%s7577_s8 + $0xfe8] sm:$0xff] }
 0x20a   : > { %5550 = vmatpush1.bf16.msra.mxu0 %v6637_v59  ;;  %5679 = vmatpush1.bf16.msra.mxu1 %v6639_v60  ;;  %v6749_v59 = vcombine.low %v668_v47, %v676_v48  ;;  %v6751_v60 = vcombine.low %v669_v49, %v677_v50  ;;  %v780_v47 = vld [vmem:[%s7577_s8 + $0x1020] sm:$0xff]  ;;  %v781_v49 = vld [vmem:[%s7577_s8 + $0x1028] sm:$0xff] }
 0x20b   : > { %5551 = vmatprep.subr.bf16.mxu0 %v6654_v61  ;;  %5680 = vmatprep.subr.bf16.mxu1 %v6656_v62  ;;  %v6766_v61 = vcombine.high %v684_v55, %v692_v56  ;;  %v6768_v62 = vcombine.high %v685_v57, %v693_v58  ;;  %v788_v48 = vld [vmem:[%s7577_s8 + $0x1060] sm:$0xff]  ;;  %v789_v50 = vld [vmem:[%s7577_s8 + $0x1068] sm:$0xff] }
 0x20e   : > { %5552 = vmatpush1.bf16.msra.mxu0 %v6653_v3  ;;  %5681 = vmatpush1.bf16.msra.mxu1 %v6655_v5  ;;  %v6765_v3 = vcombine.low %v684_v55, %v692_v56  ;;  %v6767_v5 = vcombine.low %v685_v57, %v693_v58  ;;  %v796_v55 = vld [vmem:[%s7577_s8 + $0x10a0] sm:$0xff]  ;;  %v797_v57 = vld [vmem:[%s7577_s8 + $0x10a8] sm:$0xff] }
 0x20f   : > { %5553 = vmatprep.subr.bf16.mxu0 %v6670_v6  ;;  %5682 = vmatprep.subr.bf16.mxu1 %v6672_v7  ;;  %v6782_v6 = vcombine.high %v700_v63, %v708_v0  ;;  %v6784_v7 = vcombine.high %v701_v1, %v709_v2  ;;  %v804_v56 = vld [vmem:[%s7577_s8 + $0x10e0] sm:$0xff]  ;;  %v805_v58 = vld [vmem:[%s7577_s8 + $0x10e8] sm:$0xff] }
 0x212   : > { %5554 = vmatpush1.bf16.msra.mxu0 %v6669_v18  ;;  %5683 = vmatpush1.bf16.msra.mxu1 %v6671_v20  ;;  %v6781_v18 = vcombine.low %v700_v63, %v708_v0  ;;  %v6783_v20 = vcombine.low %v701_v1, %v709_v2  ;;  %v812_v63 = vld [vmem:[%s7577_s8 + $0x1120] sm:$0xff]  ;;  %v813_v2 = vld [vmem:[%s7577_s8 + $0x1128] sm:$0xff] }
 0x213   : > { %5555 = vmatprep.subr.bf16.mxu0 %v6686_v21  ;;  %5684 = vmatprep.subr.bf16.mxu1 %v6688_v22  ;;  %v6798_v21 = vcombine.high %v716_v10, %v724_v11  ;;  %v6800_v22 = vcombine.high %v717_v14, %v725_v17  ;;  %v820_v0 = vld [vmem:[%s7577_s8 + $0x1160] sm:$0xff] }
 0x214   : > { %v7362_v1 = vld [vmem:[%s8721_s0 + $0x8] ss:$24 sps:$4 sm:$0xff]  }
 0x216   : > { %5556 = vmatpush1.bf16.msra.mxu0 %v6685_v27  ;;  %5685 = vmatpush1.bf16.msra.mxu1 %v6687_v28  ;;  %v6797_v27 = vcombine.low %v716_v10, %v724_v11  ;;  %v6799_v28 = vcombine.low %v717_v14, %v725_v17  ;;  %v828_v11 = vld [vmem:[%s7577_s8 + $0x11a0] sm:$0xff]  ;;  %v7363_v17 = vld [vmem:[%s8721_s0 + $0x14] ss:$24 sps:$4 sm:$0xff]  }
 0x217   : > { %5557 = vmatprep.subr.bf16.mxu0 %v6702_v29  ;;  %5686 = vmatprep.subr.bf16.mxu1 %v6704_v30  ;;  %v6814_v29 = vcombine.high %v732_v23, %v740_v24  ;;  %v6816_v30 = vcombine.high %v733_v25, %v741_v26  ;;  %v836_v14 = vld [vmem:[%s7577_s8 + $0x11e0] sm:$0xff] }
 0x21a   : > { %5558 = vmatpush1.bf16.msra.mxu0 %v6701_v35  ;;  %5687 = vmatpush1.bf16.msra.mxu1 %v6703_v36  ;;  %v6813_v35 = vcombine.low %v732_v23, %v740_v24  ;;  %v6815_v36 = vcombine.low %v733_v25, %v741_v26  ;;  %v6910_v23 = vcombine.high %v828_v11, %v836_v14  ;;  %v844_v25 = vld [vmem:[%s7577_s8 + $0x1220] sm:$0xff] }
 0x21b   : > { %5559 = vmatprep.subr.bf16.mxu0 %v6718_v37  ;;  %5688 = vmatprep.subr.bf16.mxu1 %v6720_v38  ;;  %v6830_v37 = vcombine.high %v748_v31, %v756_v32  ;;  %v6832_v38 = vcombine.high %v749_v33, %v757_v34  ;;  %v852_v26 = vld [vmem:[%s7577_s8 + $0x1260] sm:$0xff] }
 0x21e   : > { %5560 = vmatpush1.bf16.msra.mxu0 %v6717_v43  ;;  %5689 = vmatpush1.bf16.msra.mxu1 %v6719_v44  ;;  %v6829_v43 = vcombine.low %v748_v31, %v756_v32  ;;  %v6831_v44 = vcombine.low %v749_v33, %v757_v34  ;;  %v6926_v31 = vcombine.high %v844_v25, %v852_v26  ;;  %v860_v33 = vld [vmem:[%s7577_s8 + $0x12a0] sm:$0xff] }
 0x21f   : > { %5561 = vmatprep.subr.bf16.mxu0 %v6734_v45  ;;  %5690 = vmatprep.subr.bf16.mxu1 %v6736_v46  ;;  %v6846_v45 = vcombine.high %v764_v39, %v772_v40  ;;  %v6848_v46 = vcombine.high %v765_v41, %v773_v42  ;;  %v868_v34 = vld [vmem:[%s7577_s8 + $0x12e0] sm:$0xff] }
 0x222   : > { %5562 = vmatpush1.bf16.msra.mxu0 %v6733_v51  ;;  %5691 = vmatpush1.bf16.msra.mxu1 %v6735_v52  ;;  %v6845_v51 = vcombine.low %v764_v39, %v772_v40  ;;  %v6847_v52 = vcombine.low %v765_v41, %v773_v42  ;;  %v6942_v39 = vcombine.high %v860_v33, %v868_v34  ;;  %v876_v41 = vld [vmem:[%s7577_s8 + $0x1320] sm:$0xff] }
 0x223   : > { %5563 = vmatprep.subr.bf16.mxu0 %v6750_v53  ;;  %5692 = vmatprep.subr.bf16.mxu1 %v6752_v54  ;;  %v6862_v53 = vcombine.high %v780_v47, %v788_v48  ;;  %v6864_v54 = vcombine.high %v781_v49, %v789_v50  ;;  %v884_v42 = vld [vmem:[%s7577_s8 + $0x1360] sm:$0xff] }
 0x226   : > { %5564 = vmatpush1.bf16.msra.mxu0 %v6749_v59  ;;  %5693 = vmatpush1.bf16.msra.mxu1 %v6751_v60  ;;  %v6861_v59 = vcombine.low %v780_v47, %v788_v48  ;;  %v6863_v60 = vcombine.low %v781_v49, %v789_v50  ;;  %v6958_v47 = vcombine.high %v876_v41, %v884_v42  ;;  %v892_v49 = vld [vmem:[%s7577_s8 + $0x13a0] sm:$0xff] }
 0x227   : > { %5565 = vmatprep.subr.bf16.mxu0 %v6766_v61  ;;  %5694 = vmatprep.subr.bf16.mxu1 %v6768_v62  ;;  %v6878_v61 = vcombine.high %v796_v55, %v804_v56  ;;  %v6880_v62 = vcombine.high %v797_v57, %v805_v58  ;;  %v900_v50 = vld [vmem:[%s7577_s8 + $0x13e0] sm:$0xff] }
 0x22a   : > { %5566 = vmatpush1.bf16.msra.mxu0 %v6765_v3  ;;  %5695 = vmatpush1.bf16.msra.mxu1 %v6767_v5  ;;  %v821_v3 = vld [vmem:[%s7577_s8 + $0x1168] sm:$0xff]  ;;  %v6877_v5 = vcombine.low %v796_v55, %v804_v56  ;;  %v6974_v55 = vcombine.high %v892_v49, %v900_v50 }
 0x22b   : > { %5567 = vmatprep.subr.bf16.mxu0 %v6782_v6  ;;  %5696 = vmatprep.subr.bf16.mxu1 %v6784_v7  ;;  %v6879_v6 = vcombine.low %v797_v57, %v805_v58  ;;  %v6894_v7 = vcombine.high %v812_v63, %v820_v0  ;;  %v6896_v10 = vcombine.high %v813_v2, %v821_v3  ;;  %v908_v57 = vld [vmem:[%s7577_s8 + $0x1420] sm:$0xff] }
 0x22c   : > { %v916_v58 = vld [vmem:[%s7577_s8 + $0x1460] sm:$0xff] }
 0x22e   : > { %5568 = vmatpush1.bf16.msra.mxu0 %v6781_v18  ;;  %5697 = vmatpush1.bf16.msra.mxu1 %v6783_v20  ;;  %v829_v18 = vld [vmem:[%s7577_s8 + $0x11a8] sm:$0xff] }
 0x22f   : > { %5569 = vmatprep.subr.bf16.mxu0 %v6798_v21  ;;  %5698 = vmatprep.subr.bf16.mxu1 %v6800_v22  ;;  %v837_v20 = vld [vmem:[%s7577_s8 + $0x11e8] sm:$0xff]  ;;  %v6893_v21 = vcombine.low %v812_v63, %v820_v0  ;;  %v6895_v22 = vcombine.low %v813_v2, %v821_v3  ;;  %v6990_v63 = vcombine.high %v908_v57, %v916_v58  ;;  %v932_v2 = vld [vmem:[%s7577_s8 + $0x14e0] sm:$0xff] }
 0x230   : > { %v6912_v24 = vcombine.high %v829_v18, %v837_v20  ;;  %v925_v3 = vld [vmem:[%s7577_s8 + $0x14a8] sm:$0xff] }
 0x232   : > { %5570 = vmatpush1.bf16.msra.mxu0 %v6797_v27  ;;  %5699 = vmatpush1.bf16.msra.mxu1 %v6799_v28  ;;  %v845_v27 = vld [vmem:[%s7577_s8 + $0x1228] sm:$0xff] }
 0x233   : > { %5571 = vmatprep.subr.bf16.mxu0 %v6814_v29  ;;  %5700 = vmatprep.subr.bf16.mxu1 %v6816_v30  ;;  %v853_v28 = vld [vmem:[%s7577_s8 + $0x1268] sm:$0xff]  ;;  %v6909_v29 = vcombine.low %v828_v11, %v836_v14  ;;  %v6911_v30 = vcombine.low %v829_v18, %v837_v20  ;;  %v940_v14 = vld [vmem:[%s7577_s8 + $0x1520] sm:$0xff] }
 0x234   : > { %v6928_v32 = vcombine.high %v845_v27, %v853_v28  ;;  %v941_v18 = vld [vmem:[%s7577_s8 + $0x1528] sm:$0xff] }
 0x235   : > { %v949_v20 = vld [vmem:[%s7577_s8 + $0x1568] sm:$0xff] }
 0x236   : > { %5572 = vmatpush1.bf16.msra.mxu0 %v6813_v35  ;;  %5701 = vmatpush1.bf16.msra.mxu1 %v6815_v36  ;;  %v861_v35 = vld [vmem:[%s7577_s8 + $0x12a8] sm:$0xff] }
 0x237   : > { %5573 = vmatprep.subr.bf16.mxu0 %v6830_v37  ;;  %5702 = vmatprep.subr.bf16.mxu1 %v6832_v38  ;;  %v869_v36 = vld [vmem:[%s7577_s8 + $0x12e8] sm:$0xff]  ;;  %v6925_v37 = vcombine.low %v844_v25, %v852_v26  ;;  %v6927_v38 = vcombine.low %v845_v27, %v853_v28  ;;  %v956_v25 = vld [vmem:[%s7577_s8 + $0x15a0] sm:$0xff] }
 0x238   : > { %v6944_v40 = vcombine.high %v861_v35, %v869_v36  ;;  %v964_v26 = vld [vmem:[%s7577_s8 + $0x15e0] sm:$0xff]  ;;  %v957_v27 = vld [vmem:[%s7577_s8 + $0x15a8] sm:$0xff] }
 0x239   : > { %v965_v28 = vld [vmem:[%s7577_s8 + $0x15e8] sm:$0xff] }
 0x23a   : > { %5574 = vmatpush1.bf16.msra.mxu0 %v6829_v43  ;;  %5703 = vmatpush1.bf16.msra.mxu1 %v6831_v44  ;;  %v877_v43 = vld [vmem:[%s7577_s8 + $0x1328] sm:$0xff] }
 0x23b   : > { %5575 = vmatprep.subr.bf16.mxu0 %v6846_v45  ;;  %5704 = vmatprep.subr.bf16.mxu1 %v6848_v46  ;;  %v885_v44 = vld [vmem:[%s7577_s8 + $0x1368] sm:$0xff]  ;;  %v6941_v45 = vcombine.low %v860_v33, %v868_v34  ;;  %v6943_v46 = vcombine.low %v861_v35, %v869_v36  ;;  %v972_v33 = vld [vmem:[%s7577_s8 + $0x1620] sm:$0xff] }
 0x23c   : > { %v6960_v48 = vcombine.high %v877_v43, %v885_v44  ;;  %v980_v34 = vld [vmem:[%s7577_s8 + $0x1660] sm:$0xff]  ;;  %v973_v35 = vld [vmem:[%s7577_s8 + $0x1628] sm:$0xff] }
 0x23d   : > { %v981_v36 = vld [vmem:[%s7577_s8 + $0x1668] sm:$0xff] }
 0x23e   : > { %5576 = vmatpush1.bf16.msra.mxu0 %v6845_v51  ;;  %5705 = vmatpush1.bf16.msra.mxu1 %v6847_v52  ;;  %v893_v51 = vld [vmem:[%s7577_s8 + $0x13a8] sm:$0xff] }
 0x23f   : > { %5588 = vmatprep.subr.bf16.mxu0 %v6862_v53  ;;  %5717 = vmatprep.subr.bf16.mxu1 %v6864_v54  ;;  %v901_v52 = vld [vmem:[%s7577_s8 + $0x13e8] sm:$0xff]  ;;  %v6957_v53 = vcombine.low %v876_v41, %v884_v42  ;;  %v6959_v54 = vcombine.low %v877_v43, %v885_v44  ;;  %v988_v41 = vld [vmem:[%s7577_s8 + $0x16a0] sm:$0xff] }
 0x240   : > { %v6976_v56 = vcombine.high %v893_v51, %v901_v52  ;;  %v996_v42 = vld [vmem:[%s7577_s8 + $0x16e0] sm:$0xff]  ;;  %v989_v43 = vld [vmem:[%s7577_s8 + $0x16a8] sm:$0xff] }
 0x241   : > { %5578 = vmatmul.mubr.bf16.vlgmr.msra.gmra.mrb[8].mxu0 %v7362_v1  ;;  %5707 = vmatmul.mubr.bf16.vlgmr.msra.gmra.mrb[8].mxu1 %v7362_v1  ;;  %v924_v1 = vld [vmem:[%s7577_s8 + $0x14a0] sm:$0xff]  ;;  %v997_v44 = vld [vmem:[%s7577_s8 + $0x16e8] sm:$0xff] }
 0x242   : > { %5589 = vmatpush1.bf16.msra.mxu0 %v6861_v59  ;;  %5718 = vmatpush1.bf16.msra.mxu1 %v6863_v60  ;;  %v909_v59 = vld [vmem:[%s7577_s8 + $0x1428] sm:$0xff] }
 0x243   : > { %5590 = vmatprep.subr.bf16.mxu0 %v6878_v61  ;;  %5719 = vmatprep.subr.bf16.mxu1 %v6880_v62  ;;  %v917_v60 = vld [vmem:[%s7577_s8 + $0x1468] sm:$0xff]  ;;  %v6973_v61 = vcombine.low %v892_v49, %v900_v50  ;;  %v6975_v62 = vcombine.low %v893_v51, %v901_v52  ;;  %v1004_v49 = vld [vmem:[%s7577_s8 + $0x1720] sm:$0xff] }
 0x244   : > { %5620 = vmatprep.mubr.bf16.mxu0 %v7363_v17  ;;  %5749 = vmatprep.mubr.bf16.mxu1 %v7363_v17  ;;  %v6992_v0 = vcombine.high %v909_v59, %v917_v60  ;;  %v948_v17 = vld [vmem:[%s7577_s8 + $0x1560] sm:$0xff]  ;;  %v1005_v51 = vld [vmem:[%s7577_s8 + $0x1728] sm:$0xff] }
 0x245   : > { %v1012_v50 = vld [vmem:[%s7577_s8 + $0x1760] sm:$0xff]  ;;  %v1013_v52 = vld [vmem:[%s7577_s8 + $0x1768] sm:$0xff] }
 0x246   : > { %5591 = vmatpush1.bf16.msra.mxu0 %v6877_v5  ;;  %5720 = vmatpush1.bf16.msra.mxu1 %v6879_v6  ;;  %v933_v5 = vld [vmem:[%s7577_s8 + $0x14e8] sm:$0xff]  ;;  %v6989_v6 = vcombine.low %v908_v57, %v916_v58  ;;  %v1020_v57 = vld [vmem:[%s7577_s8 + $0x17a0] sm:$0xff] }
 0x247   : > { %5592 = vmatprep.subr.bf16.mxu0 %v6894_v7  ;;  %5721 = vmatprep.subr.bf16.mxu1 %v6896_v10  ;;  %v6991_v7 = vcombine.low %v909_v59, %v917_v60  ;;  %v7006_v10 = vcombine.high %v924_v1, %v932_v2  ;;  %v7008_v11 = vcombine.high %v925_v3, %v933_v5  ;;  %v1028_v58 = vld [vmem:[%s7577_s8 + $0x17e0] sm:$0xff]  ;;  %v1021_v59 = vld [vmem:[%s7577_s8 + $0x17a8] sm:$0xff] }
 0x248   : > { %v1029_v60 = vld [vmem:[%s7577_s8 + $0x17e8] sm:$0xff] }
 0x24a   : > { %5593 = vmatpush1.bf16.msra.mxu0 %v6893_v21  ;;  %5722 = vmatpush1.bf16.msra.mxu1 %v6895_v22  ;;  %v7005_v21 = vcombine.low %v924_v1, %v932_v2  ;;  %v7007_v22 = vcombine.low %v925_v3, %v933_v5  ;;  %v270_v1 = vld [vmem:[%s7577_s8 + $0x30] sm:$0xff]  ;;  %v271_v3 = vld [vmem:[%s7577_s8 + $0x38] sm:$0xff] }
 0x24b   : > { %5594 = vmatprep.subr.bf16.mxu0 %v6910_v23  ;;  %5723 = vmatprep.subr.bf16.mxu1 %v6912_v24  ;;  %v7022_v23 = vcombine.high %v940_v14, %v948_v17  ;;  %v7024_v24 = vcombine.high %v941_v18, %v949_v20  ;;  %v278_v2 = vld [vmem:[%s7577_s8 + $0x70] sm:$0xff]  ;;  %v279_v5 = vld [vmem:[%s7577_s8 + $0x78] sm:$0xff] }
 0x24e   : > { %5595 = vmatpush1.bf16.msra.mxu0 %v6909_v29  ;;  %5724 = vmatpush1.bf16.msra.mxu1 %v6911_v30  ;;  %v7021_v29 = vcombine.low %v940_v14, %v948_v17  ;;  %v7023_v30 = vcombine.low %v941_v18, %v949_v20  ;;  %v286_v14 = vld [vmem:[%s7577_s8 + $0xb0] sm:$0xff]  ;;  %v287_v18 = vld [vmem:[%s7577_s8 + $0xb8] sm:$0xff] }
 0x24f   : > { %5596 = vmatprep.subr.bf16.mxu0 %v6926_v31  ;;  %5725 = vmatprep.subr.bf16.mxu1 %v6928_v32  ;;  %v7038_v31 = vcombine.high %v956_v25, %v964_v26  ;;  %v7040_v32 = vcombine.high %v957_v27, %v965_v28  ;;  %v294_v17 = vld [vmem:[%s7577_s8 + $0xf0] sm:$0xff]  ;;  %v295_v20 = vld [vmem:[%s7577_s8 + $0xf8] sm:$0xff] }
 0x252   : > { %5597 = vmatpush1.bf16.msra.mxu0 %v6925_v37  ;;  %5726 = vmatpush1.bf16.msra.mxu1 %v6927_v38  ;;  %v7037_v37 = vcombine.low %v956_v25, %v964_v26  ;;  %v7039_v38 = vcombine.low %v957_v27, %v965_v28  ;;  %v302_v25 = vld [vmem:[%s7577_s8 + $0x130] sm:$0xff]  ;;  %v303_v28 = vld [vmem:[%s7577_s8 + $0x138] sm:$0xff] }
 0x253   : > { %5598 = vmatprep.subr.bf16.mxu0 %v6942_v39  ;;  %5727 = vmatprep.subr.bf16.mxu1 %v6944_v40  ;;  %v7054_v39 = vcombine.high %v972_v33, %v980_v34  ;;  %v7056_v40 = vcombine.high %v973_v35, %v981_v36  ;;  %v310_v26 = vld [vmem:[%s7577_s8 + $0x170] sm:$0xff] }
 0x254   : > { %v7364_v27 = vld [vmem:[%s8721_s0 + $0x10] ss:$24 sps:$4 sm:$0xff]  }
 0x256   : > { %5599 = vmatpush1.bf16.msra.mxu0 %v6941_v45  ;;  %5728 = vmatpush1.bf16.msra.mxu1 %v6943_v46  ;;  %v7053_v45 = vcombine.low %v972_v33, %v980_v34  ;;  %v7055_v46 = vcombine.low %v973_v35, %v981_v36  ;;  %v318_v34 = vld [vmem:[%s7577_s8 + $0x1b0] sm:$0xff]  ;;  %v7365_v36 = vld [vmem:[%s8721_s0 + $0x4] ss:$24 sps:$4 sm:$0xff]  }
 0x257   : > { %5600 = vmatprep.subr.bf16.mxu0 %v6958_v47  ;;  %5729 = vmatprep.subr.bf16.mxu1 %v6960_v48  ;;  %v7070_v47 = vcombine.high %v988_v41, %v996_v42  ;;  %v7072_v48 = vcombine.high %v989_v43, %v997_v44  ;;  %v326_v35 = vld [vmem:[%s7577_s8 + $0x1f0] sm:$0xff] }
 0x25a   : > { %5601 = vmatpush1.bf16.msra.mxu0 %v6957_v53  ;;  %5730 = vmatpush1.bf16.msra.mxu1 %v6959_v54  ;;  %v7069_v53 = vcombine.low %v988_v41, %v996_v42  ;;  %v7071_v54 = vcombine.low %v989_v43, %v997_v44  ;;  %v6402_v41 = vcombine.high %v318_v34, %v326_v35  ;;  %v334_v43 = vld [vmem:[%s7577_s8 + $0x230] sm:$0xff] }
 0x25b   : > { %5602 = vmatprep.subr.bf16.mxu0 %v6974_v55  ;;  %5731 = vmatprep.subr.bf16.mxu1 %v6976_v56  ;;  %v7086_v55 = vcombine.high %v1004_v49, %v1012_v50  ;;  %v7088_v56 = vcombine.high %v1005_v51, %v1013_v52  ;;  %v342_v44 = vld [vmem:[%s7577_s8 + $0x270] sm:$0xff] }
 0x25e   : > { %5603 = vmatpush1.bf16.msra.mxu0 %v6973_v61  ;;  %5732 = vmatpush1.bf16.msra.mxu1 %v6975_v62  ;;  %v7085_v61 = vcombine.low %v1004_v49, %v1012_v50  ;;  %v7087_v62 = vcombine.low %v1005_v51, %v1013_v52  ;;  %v6418_v49 = vcombine.high %v334_v43, %v342_v44  ;;  %v350_v51 = vld [vmem:[%s7577_s8 + $0x2b0] sm:$0xff] }
 0x25f   : > { %5604 = vmatprep.subr.bf16.mxu0 %v6990_v63  ;;  %5733 = vmatprep.subr.bf16.mxu1 %v6992_v0  ;;  %v7102_v63 = vcombine.high %v1020_v57, %v1028_v58  ;;  %v7104_v0 = vcombine.high %v1021_v59, %v1029_v60  ;;  %v358_v52 = vld [vmem:[%s7577_s8 + $0x2f0] sm:$0xff] }
 0x262   : > { %5605 = vmatpush1.bf16.msra.mxu0 %v6989_v6  ;;  %5734 = vmatpush1.bf16.msra.mxu1 %v6991_v7  ;;  %v7101_v6 = vcombine.low %v1020_v57, %v1028_v58  ;;  %v7103_v7 = vcombine.low %v1021_v59, %v1029_v60  ;;  %v6434_v57 = vcombine.high %v350_v51, %v358_v52  ;;  %v366_v59 = vld [vmem:[%s7577_s8 + $0x330] sm:$0xff] }
 0x263   : > { %5606 = vmatprep.subr.bf16.mxu0 %v7006_v10  ;;  %5735 = vmatprep.subr.bf16.mxu1 %v7008_v11  ;;  %v6354_v10 = vcombine.high %v270_v1, %v278_v2  ;;  %v6356_v11 = vcombine.high %v271_v3, %v279_v5  ;;  %v374_v60 = vld [vmem:[%s7577_s8 + $0x370] sm:$0xff] }
 0x266   : > { %5607 = vmatpush1.bf16.msra.mxu0 %v7005_v21  ;;  %5736 = vmatpush1.bf16.msra.mxu1 %v7007_v22  ;;  %v6353_v21 = vcombine.low %v270_v1, %v278_v2  ;;  %v6355_v22 = vcombine.low %v271_v3, %v279_v5  ;;  %v6450_v1 = vcombine.high %v366_v59, %v374_v60  ;;  %v382_v5 = vld [vmem:[%s7577_s8 + $0x3b0] sm:$0xff] }
 0x267   : > { %5608 = vmatprep.subr.bf16.mxu0 %v7022_v23  ;;  %5737 = vmatprep.subr.bf16.mxu1 %v7024_v24  ;;  %v6370_v23 = vcombine.high %v286_v14, %v294_v17  ;;  %v6372_v24 = vcombine.high %v287_v18, %v295_v20 }
 0x26a   : > { %5609 = vmatpush1.bf16.msra.mxu0 %v7021_v29  ;;  %5738 = vmatpush1.bf16.msra.mxu1 %v7023_v30  ;;  %v311_v29 = vld [vmem:[%s7577_s8 + $0x178] sm:$0xff]  ;;  %v6369_v30 = vcombine.low %v286_v14, %v294_v17 }
 0x26b   : > { %5610 = vmatprep.subr.bf16.mxu0 %v7038_v31  ;;  %5739 = vmatprep.subr.bf16.mxu1 %v7040_v32  ;;  %v6371_v31 = vcombine.low %v287_v18, %v295_v20  ;;  %v6386_v32 = vcombine.high %v302_v25, %v310_v26  ;;  %v6388_v33 = vcombine.high %v303_v28, %v311_v29  ;;  %v391_v14 = vld [vmem:[%s7577_s8 + $0x3f8] sm:$0xff] }
 0x26c   : > { %v6449_v20 = vcombine.low %v366_v59, %v374_v60  ;;  %v462_v59 = vld [vmem:[%s7577_s8 + $0x630] sm:$0xff] }
 0x26d   : > { %v470_v60 = vld [vmem:[%s7577_s8 + $0x670] sm:$0xff] }
 0x26e   : > { %5611 = vmatpush1.bf16.msra.mxu0 %v7037_v37  ;;  %5740 = vmatpush1.bf16.msra.mxu1 %v7039_v38  ;;  %v319_v37 = vld [vmem:[%s7577_s8 + $0x1b8] sm:$0xff] }
 0x26f   : > { %5612 = vmatprep.subr.bf16.mxu0 %v7054_v39  ;;  %5741 = vmatprep.subr.bf16.mxu1 %v7056_v40  ;;  %v327_v38 = vld [vmem:[%s7577_s8 + $0x1f8] sm:$0xff]  ;;  %v6385_v39 = vcombine.low %v302_v25, %v310_v26  ;;  %v6387_v40 = vcombine.low %v303_v28, %v311_v29  ;;  %v406_v28 = vld [vmem:[%s7577_s8 + $0x470] sm:$0xff] }
 0x270   : > { %v6404_v42 = vcombine.high %v319_v37, %v327_v38  ;;  %v399_v29 = vld [vmem:[%s7577_s8 + $0x438] sm:$0xff] }
 0x272   : > { %5613 = vmatpush1.bf16.msra.mxu0 %v7053_v45  ;;  %5742 = vmatpush1.bf16.msra.mxu1 %v7055_v46  ;;  %v335_v45 = vld [vmem:[%s7577_s8 + $0x238] sm:$0xff] }
 0x273   : > { %5614 = vmatprep.subr.bf16.mxu0 %v7070_v47  ;;  %5743 = vmatprep.subr.bf16.mxu1 %v7072_v48  ;;  %v343_v46 = vld [vmem:[%s7577_s8 + $0x278] sm:$0xff]  ;;  %v6401_v47 = vcombine.low %v318_v34, %v326_v35  ;;  %v6403_v48 = vcombine.low %v319_v37, %v327_v38  ;;  %v414_v35 = vld [vmem:[%s7577_s8 + $0x4b0] sm:$0xff] }
 0x274   : > { %v6420_v50 = vcombine.high %v335_v45, %v343_v46  ;;  %v415_v37 = vld [vmem:[%s7577_s8 + $0x4b8] sm:$0xff] }
 0x275   : > { %v423_v38 = vld [vmem:[%s7577_s8 + $0x4f8] sm:$0xff] }
 0x276   : > { %5615 = vmatpush1.bf16.msra.mxu0 %v7069_v53  ;;  %5744 = vmatpush1.bf16.msra.mxu1 %v7071_v54  ;;  %v351_v53 = vld [vmem:[%s7577_s8 + $0x2b8] sm:$0xff] }
 0x277   : > { %5616 = vmatprep.subr.bf16.mxu0 %v7086_v55  ;;  %5745 = vmatprep.subr.bf16.mxu1 %v7088_v56  ;;  %v359_v54 = vld [vmem:[%s7577_s8 + $0x2f8] sm:$0xff]  ;;  %v6417_v55 = vcombine.low %v334_v43, %v342_v44  ;;  %v6419_v56 = vcombine.low %v335_v45, %v343_v46  ;;  %v430_v43 = vld [vmem:[%s7577_s8 + $0x530] sm:$0xff] }
 0x278   : > { %v6436_v58 = vcombine.high %v351_v53, %v359_v54  ;;  %v438_v44 = vld [vmem:[%s7577_s8 + $0x570] sm:$0xff]  ;;  %v431_v45 = vld [vmem:[%s7577_s8 + $0x538] sm:$0xff] }
 0x279   : > { %v439_v46 = vld [vmem:[%s7577_s8 + $0x578] sm:$0xff] }
 0x27a   : > { %5617 = vmatpush1.bf16.msra.mxu0 %v7085_v61  ;;  %5746 = vmatpush1.bf16.msra.mxu1 %v7087_v62  ;;  %v367_v61 = vld [vmem:[%s7577_s8 + $0x338] sm:$0xff] }
 0x27b   : > { %5618 = vmatprep.subr.bf16.mxu0 %v7102_v63  ;;  %5747 = vmatprep.subr.bf16.mxu1 %v7104_v0  ;;  %v375_v62 = vld [vmem:[%s7577_s8 + $0x378] sm:$0xff]  ;;  %v6433_v63 = vcombine.low %v350_v51, %v358_v52  ;;  %v6435_v0 = vcombine.low %v351_v53, %v359_v54  ;;  %v446_v51 = vld [vmem:[%s7577_s8 + $0x5b0] sm:$0xff] }
 0x27c   : > { %v6452_v3 = vcombine.high %v367_v61, %v375_v62  ;;  %v454_v52 = vld [vmem:[%s7577_s8 + $0x5f0] sm:$0xff]  ;;  %v447_v53 = vld [vmem:[%s7577_s8 + $0x5b8] sm:$0xff] }
 0x27d   : > { %v455_v54 = vld [vmem:[%s7577_s8 + $0x5f8] sm:$0xff] }
 0x27e   : > { %5619 = vmatpush1.bf16.msra.mxu0 %v7101_v6  ;;  %5748 = vmatpush1.bf16.msra.mxu1 %v7103_v7  ;;  %v390_v6 = vld [vmem:[%s7577_s8 + $0x3f0] sm:$0xff] }
 0x27f   : > { %5760 = vmatprep.subr.bf16.mxu0 %v6354_v10  ;;  %5889 = vmatprep.subr.bf16.mxu1 %v6356_v11  ;;  %v383_v11 = vld [vmem:[%s7577_s8 + $0x3b8] sm:$0xff] }
 0x280   : > { %v6468_v26 = vcombine.high %v383_v11, %v391_v14 }
 0x281   : > { %5621 = vmatmul.mubr.bf16.vlgmr.msra.gmra.mrb[8].mxu0 %v7364_v27  ;;  %5750 = vmatmul.mubr.bf16.vlgmr.msra.gmra.mrb[8].mxu1 %v7364_v27  ;;  %v398_v27 = vld [vmem:[%s7577_s8 + $0x430] sm:$0xff] }
 0x282   : > { %5761 = vmatpush1.bf16.msra.mxu0 %v6353_v21  ;;  %5890 = vmatpush1.bf16.msra.mxu1 %v6355_v22 }
 0x283   : > { %5762 = vmatprep.subr.bf16.mxu0 %v6370_v23  ;;  %5891 = vmatprep.subr.bf16.mxu1 %v6372_v24  ;;  %v6451_v23 = vcombine.low %v367_v61, %v375_v62  ;;  %v6466_v24 = vcombine.high %v382_v5, %v390_v6  ;;  %v463_v61 = vld [vmem:[%s7577_s8 + $0x638] sm:$0xff] }
 0x284   : > { %5792 = vmatprep.mubr.bf16.mxu0 %v7365_v36  ;;  %5921 = vmatprep.mubr.bf16.mxu1 %v7365_v36  ;;  %v422_v36 = vld [vmem:[%s7577_s8 + $0x4f0] sm:$0xff]  ;;  %v471_v62 = vld [vmem:[%s7577_s8 + $0x678] sm:$0xff] }
 0x286   : > { %5763 = vmatpush1.bf16.msra.mxu0 %v6369_v30  ;;  %5892 = vmatpush1.bf16.msra.mxu1 %v6371_v31  ;;  %v407_v30 = vld [vmem:[%s7577_s8 + $0x478] sm:$0xff]  ;;  %v6465_v31 = vcombine.low %v382_v5, %v390_v6  ;;  %v478_v5 = vld [vmem:[%s7577_s8 + $0x6b0] sm:$0xff] }
 0x287   : > { %5764 = vmatprep.subr.bf16.mxu0 %v6386_v32  ;;  %5893 = vmatprep.subr.bf16.mxu1 %v6388_v33  ;;  %v6467_v32 = vcombine.low %v383_v11, %v391_v14  ;;  %v6482_v33 = vcombine.high %v398_v27, %v406_v28  ;;  %v6484_v34 = vcombine.high %v399_v29, %v407_v30  ;;  %v486_v6 = vld [vmem:[%s7577_s8 + $0x6f0] sm:$0xff]  ;;  %v479_v11 = vld [vmem:[%s7577_s8 + $0x6b8] sm:$0xff] }
 0x288   : > { %v487_v14 = vld [vmem:[%s7577_s8 + $0x6f8] sm:$0xff] }
 0x28a   : > { %5765 = vmatpush1.bf16.msra.mxu0 %v6385_v39  ;;  %5894 = vmatpush1.bf16.msra.mxu1 %v6387_v40  ;;  %v6481_v39 = vcombine.low %v398_v27, %v406_v28  ;;  %v6483_v40 = vcombine.low %v399_v29, %v407_v30  ;;  %v494_v27 = vld [vmem:[%s7577_s8 + $0x730] sm:$0xff]  ;;  %v495_v29 = vld [vmem:[%s7577_s8 + $0x738] sm:$0xff] }
 0x28b   : > { %5766 = vmatprep.subr.bf16.mxu0 %v6402_v41  ;;  %5895 = vmatprep.subr.bf16.mxu1 %v6404_v42  ;;  %v6498_v41 = vcombine.high %v414_v35, %v422_v36  ;;  %v6500_v42 = vcombine.high %v415_v37, %v423_v38  ;;  %v502_v28 = vld [vmem:[%s7577_s8 + $0x770] sm:$0xff]  ;;  %v503_v30 = vld [vmem:[%s7577_s8 + $0x778] sm:$0xff] }
 0x28e   : > { %5767 = vmatpush1.bf16.msra.mxu0 %v6401_v47  ;;  %5896 = vmatpush1.bf16.msra.mxu1 %v6403_v48  ;;  %v6497_v47 = vcombine.low %v414_v35, %v422_v36  ;;  %v6499_v48 = vcombine.low %v415_v37, %v423_v38  ;;  %v510_v35 = vld [vmem:[%s7577_s8 + $0x7b0] sm:$0xff]  ;;  %v511_v37 = vld [vmem:[%s7577_s8 + $0x7b8] sm:$0xff] }
 0x28f   : > { %5768 = vmatprep.subr.bf16.mxu0 %v6418_v49  ;;  %5897 = vmatprep.subr.bf16.mxu1 %v6420_v50  ;;  %v6514_v49 = vcombine.high %v430_v43, %v438_v44  ;;  %v6516_v50 = vcombine.high %v431_v45, %v439_v46  ;;  %v518_v36 = vld [vmem:[%s7577_s8 + $0x7f0] sm:$0xff]  ;;  %v519_v38 = vld [vmem:[%s7577_s8 + $0x7f8] sm:$0xff] }
 0x292   : > { %5769 = vmatpush1.bf16.msra.mxu0 %v6417_v55  ;;  %5898 = vmatpush1.bf16.msra.mxu1 %v6419_v56  ;;  %v6513_v55 = vcombine.low %v430_v43, %v438_v44  ;;  %v6515_v56 = vcombine.low %v431_v45, %v439_v46  ;;  %v526_v43 = vld [vmem:[%s7577_s8 + $0x830] sm:$0xff]  ;;  %v527_v45 = vld [vmem:[%s7577_s8 + $0x838] sm:$0xff] }
 0x293   : > { %5770 = vmatprep.subr.bf16.mxu0 %v6434_v57  ;;  %5899 = vmatprep.subr.bf16.mxu1 %v6436_v58  ;;  %v6530_v57 = vcombine.high %v446_v51, %v454_v52  ;;  %v6532_v58 = vcombine.high %v447_v53, %v455_v54  ;;  %v534_v44 = vld [vmem:[%s7577_s8 + $0x870] sm:$0xff]  ;;  %v535_v46 = vld [vmem:[%s7577_s8 + $0x878] sm:$0xff] }
 0x294   : > { %v8267_v2 = vpop.f32.mrb[4].mxu0  ;;  %v8271_v7 = vpop.f32.mrb[4].mxu1 }
 0x295   : > { %v8273_v10 = vpop.f32.mrb[5].mxu0  ;;  %v8277_v17 = vpop.f32.mrb[5].mxu1 }
 0x296   : > { %v8279_v18 = vpop.f32.mrb[6].mxu0  ;;  %5771 = vmatpush1.bf16.msra.mxu0 %v6433_v63  ;;  %v8281_v21 = vpop.f32.mrb[6].mxu1  ;;  %5900 = vmatpush1.bf16.msra.mxu1 %v6435_v0  ;;  %v6529_v63 = vcombine.low %v446_v51, %v454_v52  ;;  %v6531_v0 = vcombine.low %v447_v53, %v455_v54  ;;  %v542_v51 = vld [vmem:[%s7577_s8 + $0x8b0] sm:$0xff]  ;;  %v543_v53 = vld [vmem:[%s7577_s8 + $0x8b8] sm:$0xff] }
 0x297   : > { %v8283_v22 = vpop.f32.mrb[7].mxu0  ;;  %5772 = vmatprep.subr.bf16.mxu0 %v6450_v1  ;;  %v8285_v25 = vpop.f32.mrb[7].mxu1  ;;  %5901 = vmatprep.subr.bf16.mxu1 %v6452_v3  ;;  %v6546_v1 = vcombine.high %v462_v59, %v470_v60  ;;  %v6548_v3 = vcombine.high %v463_v61, %v471_v62  ;;  %v550_v52 = vld [vmem:[%s7577_s8 + $0x8f0] sm:$0xff]  ;;  %v551_v54 = vld [vmem:[%s7577_s8 + $0x8f8] sm:$0xff] }
 0x29a   : > { %5773 = vmatpush1.bf16.msra.mxu0 %v6449_v20  ;;  %5902 = vmatpush1.bf16.msra.mxu1 %v6451_v23  ;;  %v6545_v20 = vcombine.low %v462_v59, %v470_v60  ;;  %v6547_v23 = vcombine.low %v463_v61, %v471_v62  ;;  %v558_v59 = vld [vmem:[%s7577_s8 + $0x930] sm:$0xff]  ;;  %v7366_v61 = vld [vmem:[%s8721_s0] ss:$24 sps:$4 sm:$0xff]  }
 0x29b   : > { %5774 = vmatprep.subr.bf16.mxu0 %v6466_v24  ;;  %5903 = vmatprep.subr.bf16.mxu1 %v6468_v26  ;;  %v6562_v24 = vcombine.high %v478_v5, %v486_v6  ;;  %v6564_v26 = vcombine.high %v479_v11, %v487_v14  ;;  %v566_v60 = vld [vmem:[%s7577_s8 + $0x970] sm:$0xff]  ;;  %v559_v62 = vld [vmem:[%s7577_s8 + $0x938] sm:$0xff] }
 0x29e   : > { %5775 = vmatpush1.bf16.msra.mxu0 %v6465_v31  ;;  %5904 = vmatpush1.bf16.msra.mxu1 %v6467_v32  ;;  %v6561_v31 = vcombine.low %v478_v5, %v486_v6  ;;  %v6563_v32 = vcombine.low %v479_v11, %v487_v14  ;;  %v574_v6 = vld [vmem:[%s7577_s8 + $0x9b0] sm:$0xff]  ;;  %v7367_v14 = vld [vmem:[%s8721_s0 + $0xc] ss:$24 sps:$4 sm:$0xff]  }
 0x29f   : > { %5776 = vmatprep.subr.bf16.mxu0 %v6482_v33  ;;  %5905 = vmatprep.subr.bf16.mxu1 %v6484_v34  ;;  %v6578_v33 = vcombine.high %v494_v27, %v502_v28  ;;  %v6580_v34 = vcombine.high %v495_v29, %v503_v30  ;;  %v582_v11 = vld [vmem:[%s7577_s8 + $0x9f0] sm:$0xff] }
 0x2a2   : > { %5777 = vmatpush1.bf16.msra.mxu0 %v6481_v39  ;;  %5906 = vmatpush1.bf16.msra.mxu1 %v6483_v40  ;;  %v6577_v39 = vcombine.low %v494_v27, %v502_v28  ;;  %v6579_v40 = vcombine.low %v495_v29, %v503_v30  ;;  %v6658_v27 = vcombine.high %v574_v6, %v582_v11  ;;  %v590_v29 = vld [vmem:[%s7577_s8 + $0xa30] sm:$0xff] }
 0x2a3   : > { %5778 = vmatprep.subr.bf16.mxu0 %v6498_v41  ;;  %5907 = vmatprep.subr.bf16.mxu1 %v6500_v42  ;;  %v6594_v41 = vcombine.high %v510_v35, %v518_v36  ;;  %v6596_v42 = vcombine.high %v511_v37, %v519_v38  ;;  %v598_v30 = vld [vmem:[%s7577_s8 + $0xa70] sm:$0xff] }
 0x2a6   : > { %5779 = vmatpush1.bf16.msra.mxu0 %v6497_v47  ;;  %5908 = vmatpush1.bf16.msra.mxu1 %v6499_v48  ;;  %v6593_v47 = vcombine.low %v510_v35, %v518_v36  ;;  %v6595_v48 = vcombine.low %v511_v37, %v519_v38  ;;  %v6674_v35 = vcombine.high %v590_v29, %v598_v30  ;;  %v606_v37 = vld [vmem:[%s7577_s8 + $0xab0] sm:$0xff] }
 0x2a7   : > { %5780 = vmatprep.subr.bf16.mxu0 %v6514_v49  ;;  %5909 = vmatprep.subr.bf16.mxu1 %v6516_v50  ;;  %v6610_v49 = vcombine.high %v526_v43, %v534_v44  ;;  %v6612_v50 = vcombine.high %v527_v45, %v535_v46  ;;  %v614_v38 = vld [vmem:[%s7577_s8 + $0xaf0] sm:$0xff] }
 0x2aa   : > { %5781 = vmatpush1.bf16.msra.mxu0 %v6513_v55  ;;  %5910 = vmatpush1.bf16.msra.mxu1 %v6515_v56  ;;  %v6609_v55 = vcombine.low %v526_v43, %v534_v44  ;;  %v6611_v56 = vcombine.low %v527_v45, %v535_v46  ;;  %v6690_v43 = vcombine.high %v606_v37, %v614_v38  ;;  %v622_v45 = vld [vmem:[%s7577_s8 + $0xb30] sm:$0xff] }
 0x2ab   : > { %5782 = vmatprep.subr.bf16.mxu0 %v6530_v57  ;;  %5911 = vmatprep.subr.bf16.mxu1 %v6532_v58  ;;  %v6626_v57 = vcombine.high %v542_v51, %v550_v52  ;;  %v6628_v58 = vcombine.high %v543_v53, %v551_v54  ;;  %v630_v46 = vld [vmem:[%s7577_s8 + $0xb70] sm:$0xff] }
 0x2ae   : > { %5783 = vmatpush1.bf16.msra.mxu0 %v6529_v63  ;;  %5912 = vmatpush1.bf16.msra.mxu1 %v6531_v0  ;;  %v567_v63 = vld [vmem:[%s7577_s8 + $0x978] sm:$0xff]  ;;  %v6625_v0 = vcombine.low %v542_v51, %v550_v52  ;;  %v6706_v51 = vcombine.high %v622_v45, %v630_v46 }
 0x2af   : > { %5784 = vmatprep.subr.bf16.mxu0 %v6546_v1  ;;  %5913 = vmatprep.subr.bf16.mxu1 %v6548_v3  ;;  %v6627_v1 = vcombine.low %v543_v53, %v551_v54  ;;  %v6642_v3 = vcombine.high %v558_v59, %v566_v60  ;;  %v6644_v5 = vcombine.high %v559_v62, %v567_v63  ;;  %v638_v53 = vld [vmem:[%s7577_s8 + $0xbb0] sm:$0xff] }
 0x2b0   : > { %v646_v54 = vld [vmem:[%s7577_s8 + $0xbf0] sm:$0xff] }
 0x2b2   : > { %5785 = vmatpush1.bf16.msra.mxu0 %v6545_v20  ;;  %5914 = vmatpush1.bf16.msra.mxu1 %v6547_v23  ;;  %v575_v20 = vld [vmem:[%s7577_s8 + $0x9b8] sm:$0xff] }
 0x2b3   : > { %5786 = vmatprep.subr.bf16.mxu0 %v6562_v24  ;;  %5915 = vmatprep.subr.bf16.mxu1 %v6564_v26  ;;  %v583_v23 = vld [vmem:[%s7577_s8 + $0x9f8] sm:$0xff]  ;;  %v6641_v24 = vcombine.low %v558_v59, %v566_v60  ;;  %v6643_v26 = vcombine.low %v559_v62, %v567_v63  ;;  %v6722_v59 = vcombine.high %v638_v53, %v646_v54  ;;  %v662_v62 = vld [vmem:[%s7577_s8 + $0xc70] sm:$0xff] }
 0x2b4   : > { %v6660_v28 = vcombine.high %v575_v20, %v583_v23  ;;  %v655_v63 = vld [vmem:[%s7577_s8 + $0xc38] sm:$0xff] }
 0x2b6   : > { %5787 = vmatpush1.bf16.msra.mxu0 %v6561_v31  ;;  %5916 = vmatpush1.bf16.msra.mxu1 %v6563_v32  ;;  %v591_v31 = vld [vmem:[%s7577_s8 + $0xa38] sm:$0xff] }
 0x2b7   : > { %5788 = vmatprep.subr.bf16.mxu0 %v6578_v33  ;;  %5917 = vmatprep.subr.bf16.mxu1 %v6580_v34  ;;  %v599_v32 = vld [vmem:[%s7577_s8 + $0xa78] sm:$0xff]  ;;  %v6657_v33 = vcombine.low %v574_v6, %v582_v11  ;;  %v6659_v34 = vcombine.low %v575_v20, %v583_v23  ;;  %v670_v11 = vld [vmem:[%s7577_s8 + $0xcb0] sm:$0xff] }
 0x2b8   : > { %v6676_v36 = vcombine.high %v591_v31, %v599_v32  ;;  %v671_v20 = vld [vmem:[%s7577_s8 + $0xcb8] sm:$0xff] }
 0x2b9   : > { %v679_v23 = vld [vmem:[%s7577_s8 + $0xcf8] sm:$0xff] }
 0x2ba   : > { %5789 = vmatpush1.bf16.msra.mxu0 %v6577_v39  ;;  %5918 = vmatpush1.bf16.msra.mxu1 %v6579_v40  ;;  %v607_v39 = vld [vmem:[%s7577_s8 + $0xab8] sm:$0xff] }
 0x2bb   : > { %5790 = vmatprep.subr.bf16.mxu0 %v6594_v41  ;;  %5919 = vmatprep.subr.bf16.mxu1 %v6596_v42  ;;  %v615_v40 = vld [vmem:[%s7577_s8 + $0xaf8] sm:$0xff]  ;;  %v6673_v41 = vcombine.low %v590_v29, %v598_v30  ;;  %v6675_v42 = vcombine.low %v591_v31, %v599_v32  ;;  %v686_v29 = vld [vmem:[%s7577_s8 + $0xd30] sm:$0xff] }
 0x2bc   : > { %v6692_v44 = vcombine.high %v607_v39, %v615_v40  ;;  %v694_v30 = vld [vmem:[%s7577_s8 + $0xd70] sm:$0xff]  ;;  %v687_v31 = vld [vmem:[%s7577_s8 + $0xd38] sm:$0xff] }
 0x2bd   : > { %v695_v32 = vld [vmem:[%s7577_s8 + $0xd78] sm:$0xff] }
 0x2be   : > { %5791 = vmatpush1.bf16.msra.mxu0 %v6593_v47  ;;  %5920 = vmatpush1.bf16.msra.mxu1 %v6595_v48  ;;  %v623_v47 = vld [vmem:[%s7577_s8 + $0xb38] sm:$0xff] }
 0x2bf   : > { %5803 = vmatprep.subr.bf16.mxu0 %v6610_v49  ;;  %5932 = vmatprep.subr.bf16.mxu1 %v6612_v50  ;;  %v631_v48 = vld [vmem:[%s7577_s8 + $0xb78] sm:$0xff]  ;;  %v6689_v49 = vcombine.low %v606_v37, %v614_v38  ;;  %v6691_v50 = vcombine.low %v607_v39, %v615_v40  ;;  %v702_v37 = vld [vmem:[%s7577_s8 + $0xdb0] sm:$0xff] }
 0x2c0   : > { %v6708_v52 = vcombine.high %v623_v47, %v631_v48  ;;  %v710_v38 = vld [vmem:[%s7577_s8 + $0xdf0] sm:$0xff]  ;;  %v703_v39 = vld [vmem:[%s7577_s8 + $0xdb8] sm:$0xff] }
 0x2c1   : > { %5793 = vmatmul.mubr.bf16.vlgmr.msra.gmra.mrb[12].mxu0 %v7366_v61  ;;  %5922 = vmatmul.mubr.bf16.vlgmr.msra.gmra.mrb[12].mxu1 %v7366_v61  ;;  %v654_v61 = vld [vmem:[%s7577_s8 + $0xc30] sm:$0xff]  ;;  %v711_v40 = vld [vmem:[%s7577_s8 + $0xdf8] sm:$0xff] }
 0x2c2   : > { %5804 = vmatpush1.bf16.msra.mxu0 %v6609_v55  ;;  %5933 = vmatpush1.bf16.msra.mxu1 %v6611_v56  ;;  %v639_v55 = vld [vmem:[%s7577_s8 + $0xbb8] sm:$0xff] }
 0x2c3   : > { %5805 = vmatprep.subr.bf16.mxu0 %v6626_v57  ;;  %5934 = vmatprep.subr.bf16.mxu1 %v6628_v58  ;;  %v647_v56 = vld [vmem:[%s7577_s8 + $0xbf8] sm:$0xff]  ;;  %v6705_v57 = vcombine.low %v622_v45, %v630_v46  ;;  %v6707_v58 = vcombine.low %v623_v47, %v631_v48  ;;  %v718_v45 = vld [vmem:[%s7577_s8 + $0xe30] sm:$0xff] }
 0x2c4   : > { %5835 = vmatprep.mubr.bf16.mxu0 %v7367_v14  ;;  %5964 = vmatprep.mubr.bf16.mxu1 %v7367_v14  ;;  %v6724_v60 = vcombine.high %v639_v55, %v647_v56  ;;  %v678_v14 = vld [vmem:[%s7577_s8 + $0xcf0] sm:$0xff]  ;;  %v719_v47 = vld [vmem:[%s7577_s8 + $0xe38] sm:$0xff] }
 0x2c5   : > { %v726_v46 = vld [vmem:[%s7577_s8 + $0xe70] sm:$0xff]  ;;  %v727_v48 = vld [vmem:[%s7577_s8 + $0xe78] sm:$0xff] }
 0x2c6   : > { %5806 = vmatpush1.bf16.msra.mxu0 %v6625_v0  ;;  %5935 = vmatpush1.bf16.msra.mxu1 %v6627_v1  ;;  %v663_v0 = vld [vmem:[%s7577_s8 + $0xc78] sm:$0xff]  ;;  %v6721_v1 = vcombine.low %v638_v53, %v646_v54  ;;  %v734_v53 = vld [vmem:[%s7577_s8 + $0xeb0] sm:$0xff] }
 0x2c7   : > { %5807 = vmatprep.subr.bf16.mxu0 %v6642_v3  ;;  %5936 = vmatprep.subr.bf16.mxu1 %v6644_v5  ;;  %v6723_v3 = vcombine.low %v639_v55, %v647_v56  ;;  %v6738_v5 = vcombine.high %v654_v61, %v662_v62  ;;  %v6740_v6 = vcombine.high %v655_v63, %v663_v0  ;;  %v742_v54 = vld [vmem:[%s7577_s8 + $0xef0] sm:$0xff]  ;;  %v735_v55 = vld [vmem:[%s7577_s8 + $0xeb8] sm:$0xff] }
 0x2c8   : > { %v743_v56 = vld [vmem:[%s7577_s8 + $0xef8] sm:$0xff] }
 0x2ca   : > { %5808 = vmatpush1.bf16.msra.mxu0 %v6641_v24  ;;  %5937 = vmatpush1.bf16.msra.mxu1 %v6643_v26  ;;  %v6737_v24 = vcombine.low %v654_v61, %v662_v62  ;;  %v6739_v26 = vcombine.low %v655_v63, %v663_v0  ;;  %v750_v61 = vld [vmem:[%s7577_s8 + $0xf30] sm:$0xff]  ;;  %v751_v63 = vld [vmem:[%s7577_s8 + $0xf38] sm:$0xff] }
 0x2cb   : > { %5809 = vmatprep.subr.bf16.mxu0 %v6658_v27  ;;  %5938 = vmatprep.subr.bf16.mxu1 %v6660_v28  ;;  %v6754_v27 = vcombine.high %v670_v11, %v678_v14  ;;  %v6756_v28 = vcombine.high %v671_v20, %v679_v23  ;;  %v758_v62 = vld [vmem:[%s7577_s8 + $0xf70] sm:$0xff]  ;;  %v759_v0 = vld [vmem:[%s7577_s8 + $0xf78] sm:$0xff] }
 0x2ce   : > { %5810 = vmatpush1.bf16.msra.mxu0 %v6657_v33  ;;  %5939 = vmatpush1.bf16.msra.mxu1 %v6659_v34  ;;  %v6753_v33 = vcombine.low %v670_v11, %v678_v14  ;;  %v6755_v34 = vcombine.low %v671_v20, %v679_v23  ;;  %v766_v11 = vld [vmem:[%s7577_s8 + $0xfb0] sm:$0xff]  ;;  %v767_v20 = vld [vmem:[%s7577_s8 + $0xfb8] sm:$0xff] }
 0x2cf   : > { %5811 = vmatprep.subr.bf16.mxu0 %v6674_v35  ;;  %5940 = vmatprep.subr.bf16.mxu1 %v6676_v36  ;;  %v6770_v35 = vcombine.high %v686_v29, %v694_v30  ;;  %v6772_v36 = vcombine.high %v687_v31, %v695_v32  ;;  %v774_v14 = vld [vmem:[%s7577_s8 + $0xff0] sm:$0xff]  ;;  %v775_v23 = vld [vmem:[%s7577_s8 + $0xff8] sm:$0xff] }
 0x2d2   : > { %5812 = vmatpush1.bf16.msra.mxu0 %v6673_v41  ;;  %5941 = vmatpush1.bf16.msra.mxu1 %v6675_v42  ;;  %v6769_v41 = vcombine.low %v686_v29, %v694_v30  ;;  %v6771_v42 = vcombine.low %v687_v31, %v695_v32  ;;  %v782_v29 = vld [vmem:[%s7577_s8 + $0x1030] sm:$0xff]  ;;  %v783_v31 = vld [vmem:[%s7577_s8 + $0x1038] sm:$0xff] }
 0x2d3   : > { %5813 = vmatprep.subr.bf16.mxu0 %v6690_v43  ;;  %5942 = vmatprep.subr.bf16.mxu1 %v6692_v44  ;;  %v6786_v43 = vcombine.high %v702_v37, %v710_v38  ;;  %v6788_v44 = vcombine.high %v703_v39, %v711_v40  ;;  %v790_v30 = vld [vmem:[%s7577_s8 + $0x1070] sm:$0xff]  ;;  %v791_v32 = vld [vmem:[%s7577_s8 + $0x1078] sm:$0xff] }
 0x2d6   : > { %5814 = vmatpush1.bf16.msra.mxu0 %v6689_v49  ;;  %5943 = vmatpush1.bf16.msra.mxu1 %v6691_v50  ;;  %v6785_v49 = vcombine.low %v702_v37, %v710_v38  ;;  %v6787_v50 = vcombine.low %v703_v39, %v711_v40  ;;  %v798_v37 = vld [vmem:[%s7577_s8 + $0x10b0] sm:$0xff]  ;;  %v799_v39 = vld [vmem:[%s7577_s8 + $0x10b8] sm:$0xff] }
 0x2d7   : > { %5815 = vmatprep.subr.bf16.mxu0 %v6706_v51  ;;  %5944 = vmatprep.subr.bf16.mxu1 %v6708_v52  ;;  %v6802_v51 = vcombine.high %v718_v45, %v726_v46  ;;  %v6804_v52 = vcombine.high %v719_v47, %v727_v48  ;;  %v806_v38 = vld [vmem:[%s7577_s8 + $0x10f0] sm:$0xff]  ;;  %v807_v40 = vld [vmem:[%s7577_s8 + $0x10f8] sm:$0xff] }
 0x2da   : > { %5816 = vmatpush1.bf16.msra.mxu0 %v6705_v57  ;;  %5945 = vmatpush1.bf16.msra.mxu1 %v6707_v58  ;;  %v6801_v57 = vcombine.low %v718_v45, %v726_v46  ;;  %v6803_v58 = vcombine.low %v719_v47, %v727_v48  ;;  %v814_v45 = vld [vmem:[%s7577_s8 + $0x1130] sm:$0xff]  ;;  %v7368_v47 = vld [vmem:[%s8721_s0 + $0x8] ss:$24 sps:$4 sm:$0xff]   ;;  %v815_v48 = vld [vmem:[%s7577_s8 + $0x1138] sm:$0xff] }
 0x2db   : > { %5817 = vmatprep.subr.bf16.mxu0 %v6722_v59  ;;  %5946 = vmatprep.subr.bf16.mxu1 %v6724_v60  ;;  %v6818_v59 = vcombine.high %v734_v53, %v742_v54  ;;  %v6820_v60 = vcombine.high %v735_v55, %v743_v56  ;;  %v822_v46 = vld [vmem:[%s7577_s8 + $0x1170] sm:$0xff] }
 0x2de   : > { %5818 = vmatpush1.bf16.msra.mxu0 %v6721_v1  ;;  %5947 = vmatpush1.bf16.msra.mxu1 %v6723_v3  ;;  %v6817_v1 = vcombine.low %v734_v53, %v742_v54  ;;  %v6819_v3 = vcombine.low %v735_v55, %v743_v56  ;;  %v830_v54 = vld [vmem:[%s7577_s8 + $0x11b0] sm:$0xff] }
 0x2df   : > { %5819 = vmatprep.subr.bf16.mxu0 %v6738_v5  ;;  %5948 = vmatprep.subr.bf16.mxu1 %v6740_v6  ;;  %v6834_v5 = vcombine.high %v750_v61, %v758_v62  ;;  %v6836_v6 = vcombine.high %v751_v63, %v759_v0  ;;  %v838_v55 = vld [vmem:[%s7577_s8 + $0x11f0] sm:$0xff] }
 0x2e0   : > { %v7369_v56 = vld [vmem:[%s8721_s0 + $0x14] ss:$24 sps:$4 sm:$0xff]  }
 0x2e2   : > { %5820 = vmatpush1.bf16.msra.mxu0 %v6737_v24  ;;  %5949 = vmatpush1.bf16.msra.mxu1 %v6739_v26  ;;  %v6833_v24 = vcombine.low %v750_v61, %v758_v62  ;;  %v6835_v26 = vcombine.low %v751_v63, %v759_v0  ;;  %v6914_v61 = vcombine.high %v830_v54, %v838_v55  ;;  %v846_v63 = vld [vmem:[%s7577_s8 + $0x1230] sm:$0xff] }
 0x2e3   : > { %5821 = vmatprep.subr.bf16.mxu0 %v6754_v27  ;;  %5950 = vmatprep.subr.bf16.mxu1 %v6756_v28  ;;  %v6850_v27 = vcombine.high %v766_v11, %v774_v14  ;;  %v6852_v28 = vcombine.high %v767_v20, %v775_v23  ;;  %v854_v0 = vld [vmem:[%s7577_s8 + $0x1270] sm:$0xff] }
 0x2e6   : > { %5822 = vmatpush1.bf16.msra.mxu0 %v6753_v33  ;;  %5951 = vmatpush1.bf16.msra.mxu1 %v6755_v34  ;;  %v6849_v33 = vcombine.low %v766_v11, %v774_v14  ;;  %v6851_v34 = vcombine.low %v767_v20, %v775_v23  ;;  %v6930_v11 = vcombine.high %v846_v63, %v854_v0  ;;  %v862_v20 = vld [vmem:[%s7577_s8 + $0x12b0] sm:$0xff] }
 0x2e7   : > { %5823 = vmatprep.subr.bf16.mxu0 %v6770_v35  ;;  %5952 = vmatprep.subr.bf16.mxu1 %v6772_v36  ;;  %v6866_v35 = vcombine.high %v782_v29, %v790_v30  ;;  %v6868_v36 = vcombine.high %v783_v31, %v791_v32  ;;  %v870_v23 = vld [vmem:[%s7577_s8 + $0x12f0] sm:$0xff] }
 0x2ea   : > { %5824 = vmatpush1.bf16.msra.mxu0 %v6769_v41  ;;  %5953 = vmatpush1.bf16.msra.mxu1 %v6771_v42  ;;  %v6865_v41 = vcombine.low %v782_v29, %v790_v30  ;;  %v6867_v42 = vcombine.low %v783_v31, %v791_v32  ;;  %v6946_v29 = vcombine.high %v862_v20, %v870_v23  ;;  %v878_v31 = vld [vmem:[%s7577_s8 + $0x1330] sm:$0xff] }
 0x2eb   : > { %5825 = vmatprep.subr.bf16.mxu0 %v6786_v43  ;;  %5954 = vmatprep.subr.bf16.mxu1 %v6788_v44  ;;  %v6882_v43 = vcombine.high %v798_v37, %v806_v38  ;;  %v6884_v44 = vcombine.high %v799_v39, %v807_v40  ;;  %v886_v32 = vld [vmem:[%s7577_s8 + $0x1370] sm:$0xff] }
 0x2ee   : > { %5826 = vmatpush1.bf16.msra.mxu0 %v6785_v49  ;;  %5955 = vmatpush1.bf16.msra.mxu1 %v6787_v50  ;;  %v823_v49 = vld [vmem:[%s7577_s8 + $0x1178] sm:$0xff]  ;;  %v6881_v50 = vcombine.low %v798_v37, %v806_v38  ;;  %v6962_v37 = vcombine.high %v878_v31, %v886_v32 }
 0x2ef   : > { %5827 = vmatprep.subr.bf16.mxu0 %v6802_v51  ;;  %5956 = vmatprep.subr.bf16.mxu1 %v6804_v52  ;;  %v6883_v51 = vcombine.low %v799_v39, %v807_v40  ;;  %v6898_v52 = vcombine.high %v814_v45, %v822_v46  ;;  %v6900_v53 = vcombine.high %v815_v48, %v823_v49  ;;  %v894_v39 = vld [vmem:[%s7577_s8 + $0x13b0] sm:$0xff] }
 0x2f0   : > { %v902_v40 = vld [vmem:[%s7577_s8 + $0x13f0] sm:$0xff] }
 0x2f2   : > { %5828 = vmatpush1.bf16.msra.mxu0 %v6801_v57  ;;  %5957 = vmatpush1.bf16.msra.mxu1 %v6803_v58  ;;  %v831_v57 = vld [vmem:[%s7577_s8 + $0x11b8] sm:$0xff] }
 0x2f3   : > { %5829 = vmatprep.subr.bf16.mxu0 %v6818_v59  ;;  %5958 = vmatprep.subr.bf16.mxu1 %v6820_v60  ;;  %v839_v58 = vld [vmem:[%s7577_s8 + $0x11f8] sm:$0xff]  ;;  %v6897_v59 = vcombine.low %v814_v45, %v822_v46  ;;  %v6899_v60 = vcombine.low %v815_v48, %v823_v49  ;;  %v6978_v45 = vcombine.high %v894_v39, %v902_v40  ;;  %v918_v48 = vld [vmem:[%s7577_s8 + $0x1470] sm:$0xff] }
 0x2f4   : > { %v6916_v62 = vcombine.high %v831_v57, %v839_v58  ;;  %v911_v49 = vld [vmem:[%s7577_s8 + $0x1438] sm:$0xff] }
 0x2f6   : > { %5830 = vmatpush1.bf16.msra.mxu0 %v6817_v1  ;;  %5959 = vmatpush1.bf16.msra.mxu1 %v6819_v3  ;;  %v847_v1 = vld [vmem:[%s7577_s8 + $0x1238] sm:$0xff] }
 0x2f7   : > { %5831 = vmatprep.subr.bf16.mxu0 %v6834_v5  ;;  %5960 = vmatprep.subr.bf16.mxu1 %v6836_v6  ;;  %v855_v3 = vld [vmem:[%s7577_s8 + $0x1278] sm:$0xff]  ;;  %v6913_v5 = vcombine.low %v830_v54, %v838_v55  ;;  %v6915_v6 = vcombine.low %v831_v57, %v839_v58  ;;  %v926_v55 = vld [vmem:[%s7577_s8 + $0x14b0] sm:$0xff] }
 0x2f8   : > { %v6932_v14 = vcombine.high %v847_v1, %v855_v3  ;;  %v927_v57 = vld [vmem:[%s7577_s8 + $0x14b8] sm:$0xff] }
 0x2f9   : > { %v935_v58 = vld [vmem:[%s7577_s8 + $0x14f8] sm:$0xff] }
 0x2fa   : > { %5832 = vmatpush1.bf16.msra.mxu0 %v6833_v24  ;;  %5961 = vmatpush1.bf16.msra.mxu1 %v6835_v26  ;;  %v863_v24 = vld [vmem:[%s7577_s8 + $0x12b8] sm:$0xff] }
 0x2fb   : > { %5833 = vmatprep.subr.bf16.mxu0 %v6850_v27  ;;  %5962 = vmatprep.subr.bf16.mxu1 %v6852_v28  ;;  %v871_v26 = vld [vmem:[%s7577_s8 + $0x12f8] sm:$0xff]  ;;  %v6929_v27 = vcombine.low %v846_v63, %v854_v0  ;;  %v6931_v28 = vcombine.low %v847_v1, %v855_v3  ;;  %v942_v63 = vld [vmem:[%s7577_s8 + $0x1530] sm:$0xff] }
 0x2fc   : > { %v6948_v30 = vcombine.high %v863_v24, %v871_v26  ;;  %v950_v0 = vld [vmem:[%s7577_s8 + $0x1570] sm:$0xff]  ;;  %v943_v1 = vld [vmem:[%s7577_s8 + $0x1538] sm:$0xff] }
 0x2fd   : > { %v951_v3 = vld [vmem:[%s7577_s8 + $0x1578] sm:$0xff] }
 0x2fe   : > { %5834 = vmatpush1.bf16.msra.mxu0 %v6849_v33  ;;  %5963 = vmatpush1.bf16.msra.mxu1 %v6851_v34  ;;  %v879_v33 = vld [vmem:[%s7577_s8 + $0x1338] sm:$0xff] }
 0x2ff   : > { %5846 = vmatprep.subr.bf16.mxu0 %v6866_v35  ;;  %5975 = vmatprep.subr.bf16.mxu1 %v6868_v36  ;;  %v887_v34 = vld [vmem:[%s7577_s8 + $0x1378] sm:$0xff]  ;;  %v6945_v35 = vcombine.low %v862_v20, %v870_v23  ;;  %v6947_v36 = vcombine.low %v863_v24, %v871_v26  ;;  %v958_v20 = vld [vmem:[%s7577_s8 + $0x15b0] sm:$0xff] }
 0x300   : > { %v6964_v38 = vcombine.high %v879_v33, %v887_v34  ;;  %v966_v23 = vld [vmem:[%s7577_s8 + $0x15f0] sm:$0xff]  ;;  %v959_v24 = vld [vmem:[%s7577_s8 + $0x15b8] sm:$0xff] }
 0x301   : > { %5836 = vmatmul.mubr.bf16.vlgmr.msra.gmra.mrb[12].mxu0 %v7368_v47  ;;  %5965 = vmatmul.mubr.bf16.vlgmr.msra.gmra.mrb[12].mxu1 %v7368_v47  ;;  %v910_v47 = vld [vmem:[%s7577_s8 + $0x1430] sm:$0xff]  ;;  %v967_v26 = vld [vmem:[%s7577_s8 + $0x15f8] sm:$0xff] }
 0x302   : > { %5847 = vmatpush1.bf16.msra.mxu0 %v6865_v41  ;;  %5976 = vmatpush1.bf16.msra.mxu1 %v6867_v42  ;;  %v895_v41 = vld [vmem:[%s7577_s8 + $0x13b8] sm:$0xff] }
 0x303   : > { %5848 = vmatprep.subr.bf16.mxu0 %v6882_v43  ;;  %5977 = vmatprep.subr.bf16.mxu1 %v6884_v44  ;;  %v903_v42 = vld [vmem:[%s7577_s8 + $0x13f8] sm:$0xff]  ;;  %v6961_v43 = vcombine.low %v878_v31, %v886_v32  ;;  %v6963_v44 = vcombine.low %v879_v33, %v887_v34  ;;  %v974_v31 = vld [vmem:[%s7577_s8 + $0x1630] sm:$0xff] }
 0x304   : > { %5878 = vmatprep.mubr.bf16.mxu0 %v7369_v56  ;;  %6007 = vmatprep.mubr.bf16.mxu1 %v7369_v56  ;;  %v6980_v46 = vcombine.high %v895_v41, %v903_v42  ;;  %v934_v56 = vld [vmem:[%s7577_s8 + $0x14f0] sm:$0xff]  ;;  %v975_v33 = vld [vmem:[%s7577_s8 + $0x1638] sm:$0xff] }
 0x305   : > { %v982_v32 = vld [vmem:[%s7577_s8 + $0x1670] sm:$0xff]  ;;  %v983_v34 = vld [vmem:[%s7577_s8 + $0x1678] sm:$0xff] }
 0x306   : > { %5849 = vmatpush1.bf16.msra.mxu0 %v6881_v50  ;;  %5978 = vmatpush1.bf16.msra.mxu1 %v6883_v51  ;;  %v919_v50 = vld [vmem:[%s7577_s8 + $0x1478] sm:$0xff]  ;;  %v6977_v51 = vcombine.low %v894_v39, %v902_v40  ;;  %v990_v39 = vld [vmem:[%s7577_s8 + $0x16b0] sm:$0xff] }
 0x307   : > { %5850 = vmatprep.subr.bf16.mxu0 %v6898_v52  ;;  %5979 = vmatprep.subr.bf16.mxu1 %v6900_v53  ;;  %v6979_v52 = vcombine.low %v895_v41, %v903_v42  ;;  %v6994_v53 = vcombine.high %v910_v47, %v918_v48  ;;  %v6996_v54 = vcombine.high %v911_v49, %v919_v50  ;;  %v998_v40 = vld [vmem:[%s7577_s8 + $0x16f0] sm:$0xff]  ;;  %v991_v41 = vld [vmem:[%s7577_s8 + $0x16b8] sm:$0xff] }
 0x308   : > { %v999_v42 = vld [vmem:[%s7577_s8 + $0x16f8] sm:$0xff] }
 0x30a   : > { %5851 = vmatpush1.bf16.msra.mxu0 %v6897_v59  ;;  %5980 = vmatpush1.bf16.msra.mxu1 %v6899_v60  ;;  %v6993_v59 = vcombine.low %v910_v47, %v918_v48  ;;  %v6995_v60 = vcombine.low %v911_v49, %v919_v50  ;;  %v1006_v47 = vld [vmem:[%s7577_s8 + $0x1730] sm:$0xff]  ;;  %v1007_v49 = vld [vmem:[%s7577_s8 + $0x1738] sm:$0xff] }
 0x30b   : > { %5852 = vmatprep.subr.bf16.mxu0 %v6914_v61  ;;  %5981 = vmatprep.subr.bf16.mxu1 %v6916_v62  ;;  %v7010_v61 = vcombine.high %v926_v55, %v934_v56  ;;  %v7012_v62 = vcombine.high %v927_v57, %v935_v58  ;;  %v1014_v48 = vld [vmem:[%s7577_s8 + $0x1770] sm:$0xff]  ;;  %v1015_v50 = vld [vmem:[%s7577_s8 + $0x1778] sm:$0xff] }
 0x30e   : > { %5853 = vmatpush1.bf16.msra.mxu0 %v6913_v5  ;;  %5982 = vmatpush1.bf16.msra.mxu1 %v6915_v6  ;;  %v7009_v5 = vcombine.low %v926_v55, %v934_v56  ;;  %v7011_v6 = vcombine.low %v927_v57, %v935_v58  ;;  %v1022_v55 = vld [vmem:[%s7577_s8 + $0x17b0] sm:$0xff]  ;;  %v1023_v57 = vld [vmem:[%s7577_s8 + $0x17b8] sm:$0xff] }
 0x30f   : > { %5854 = vmatprep.subr.bf16.mxu0 %v6930_v11  ;;  %5983 = vmatprep.subr.bf16.mxu1 %v6932_v14  ;;  %v7026_v11 = vcombine.high %v942_v63, %v950_v0  ;;  %v7028_v14 = vcombine.high %v943_v1, %v951_v3  ;;  %v1030_v56 = vld [vmem:[%s7577_s8 + $0x17f0] sm:$0xff]  ;;  %v1031_v58 = vld [vmem:[%s7577_s8 + $0x17f8] sm:$0xff] }
 0x312   : > { %5855 = vmatpush1.bf16.msra.mxu0 %v6929_v27  ;;  %5984 = vmatpush1.bf16.msra.mxu1 %v6931_v28  ;;  %v7025_v27 = vcombine.low %v942_v63, %v950_v0  ;;  %v7027_v28 = vcombine.low %v943_v1, %v951_v3  ;;  %v7105_v63 = vcombine.low %v1022_v55, %v1030_v56  ;;  %v7370_v1 = vld [vmem:[%s8721_s0 + $0x10] ss:$24 sps:$4 sm:$0xff]  }
 0x313   : > { %5856 = vmatprep.subr.bf16.mxu0 %v6946_v29  ;;  %5985 = vmatprep.subr.bf16.mxu1 %v6948_v30  ;;  %v7042_v29 = vcombine.high %v958_v20, %v966_v23  ;;  %v7044_v30 = vcombine.high %v959_v24, %v967_v26  ;;  %v7107_v0 = vcombine.low %v1023_v57, %v1031_v58 }
 0x316   : > { %5857 = vmatpush1.bf16.msra.mxu0 %v6945_v35  ;;  %5986 = vmatpush1.bf16.msra.mxu1 %v6947_v36  ;;  %v7041_v35 = vcombine.low %v958_v20, %v966_v23  ;;  %v7043_v36 = vcombine.low %v959_v24, %v967_v26  ;;  %v1036_v26 = vlaneseq }
 0x317   : > { %5858 = vmatprep.subr.bf16.mxu0 %v6962_v37  ;;  %5987 = vmatprep.subr.bf16.mxu1 %v6964_v38  ;;  %v7058_v37 = vcombine.high %v974_v31, %v982_v32  ;;  %v7060_v38 = vcombine.high %v975_v33, %v983_v34 }
 0x31a   : > { %5859 = vmatpush1.bf16.msra.mxu0 %v6961_v43  ;;  %5988 = vmatpush1.bf16.msra.mxu1 %v6963_v44  ;;  %v7057_v43 = vcombine.low %v974_v31, %v982_v32  ;;  %v7059_v44 = vcombine.low %v975_v33, %v983_v34 }
 0x31b   : > { %5860 = vmatprep.subr.bf16.mxu0 %v6978_v45  ;;  %5989 = vmatprep.subr.bf16.mxu1 %v6980_v46  ;;  %v7074_v45 = vcombine.high %v990_v39, %v998_v40  ;;  %v7076_v46 = vcombine.high %v991_v41, %v999_v42 }
 0x31e   : > { %5861 = vmatpush1.bf16.msra.mxu0 %v6977_v51  ;;  %5990 = vmatpush1.bf16.msra.mxu1 %v6979_v52  ;;  %v7073_v51 = vcombine.low %v990_v39, %v998_v40  ;;  %v7075_v52 = vcombine.low %v991_v41, %v999_v42 }
 0x31f   : > { %5862 = vmatprep.subr.bf16.mxu0 %v6994_v53  ;;  %5991 = vmatprep.subr.bf16.mxu1 %v6996_v54  ;;  %v7090_v53 = vcombine.high %v1006_v47, %v1014_v48  ;;  %v7092_v54 = vcombine.high %v1007_v49, %v1015_v50 }
 0x322   : > { %5863 = vmatpush1.bf16.msra.mxu0 %v6993_v59  ;;  %5992 = vmatpush1.bf16.msra.mxu1 %v6995_v60  ;;  %v7089_v59 = vcombine.low %v1006_v47, %v1014_v48  ;;  %v7091_v60 = vcombine.low %v1007_v49, %v1015_v50  ;;  %v1033_v47 = vld [vmem:[%s7587_s5 + $0x8] sm:$0xff] }
 0x323   : > { %5864 = vmatprep.subr.bf16.mxu0 %v7010_v61  ;;  %5993 = vmatprep.subr.bf16.mxu1 %v7012_v62  ;;  %v7106_v61 = vcombine.high %v1022_v55, %v1030_v56  ;;  %v7108_v62 = vcombine.high %v1023_v57, %v1031_v58 }
 0x326   : > { %5865 = vmatpush1.bf16.msra.mxu0 %v7009_v5  ;;  %5994 = vmatpush1.bf16.msra.mxu1 %v7011_v6 }
 0x327   : > { %5866 = vmatprep.subr.bf16.mxu0 %v7026_v11  ;;  %5995 = vmatprep.subr.bf16.mxu1 %v7028_v14 }
 0x32a   : > { %5867 = vmatpush1.bf16.msra.mxu0 %v7025_v27  ;;  %5996 = vmatpush1.bf16.msra.mxu1 %v7027_v28  ;;  %v8470_v27 = vshrl.u32 %v1036_v26, 7 }
 0x32b   : > { %5868 = vmatprep.subr.bf16.mxu0 %v7042_v29  ;;  %5997 = vmatprep.subr.bf16.mxu1 %v7044_v30  ;;  %v1032_v30 = vld [vmem:[%s7587_s5] sm:$0xff] }
 0x32c   : > { %v1038_v28 = vsub.s32 0, %v8470_v27  ;;  %v1046_v29 = vsub.s32 2, %v8470_v27  ;;  %v1042_v31 = vsub.s32 1, %v8470_v27  ;;  %v1050_v32 = vsub.s32 3, %v8470_v27 }
 0x32d   : > { %v1054_v33 = vsub.s32 4, %v8470_v27  ;;  %v1058_v34 = vsub.s32 5, %v8470_v27 }
 0x32e   : > { %5869 = vmatpush1.bf16.msra.mxu0 %v7041_v35  ;;  %5998 = vmatpush1.bf16.msra.mxu1 %v7043_v36  ;;  %v1039_v35 = vrot.slane %v1032_v30, %v1038_v28  ;;  %v1047_v36 = vrot.slane %v1032_v30, %v1046_v29 }
 0x32f   : > { %5870 = vmatprep.subr.bf16.mxu0 %v7058_v37  ;;  %5999 = vmatprep.subr.bf16.mxu1 %v7060_v38  ;;  %v1043_v37 = vrot.slane %v1032_v30, %v1042_v31  ;;  %v1051_v38 = vrot.slane %v1032_v30, %v1050_v32  ;;  %v1055_v39 = vrot.slane %v1032_v30, %v1054_v33 }
 0x330   : > { %v1059_v40 = vrot.slane %v1032_v30, %v1058_v34  ;;  %v8480_v41 = vadd.f32 %v8041_v4, %v1039_v35  ;;  %v8483_v42 = vadd.f32 %v8045_v8, %v1047_v36  ;;  %v8495_v48 = vadd.f32 %v8053_v13, %v1039_v35 }
 0x331   : > { %v8498_v4 = vadd.f32 %v8055_v15, %v1047_v36  ;;  %v8501_v8 = vadd.f32 %v8267_v2, %v1055_v39  ;;  %v8504_v49 = vadd.f32 %v8057_v16, %v1043_v37  ;;  %v1071_v15 = vrot.slane %v1033_v47, %v1038_v28 }
 0x332   : > { %5871 = vmatpush1.bf16.msra.mxu0 %v7057_v43  ;;  %6000 = vmatpush1.bf16.msra.mxu1 %v7059_v44  ;;  %v1062_v43 = vsub.s32 6, %v8470_v27  ;;  %v8487_v44 = vadd.f32 %v8047_v9, %v1043_v37  ;;  %v8507_v9 = vadd.f32 %v8059_v19, %v1051_v38  ;;  %v6020_v50 = vmax.f32 %v8480_v41, %v8483_v42 }
 0x333   : > { %5872 = vmatprep.subr.bf16.mxu0 %v7074_v45  ;;  %6001 = vmatprep.subr.bf16.mxu1 %v7076_v46  ;;  %v8490_v45 = vadd.f32 %v8051_v12, %v1051_v38  ;;  %v1066_v46 = vsub.s32 7, %v8470_v27  ;;  %v8510_v12 = vadd.f32 %v8273_v10, %v1059_v40  ;;  %v8520_v16 = vadd.f32 %v8283_v22, %v1059_v40 }
 0x334   : > { %v1063_v13 = vrot.slane %v1032_v30, %v1062_v43  ;;  %v1075_v19 = vrot.slane %v1033_v47, %v1042_v31  ;;  %v6037_v10 = vmax.f32 %v8495_v48, %v8498_v4  ;;  %v1087_v26 = vrot.slane %v1033_v47, %v1054_v33 }
 0x335   : > { %v6021_v2 = vmax.f32 %v8487_v44, %v8490_v45  ;;  %v1091_v28 = vrot.slane %v1033_v47, %v1058_v34 }
 0x336   : > { %5873 = vmatpush1.bf16.msra.mxu0 %v7073_v51  ;;  %6002 = vmatpush1.bf16.msra.mxu1 %v7075_v52  ;;  %v8515_v51 = vadd.f32 %v8279_v18, %v1055_v39  ;;  %v1067_v52 = vrot.slane %v1032_v30, %v1066_v46  ;;  %v8529_v55 = vadd.f32 %v8271_v7, %v1063_v13 }
 0x337   : > { %5874 = vmatprep.subr.bf16.mxu0 %v7090_v53  ;;  %6003 = vmatprep.subr.bf16.mxu1 %v7092_v54  ;;  %v6022_v53 = vmax.f32 %v6020_v50, %v8501_v8  ;;  %v6038_v54 = vmax.f32 %v8504_v49, %v8507_v9  ;;  %v6023_v18 = vmax.f32 %v6021_v2, %v8510_v12 }
 0x338   : > { %v6039_v56 = vmax.f32 %v6037_v10, %v8515_v51  ;;  %v8535_v22 = vadd.f32 %v8277_v17, %v1067_v52 }
 0x339   : > { %v6040_v58 = vmax.f32 %v6038_v54, %v8520_v16 }
 0x33a   : > { %5875 = vmatpush1.bf16.msra.mxu0 %v7089_v59  ;;  %6004 = vmatpush1.bf16.msra.mxu1 %v7091_v60  ;;  %v6024_v60 = vmax.f32 %v6022_v53, %v8529_v55  ;;  %v6025_v7 = vmax.f32 %v6023_v18, %v8535_v22 }
 0x33b   : > { %5876 = vmatprep.subr.bf16.mxu0 %v7106_v61  ;;  %6005 = vmatprep.subr.bf16.mxu1 %v7108_v62  ;;  %v8542_v61 = vadd.f32 %v8281_v21, %v1063_v13  ;;  %v1079_v62 = vrot.slane %v1033_v47, %v1046_v29 }
 0x33e   : > { %5877 = vmatpush1.bf16.msra.mxu0 %v7105_v63  ;;  %6006 = vmatpush1.bf16.msra.mxu1 %v7107_v0  ;;  %v8548_v0 = vadd.f32 %v8285_v25, %v1067_v52  ;;  %v1095_v25 = vrot.slane %v1033_v47, %v1062_v43 }
 0x340   : > { %v6042_v27 = vmax.f32 %v6040_v58, %v8548_v0 }
 0x341   : > { %5879 = vmatmul.mubr.bf16.vlgmr.msra.gmra.mrb[12].mxu0 %v7370_v1  ;;  %6008 = vmatmul.mubr.bf16.vlgmr.msra.gmra.mrb[12].mxu1 %v7370_v1  ;;  %v1083_v1 = vrot.slane %v1033_v47, %v1050_v32  ;;  %v1099_v32 = vrot.slane %v1033_v47, %v1066_v46 }
 0x354   : > { %v5622_v3 = vpop.f32.mrb[8].mxu0  ;;  %v8462_v5 = vpop.f32.mrb[8].mxu1 }
 0x355   : > { %v5624_v6 = vpop.f32.mrb[9].mxu0  ;;  %v8464_v11 = vpop.f32.mrb[9].mxu1  ;;  %v8532_v57 = vadd.f32 %v5622_v3, %v1071_v15  ;;  %v6041_v3 = vmax.f32 %v6039_v56, %v8542_v61 }
 0x356   : > { %v5626_v14 = vpop.f32.mrb[10].mxu0  ;;  %v8466_v20 = vpop.f32.mrb[10].mxu1  ;;  %v8538_v59 = vadd.f32 %v5624_v6, %v1075_v19  ;;  %v8561_v30 = vadd.f32 %v8464_v11, %v1083_v1 }
 0x357   : > { %v5628_v23 = vpop.f32.mrb[11].mxu0  ;;  %v8468_v24 = vpop.f32.mrb[11].mxu1  ;;  %v8544_v63 = vadd.f32 %v5626_v14, %v1071_v15  ;;  %v6026_v6 = vmax.f32 %v6024_v60, %v8532_v57  ;;  %v8557_v14 = vadd.f32 %v8462_v5, %v1079_v62  ;;  %v8566_v35 = vadd.f32 %v8466_v20, %v1079_v62 }
 0x358   : > { %v8550_v17 = vadd.f32 %v5628_v23, %v1075_v19  ;;  %v6027_v21 = vmax.f32 %v6025_v7, %v8538_v59  ;;  %v8572_v38 = vadd.f32 %v8468_v24, %v1083_v1 }
 0x359   : > { %v6043_v29 = vmax.f32 %v6041_v3, %v8544_v63  ;;  %v6028_v33 = vmax.f32 %v6026_v6, %v8557_v14  ;;  %v7463_v3 = vmov 0   ;;  %v8598_v6 = vld [vmem:[#allocation2] sm:$0xff] }
 0x35a   : > { %v6044_v23 = vmax.f32 %v6042_v27, %v8550_v17  ;;  %v6029_v37 = vmax.f32 %v6027_v21, %v8561_v30  ;;  %7274 = vset.pattern.permute.xlu1 %v7463_v3  ;;  %7275 = vset.pattern.permute.xlu0 %v7463_v3  ;;  %v8603_v21 = vld [vmem:[#allocation2 + $0x8] sm:$0xff] }
 0x35b   : > { %v6045_v43 = vmax.f32 %v6043_v29, %v8566_v35 }
 0x35c   : > { %v6046_v15 = vmax.f32 %v6044_v23, %v8572_v38 }
 0x414   : > { %v5880_v31 = vpop.f32.mrb[12].mxu0  ;;  %v6009_v34 = vpop.f32.mrb[12].mxu1 }
 0x415   : > { %v8568_v36 = vadd.f32 %v5880_v31, %v1087_v26  ;;  %v5882_v5 = vpop.f32.mrb[13].mxu0  ;;  %v6011_v39 = vpop.f32.mrb[13].mxu1  ;;  %v8578_v47 = vadd.f32 %v6009_v34, %v1095_v25 }
 0x416   : > { %v8574_v11 = vadd.f32 %v5882_v5, %v1091_v28  ;;  %v5884_v40 = vpop.f32.mrb[14].mxu0  ;;  %v6013_v50 = vpop.f32.mrb[14].mxu1  ;;  %v8584_v24 = vadd.f32 %v6011_v39, %v1099_v32 }
 0x417   : > { %v6030_v46 = vmax.f32 %v6028_v33, %v8568_v36  ;;  %v8580_v20 = vadd.f32 %v5884_v40, %v1087_v26  ;;  %v5886_v13 = vpop.f32.mrb[15].mxu0  ;;  %v6015_v19 = vpop.f32.mrb[15].mxu1  ;;  %v8590_v54 = vadd.f32 %v6013_v50, %v1095_v25 }
 0x418   : > { %v6031_v2 = vmax.f32 %v6029_v37, %v8574_v11  ;;  %v8586_v52 = vadd.f32 %v5886_v13, %v1091_v28  ;;  %v8593_v56 = vadd.f32 %v6015_v19, %v1099_v32 }
 0x419   : > { %v6047_v10 = vmax.f32 %v6045_v43, %v8580_v20  ;;  %v6032_v53 = vmax.f32 %v6030_v46, %v8578_v47 }
 0x41a   : > { %v6048_v18 = vmax.f32 %v6046_v15, %v8586_v52  ;;  %v6033_v58 = vmax.f32 %v6031_v2, %v8584_v24 }
 0x41b   : > { %v6049_v60 = vmax.f32 %v6047_v10, %v8590_v54 }
 0x41c   : > { %v6050_v62 = vmax.f32 %v6048_v18, %v8593_v56  ;;  %v6034_v7 = vmax.f32 %v6032_v53, %v6033_v58 }
 0x41e   : > { %6035 = vmax.xlane.f32.xlu0 %v6034_v7  ;;  %v6051_v1 = vmax.f32 %v6049_v60, %v6050_v62 }
 0x422   : > { %6052 = vmax.xlane.f32.xlu0 %v6051_v1 }
 0x4ab   : > { %v6036_v26 = vpop.xlane.xlu0 %6035 }
 0x4ac   : > { %v8601_v27 = vmax.f32 %v8598_v6, %v6036_v26 }
 0x4ae   : > { %v6058_v28 = vsub.f32 %v8598_v6, %v8601_v27  ;;  %6211 = vst.msk [vmem:[#allocation2] sm:$0xff] %vm6208_vm1, %v8601_v27  ;;  %6068 = vperm.xlu1 %7274, %v8601_v27  }
 0x4af   : > { %v6053_v29 = vpop.xlane.xlu0 %6052 }
 0x4b0   : > { %v8611_v25 = vmax.f32 %v8603_v21, %v6053_v29 }
 0x4b2   : > { %v6059_v23 = vsub.f32 %v8603_v21, %v8611_v25  ;;  %6212 = vst.msk [vmem:[#allocation2 + $0x8] sm:$0xff] %vm6208_vm1, %v8611_v25  ;;  %6073 = vperm.xlu1 %7274, %v8611_v25  }
 0x52d   : > { %v8618_v31 = vpop.permute.xlu1 %6068 }
 0x52e   : > { %v6076_v32 = vsub.f32 %v8480_v41, %v8618_v31  ;;  %v6077_v33 = vsub.f32 %v8487_v44, %v8618_v31  ;;  %v6078_v34 = vsub.f32 %v8483_v42, %v8618_v31  ;;  %v6079_v5 = vsub.f32 %v8490_v45, %v8618_v31 }
 0x52f   : > { %v6080_v40 = vsub.f32 %v8501_v8, %v8618_v31  ;;  %v6081_v46 = vsub.f32 %v8510_v12, %v8618_v31  ;;  %v6082_v44 = vsub.f32 %v8529_v55, %v8618_v31  ;;  %v6083_v45 = vsub.f32 %v8535_v22, %v8618_v31 }
 0x530   : > { %v6108_v37 = vmul.f32 1.442695, %v6076_v32  ;;  %v6110_v39 = vmul.f32 1.442695, %v6077_v33  ;;  %v6112_v43 = vmul.f32 1.442695, %v6078_v34  ;;  %v6084_v8 = vsub.f32 %v8532_v57, %v8618_v31 }
 0x531   : > { %v6114_v41 = vmul.f32 1.442695, %v6079_v5  ;;  %v6116_v42 = vmul.f32 1.442695, %v6080_v40  ;;  %v8634_v50 = vpop.permute.xlu1 %6073  ;;  %v6118_v13 = vmul.f32 1.442695, %v6081_v46  ;;  %v6085_v12 = vsub.f32 %v8538_v59, %v8618_v31 }
 0x532   : > { %7285 = vpow2.f32 %v6108_v37  ;;  %v6120_v15 = vmul.f32 1.442695, %v6082_v44  ;;  %v6092_v55 = vsub.f32 %v8495_v48, %v8634_v50  ;;  %v6122_v2 = vmul.f32 1.442695, %v6083_v45 }
 0x533   : > { %7287 = vpow2.f32 %v6110_v39  ;;  %v6093_v19 = vsub.f32 %v8504_v49, %v8634_v50  ;;  %v6086_v22 = vsub.f32 %v8557_v14, %v8618_v31  ;;  %v6124_v53 = vmul.f32 1.442695, %v6084_v8 }
 0x534   : > { %7289 = vpow2.f32 %v6112_v43  ;;  %v6126_v57 = vmul.f32 1.442695, %v6085_v12  ;;  %v6094_v59 = vsub.f32 %v8498_v4, %v8634_v50  ;;  %v6087_v58 = vsub.f32 %v8561_v30, %v8618_v31 }
 0x535   : > { %7291 = vpow2.f32 %v6114_v41  ;;  %v6140_v60 = vmul.f32 1.442695, %v6092_v55  ;;  %v6095_v49 = vsub.f32 %v8507_v9, %v8634_v50  ;;  %v6142_v7 = vmul.f32 1.442695, %v6093_v19 }
 0x536   : > { %7293 = vpow2.f32 %v6116_v42  ;;  %v6088_v14 = vsub.f32 %v8568_v36, %v8618_v31  ;;  %v6128_v1 = vmul.f32 1.442695, %v6086_v22  ;;  %v6096_v4 = vsub.f32 %v8515_v51, %v8634_v50 }
 0x537   : > { %7295 = vpow2.f32 %v6118_v13  ;;  %v6144_v30 = vmul.f32 1.442695, %v6094_v59  ;;  %v6089_v29 = vsub.f32 %v8574_v11, %v8618_v31  ;;  %v6130_v32 = vmul.f32 1.442695, %v6087_v58 }
 0x538   : > { %7297 = vpow2.f32 %v6120_v15  ;;  %v6097_v34 = vsub.f32 %v8520_v16, %v8634_v50  ;;  %v6146_v36 = vmul.f32 1.442695, %v6095_v49  ;;  %v6090_v5 = vsub.f32 %v8578_v47, %v8618_v31 }
 0x539   : > { %7299 = vpow2.f32 %v6122_v2  ;;  %v6132_v37 = vmul.f32 1.442695, %v6088_v14  ;;  %v6098_v40 = vsub.f32 %v8542_v61, %v8634_v50  ;;  %v6148_v11 = vmul.f32 1.442695, %v6096_v4 }
 0x53a   : > { %7301 = vpow2.f32 %v6124_v53  ;;  %v6091_v43 = vsub.f32 %v8584_v24, %v8618_v31  ;;  %v6134_v46 = vmul.f32 1.442695, %v6089_v29  ;;  %v6099_v44 = vsub.f32 %v8548_v0, %v8634_v50 }
 0x53b   : > { %7303 = vpow2.f32 %v6126_v57  ;;  %v6150_v47 = vmul.f32 1.442695, %v6097_v34  ;;  %v6136_v42 = vmul.f32 1.442695, %v6090_v5  ;;  %v6100_v61 = vsub.f32 %v8544_v63, %v8634_v50 }
 0x53c   : > { %v7286_v10 = vpop.eup %7285  ;;  %7305 = vpow2.f32 %v6140_v60  ;;  %v6152_v8 = vmul.f32 1.442695, %v6098_v40  ;;  %v6138_v24 = vmul.f32 1.442695, %v6091_v43  ;;  %v6101_v55 = vsub.f32 %v8550_v17, %v8634_v50 }
 0x53d   : > { %v7288_v18 = vpop.eup %7287  ;;  %7307 = vpow2.f32 %v6142_v7  ;;  %v6154_v0 = vmul.f32 1.442695, %v6099_v44  ;;  %v6102_v22 = vsub.f32 %v8566_v35, %v8634_v50  ;;  %v6156_v63 = vmul.f32 1.442695, %v6100_v61 }
 0x53e   : > { %v6172_v48 = vadd.f32 %v7288_v18, %v7286_v10  ;;  %v7290_v62 = vpop.eup %7289  ;;  %7309 = vpow2.f32 %v6128_v1  ;;  %v6103_v58 = vsub.f32 %v8572_v38, %v8634_v50  ;;  %v6158_v17 = vmul.f32 1.442695, %v6101_v55 }
 0x53f   : > { %v7292_v26 = vpop.eup %7291  ;;  %7311 = vpow2.f32 %v6144_v30  ;;  %v6104_v7 = vsub.f32 %v8580_v20, %v8634_v50  ;;  %v6160_v35 = vmul.f32 1.442695, %v6102_v22  ;;  %v6105_v4 = vsub.f32 %v8586_v52, %v8634_v50  ;;  %v6056_v22 = vld [vmem:[#allocation3] sm:$0xff] }
 0x540   : > { %v6173_v3 = vadd.f32 %v7290_v62, %v6172_v48  ;;  %v7294_v9 = vpop.eup %7293  ;;  %7313 = vpow2.f32 %v6130_v32  ;;  %v6162_v38 = vmul.f32 1.442695, %v6103_v58  ;;  %v6057_v58 = vld [vmem:[#allocation3 + $0x8] sm:$0xff] }
 0x541   : > { %v7296_v51 = vpop.eup %7295  ;;  %7315 = vpow2.f32 %v6146_v36  ;;  %v6164_v20 = vmul.f32 1.442695, %v6104_v7  ;;  %v6166_v52 = vmul.f32 1.442695, %v6105_v4 }
 0x542   : > { %v6174_v33 = vadd.f32 %v7292_v26, %v6173_v3  ;;  %v7298_v41 = vpop.eup %7297  ;;  %7317 = vpow2.f32 %v6132_v37 }
 0x543   : > { %v7300_v13 = vpop.eup %7299  ;;  %7319 = vpow2.f32 %v6148_v11 }
 0x544   : > { %v6175_v39 = vadd.f32 %v7294_v9, %v6174_v33  ;;  %v7302_v12 = vpop.eup %7301  ;;  %7321 = vpow2.f32 %v6134_v46  ;;  %v6106_v9 = vsub.f32 %v8590_v54, %v8634_v50 }
 0x545   : > { %v7304_v15 = vpop.eup %7303  ;;  %7323 = vpow2.f32 %v6150_v47 }
 0x546   : > { %v6176_v16 = vadd.f32 %v7296_v51, %v6175_v39  ;;  %v7306_v2 = vpop.eup %7305  ;;  %7325 = vpow2.f32 %v6136_v42  ;;  %v6107_v39 = vsub.f32 %v8593_v56, %v8634_v50  ;;  %v6168_v46 = vmul.f32 1.442695, %v6106_v9 }
 0x547   : > { %v7308_v10 = vpop.eup %7307  ;;  %7327 = vpow2.f32 %v6152_v8 }
 0x548   : > { %v6177_v45 = vadd.f32 %v7298_v41, %v6176_v16  ;;  %v7310_v53 = vpop.eup %7309  ;;  %7329 = vpow2.f32 %v6138_v24  ;;  %v6189_v57 = vadd.f32 %v7308_v10, %v7306_v2  ;;  %v6170_v44 = vmul.f32 1.442695, %v6107_v39 }
 0x549   : > { %v7312_v59 = vpop.eup %7311  ;;  %7331 = vpow2.f32 %v6154_v0 }
 0x54a   : > { %v6178_v31 = vadd.f32 %v7300_v13, %v6177_v45  ;;  %v7314_v48 = vpop.eup %7313  ;;  %v6190_v62 = vadd.f32 %v7312_v59, %v6189_v57  ;;  %7333 = vpow2.f32 %v6156_v63  ;;  %v6062_v63 = vmul.f32 1.442695, %v6059_v23 }
 0x54b   : > { %v7316_v49 = vpop.eup %7315  ;;  %7335 = vpow2.f32 %v6158_v17 }
 0x54c   : > { %v6179_v19 = vadd.f32 %v7302_v12, %v6178_v31  ;;  %v7318_v14 = vpop.eup %7317  ;;  %v6191_v3 = vadd.f32 %v7316_v49, %v6190_v62  ;;  %7337 = vpow2.f32 %v6160_v35  ;;  %v6218_v62 = vld [vmem:[#allocation2 + $0x8] sm:$0xff] (!%p7109_p7) }
 0x54d   : > { %v7320_v26 = vpop.eup %7319  ;;  %7339 = vpow2.f32 %v6162_v38 }
 0x54e   : > { %v6180_v18 = vadd.f32 %v7304_v15, %v6179_v19  ;;  %v7322_v30 = vpop.eup %7321  ;;  %v6192_v32 = vadd.f32 %v7320_v26, %v6191_v3  ;;  %7341 = vpow2.f32 %v6164_v20  ;;  %v6060_v19 = vmul.f32 1.442695, %v6058_v28  ;;  %v6217_v28 = vld [vmem:[#allocation2] sm:$0xff] (!%p7109_p7) }
 0x54f   : > { %v7324_v33 = vpop.eup %7323  ;;  %7343 = vpow2.f32 %v6166_v52 }
 0x550   : > { %v6181_v60 = vadd.f32 %v7310_v53, %v6180_v18  ;;  %v7326_v34 = vpop.eup %7325  ;;  %v6193_v5 = vadd.f32 %v7324_v33, %v6192_v32  ;;  %7345 = vpow2.f32 %v6168_v46 }
 0x551   : > { %v7328_v37 = vpop.eup %7327  ;;  %7347 = vpow2.f32 %v6170_v44 }
 0x552   : > { %v6182_v1 = vadd.f32 %v7314_v48, %v6181_v60  ;;  %v7330_v51 = vpop.eup %7329  ;;  %v6194_v11 = vadd.f32 %v7328_v37, %v6193_v5  ;;  %7349 = vpow2.f32 %v6060_v19 }
 0x553   : > { %v7332_v43 = vpop.eup %7331  ;;  %7351 = vpow2.f32 %v6062_v63 }
 0x554   : > { %v6183_v29 = vadd.f32 %v7318_v14, %v6182_v1  ;;  %v6195_v41 = vadd.f32 %v7332_v43, %v6194_v11  ;;  %v7334_v54 = vpop.eup %7333 }
 0x555   : > { %v7336_v42 = vpop.eup %7335 }
 0x556   : > { %v6184_v36 = vadd.f32 %v7322_v30, %v6183_v29  ;;  %v6196_v47 = vadd.f32 %v7334_v54, %v6195_v41  ;;  %v7338_v13 = vpop.eup %7337 }
 0x557   : > { %v7340_v50 = vpop.eup %7339 }
 0x558   : > { %v6185_v40 = vadd.f32 %v7326_v34, %v6184_v36  ;;  %v6197_v45 = vadd.f32 %v7336_v42, %v6196_v47  ;;  %v7342_v8 = vpop.eup %7341 }
 0x559   : > { %v7344_v24 = vpop.eup %7343 }
 0x55a   : > { %v6186_v16 = vadd.f32 %v7330_v51, %v6185_v40  ;;  %v6198_v56 = vadd.f32 %v7338_v13, %v6197_v45  ;;  %v7346_v15 = vpop.eup %7345 }
 0x55b   : > { %v7348_v0 = vpop.eup %7347 }
 0x55c   : > { %6187 = vadd.xlane.f32.xlu0 %v6186_v16  ;;  %v6199_v61 = vadd.f32 %v7340_v50, %v6198_v56  ;;  %v7350_v10 = vpop.eup %7349 }
 0x55d   : > { %v6064_v53 = vmul.f32 %v7350_v10, %v6056_v22  ;;  %v7352_v59 = vpop.eup %7351 }
 0x55e   : > { %v6200_v12 = vadd.f32 %v7342_v8, %v6199_v61  ;;  %v6065_v17 = vmul.f32 %v7352_v59, %v6057_v58 }
 0x560   : > { %v6201_v31 = vadd.f32 %v7344_v24, %v6200_v12 }
 0x562   : > { %v6202_v55 = vadd.f32 %v7346_v15, %v6201_v31 }
 0x564   : > { %v6203_v2 = vadd.f32 %v7348_v0, %v6202_v55 }
 0x566   : > { %6204 = vadd.xlane.f32.xlu1 %v6203_v2 }
 0x5e9   : > { %v6188_v18 = vpop.xlane.xlu0 %6187 }
 0x5ea   : > { %v6206_v57 = vadd.f32 %v6188_v18, %v6064_v53 }
 0x5ec   : > { %6209 = vst.msk [vmem:[#allocation3] sm:$0xff] %vm6208_vm1, %v6206_v57 }
 0x5f0   : > { %6216 = sbr.rel (%p7109_p7) target bundleno = 1550 (0x60e), region = 44 }
 0x5f3   : > { %v6205_v48 = vpop.xlane.xlu1 %6204  ;;  %v6219_v6 = vld [vmem:[#allocation3] sm:$0xff] (!%p7109_p7) }
 0x5f4   : > { %v6207_v60 = vadd.f32 %v6205_v48, %v6065_v17  ;;  %7371 = vlog2.f32 (!%p7109_p7), %v6219_v6 }
 0x5f6   : > { %6210 = vst.msk [vmem:[#allocation3 + $0x8] sm:$0xff] %vm6208_vm1, %v6207_v60 }
 0x5fd   : > { %v6220_v27 = vld [vmem:[#allocation3 + $0x8] sm:$0xff] }
 0x5fe   : > { %7373 = vlog2.f32 %v6220_v27  ;;  %v7372_v21 = vpop.eup %7371 }
 0x5ff   : > { %v6222_v23 = vmul.f32 0.6931472, %v7372_v21 }
 0x601   : > { %v6225_v7 = vadd.f32 %v6222_v23, %v6217_v28 }
 0x603   : > { %6227 = vst.msk [vmem:[%s8724_s3] sm:$0xff] %vm6208_vm1, %v6225_v7 }
 0x608   : > { %v7374_v25 = vpop.eup %7373 }
 0x609   : > { %v6224_v49 = vmul.f32 0.6931472, %v7374_v25 }
 0x60b   : > { %v6226_v35 = vadd.f32 %v6224_v49, %v6218_v62 }
 0x60d   : > { %6228 = vst.msk [vmem:[%s8724_s3 + $0x8] sm:$0xff] %vm6208_vm1, %v6226_v35 }
 0x60e PF: > { %s16_s17 = sadd.s32 1, %s7455_s17   ;;  %s8728_s12 = smov %s7439_s13 }
 0x60f   : > { %p13_p5 = scmp.ge.s32.totalorder %s16_s17, 10   ;;  %s8729_s13 = smov %s7443_s14 }
 0x610   : > { %s8730_s14 = smov %s7529_s23  ;;  %s8731_s15 = smov %s7451_s16 }
 0x611   : > { %s8732_s16 = smov %s8734_s19  ;;  %15 = sbr.rel (!%p13_p5) target bundleno = 4 (0x4), region = 86 }
 0x618   :  { %6251 = vsyncpa [#allocation5], 1 }
 0x619   :  { %6253 = vsyncpa [#allocation5 + $0x1], 1 }

</bundles_post_ra>
